<compile_context>
chip_gen: v7x
topology: tpu7x:2x2x1
jax: 0.10.0
libtpu: 0.0.40
codegen_flags: <defaults>
</compile_context>

<pallas_src>
import jax
import jax.numpy as jnp
from jax.experimental import pallas as pl
from jax.experimental.pallas import tpu as pltpu

F32 = jnp.float32
BF16 = jnp.bfloat16

LANE = 128          # padded output-feature width (lane-dense stores / full MXU columns)
C1_OUT = 6          # real conv1 output channels
C2_OUT = 16         # real conv2 output channels
NUM_CLASSES = 10
_VMEM_LIMIT = 32 * 1024 * 1024


# ---------------------------------------------------------------------------
# Pallas kernels
# ---------------------------------------------------------------------------
def conv_relu_pool_kernel(p00_ref, p01_ref, p10_ref, p11_ref, w_ref, b_ref, o_ref):
    """Fused conv(as im2col GEMM) + bias + ReLU + 2x2/2 maxpool for one row tile.

    Each p_ab holds the patches whose conv outputs land in pool-window corner (a,b);
    the elementwise max of the four GEMM results *is* the maxpool, so only the pooled
    tensor is written back (lane-dense, OC padded to 128).
    """
    w = w_ref[...]
    m = jnp.dot(p00_ref[...], w, preferred_element_type=F32)
    m = jnp.maximum(m, jnp.dot(p01_ref[...], w, preferred_element_type=F32))
    m = jnp.maximum(m, jnp.dot(p10_ref[...], w, preferred_element_type=F32))
    m = jnp.maximum(m, jnp.dot(p11_ref[...], w, preferred_element_type=F32))
    o_ref[...] = jnp.maximum(m + b_ref[...], 0.0).astype(o_ref.dtype)


def conv_pool_mlp_kernel(p00_ref, p01_ref, p10_ref, p11_ref,
                         cw_ref, cb_ref,
                         w1_ref, b1_ref, w2_ref, b2_ref, w3_ref, b3_ref,
                         o_ref):
    """Fused conv2 + ReLU + pool + fc1 + ReLU + fc2 + ReLU + fc3.

    conv2 GEMM rows are ordered (spatial position p, batch b) with p major, so the
    NCHW flatten feeding fc1 is expressed as 25 sublane-aligned (B,128)x(128,128)
    matmuls against fc1 stored as (25,128,128) blocks — no in-kernel reshape.
    """
    nb = o_ref.shape[0]                                   # padded batch (multiple of 8)
    cw = cw_ref[...]
    z = jnp.dot(p00_ref[...], cw, preferred_element_type=F32)
    z = jnp.maximum(z, jnp.dot(p01_ref[...], cw, preferred_element_type=F32))
    z = jnp.maximum(z, jnp.dot(p10_ref[...], cw, preferred_element_type=F32))
    z = jnp.maximum(z, jnp.dot(p11_ref[...], cw, preferred_element_type=F32))
    z = jnp.maximum(z + cb_ref[...], 0.0)                 # pooled conv2: (25*nb, 128) f32

    # fc1: sum over the 25 spatial positions (flatten permutation folded into w1 blocks)
    h = jnp.zeros((nb, LANE), F32) + b1_ref[...]
    for p in range(z.shape[0] // nb):
        zp = z[p * nb:(p + 1) * nb, :].astype(BF16)
        h = h + jnp.dot(zp, w1_ref[p], preferred_element_type=F32)
    h = jnp.maximum(h, 0.0)

    h = jnp.dot(h.astype(BF16), w2_ref[...], preferred_element_type=F32) + b2_ref[...]
    h = jnp.maximum(h, 0.0)
    o_ref[...] = jnp.dot(h.astype(BF16), w3_ref[...], preferred_element_type=F32) + b3_ref[...]


# ---------------------------------------------------------------------------
# Wrappers
# ---------------------------------------------------------------------------
def _full_spec(shape):
    n = len(shape)
    return pl.BlockSpec(shape, lambda i, _n=n: (0,) * _n)


def _conv_pool_patches(x, ksize, batch_minor):
    """im2col patches for conv(ksize, VALID, stride 1) followed by 2x2/2 maxpool.

    Returns 4 matrices (one per pool-window corner); the elementwise max of the four
    per-corner GEMM results equals the pooled conv output. Row order is
    (b, ph, pw) if batch_minor is False else (ph, pw, b).
    """
    B, H, W, C = x.shape
    PH, PW = (H - ksize + 1) // 2, (W - ksize + 1) // 2
    mats = []
    for oy in range(2):
        for ox in range(2):
            cols = []
            for di in range(ksize):
                for dj in range(ksize):
                    cols.append(x[:, oy + di: oy + di + 2 * PH: 2,
                                  ox + dj: ox + dj + 2 * PW: 2, :])
            pat = jnp.concatenate(cols, axis=-1)           # (B, PH, PW, k*k*C)
            if batch_minor:
                pat = jnp.transpose(pat, (1, 2, 0, 3))     # (PH, PW, B, K)
            mats.append(pat.reshape(B * PH * PW, ksize * ksize * C))
    return mats, PH, PW


def conv1_stage(x_nhwc, w_pad, b_pad, *, tile_rows=224):
    """conv1 + ReLU + pool, output (B, 14, 14, 128) bf16 (channels >= 6 are zero)."""
    Bp = x_nhwc.shape[0]
    mats, PH, PW = _conv_pool_patches(x_nhwc, 5, batch_minor=False)
    M, K = mats[0].shape
    tm = tile_rows if (M % tile_rows == 0) else M          # bf16 tiles: tm % 16 == 0
    grid = (M // tm,)
    patch_spec = pl.BlockSpec((tm, K), lambda i: (i, 0))
    out = pl.pallas_call(
        conv_relu_pool_kernel,
        out_shape=jax.ShapeDtypeStruct((M, LANE), BF16),
        grid=grid,
        in_specs=[patch_spec] * 4 + [
            pl.BlockSpec((K, LANE), lambda i: (0, 0)),
            pl.BlockSpec((1, LANE), lambda i: (0, 0)),
        ],
        out_specs=pl.BlockSpec((tm, LANE), lambda i: (i, 0)),
        compiler_params=pltpu.CompilerParams(
            dimension_semantics=("parallel",),
            vmem_limit_bytes=_VMEM_LIMIT),
    )(*mats, w_pad, b_pad)
    return out.reshape(Bp, PH, PW, LANE)


def conv2_mlp_stage(pooled1, params):
    """conv2 + ReLU + pool + full FC head, output (B, 128) f32 padded logits."""
    Bp = pooled1.shape[0]
    mats, _, _ = _conv_pool_patches(pooled1, 5, batch_minor=True)   # rows = (p, b)
    weights = (params['c2w'], params['c2b'],
               params['w1'], params['b1'],
               params['w2'], params['b2'],
               params['w3'], params['b3'])
    in_specs = [_full_spec(m.shape) for m in mats] + [_full_spec(w.shape) for w in weights]
    return pl.pallas_call(
        conv_pool_mlp_kernel,
        out_shape=jax.ShapeDtypeStruct((Bp, LANE), F32),
        grid=(1,),
        in_specs=in_specs,
        out_specs=_full_spec((Bp, LANE)),
        compiler_params=pltpu.CompilerParams(
            dimension_semantics=("arbitrary",),
            vmem_limit_bytes=_VMEM_LIMIT),
    )(*mats, *weights)


def net_forward(x_nchw, params):
    B = x_nchw.shape[0]
    Bp = ((B + 7) // 8) * 8                                  # sublane-aligned batch
    x = jnp.transpose(x_nchw, (0, 2, 3, 1)).astype(BF16)     # NCHW -> NHWC, bf16 operands
    x = jnp.pad(x, ((0, Bp - B), (0, 0), (0, 0), (0, 0)))
    pooled1 = conv1_stage(x, params['c1w'], params['c1b'])   # (Bp,14,14,128) bf16
    logits = conv2_mlp_stage(pooled1[..., :C1_OUT], params)  # (Bp,128) f32
    return logits[:B, :NUM_CLASSES]


# ---------------------------------------------------------------------------
# Parameters (PyTorch-style raw params -> padded/bf16 kernel layout)
# ---------------------------------------------------------------------------
def init_raw_params(key):
    ks = jax.random.split(key, 10)
    return {
        'c1w': 0.1 * jax.random.normal(ks[0], (6, 3, 5, 5), F32),
        'c1b': 0.1 * jax.random.normal(ks[1], (6,), F32),
        'c2w': 0.1 * jax.random.normal(ks[2], (16, 6, 5, 5), F32),
        'c2b': 0.1 * jax.random.normal(ks[3], (16,), F32),
        'w1': 0.05 * jax.random.normal(ks[4], (400, 120), F32),
        'b1': 0.05 * jax.random.normal(ks[5], (120,), F32),
        'w2': 0.05 * jax.random.normal(ks[6], (120, 84), F32),
        'b2': 0.05 * jax.random.normal(ks[7], (84,), F32),
        'w3': 0.05 * jax.random.normal(ks[8], (84, 10), F32),
        'b3': 0.05 * jax.random.normal(ks[9], (10,), F32),
    }


def _pad2d(a, rows, cols, dtype):
    return jnp.zeros((rows, cols), dtype).at[:a.shape[0], :a.shape[1]].set(a.astype(dtype))


def pack_params(raw):
    """Kernel layout: conv weights as (KH*KW*IC, 128) im2col GEMMs, fc1 as (25,128,128)
    blocks with the NCHW flatten permutation folded in, all matmul operands bf16,
    all biases f32 (1,128)."""
    cw1 = jnp.transpose(raw['c1w'], (2, 3, 1, 0)).reshape(75, C1_OUT)
    cw2 = jnp.transpose(raw['c2w'], (2, 3, 1, 0)).reshape(150, C2_OUT)
    # torch flatten index = c*25 + (h*5 + w); kernel spatial block index p = h*5 + w
    w1b = jnp.transpose(raw['w1'].reshape(C2_OUT, 25, 120), (1, 0, 2))    # (25, 16, 120)
    w1_blocks = jnp.zeros((25, LANE, LANE), BF16).at[:, :C2_OUT, :120].set(w1b.astype(BF16))
    return {
        'c1w': _pad2d(cw1, 75, LANE, BF16),
        'c1b': _pad2d(raw['c1b'][None, :], 1, LANE, F32),
        'c2w': _pad2d(cw2, 150, LANE, BF16),
        'c2b': _pad2d(raw['c2b'][None, :], 1, LANE, F32),
        'w1': w1_blocks,
        'b1': _pad2d(raw['b1'][None, :], 1, LANE, F32),
        'w2': _pad2d(raw['w2'], LANE, LANE, BF16),
        'b2': _pad2d(raw['b2'][None, :], 1, LANE, F32),
        'w3': _pad2d(raw['w3'], LANE, LANE, BF16),
        'b3': _pad2d(raw['b3'][None, :], 1, LANE, F32),
    }


# ---------------------------------------------------------------------------
# Pure-JAX reference (emulate_bf16=True mirrors the kernel's bf16 operand rounding)
# ---------------------------------------------------------------------------
def net_reference(x_nchw, raw, emulate_bf16):
    q = (lambda t: t.astype(BF16).astype(F32)) if emulate_bf16 else (lambda t: t)

    def conv(x, w, b):
        y = jax.lax.conv_general_dilated(q(x), q(w), (1, 1), 'VALID',
                                         dimension_numbers=('NCHW', 'OIHW', 'NCHW'))
        return jax.nn.relu(y + b[None, :, None, None])

    def pool(y):
        return jax.lax.reduce_window(y, -jnp.inf, jax.lax.max,
                                     (1, 1, 2, 2), (1, 1, 2, 2), 'VALID')

    y = pool(conv(x_nchw, raw['c1w'], raw['c1b']))            # (B,6,14,14)
    y = pool(conv(y, raw['c2w'], raw['c2b']))                 # (B,16,5,5)
    f = y.reshape(y.shape[0], 16 * 5 * 5)                     # torch NCHW flatten
    h = jax.nn.relu(jnp.dot(q(f), q(raw['w1']), preferred_element_type=F32) + raw['b1'])
    h = jax.nn.relu(jnp.dot(q(h), q(raw['w2']), preferred_element_type=F32) + raw['b2'])
    return jnp.dot(q(h), q(raw['w3']), preferred_element_type=F32) + raw['b3']


if __name__ == "__main__":
    key = jax.random.PRNGKey(0)
    kp, kx = jax.random.split(key)
    raw = init_raw_params(kp)
    params = pack_params(raw)
    # forward implies 32x32x3 input (16*5*5 after two conv5+pool2 stages); batch=2
    x = jax.random.normal(kx, (2, 3, 32, 32), F32)

    fwd = jax.jit(net_forward)
    logits = jax.block_until_ready(fwd(x, params))
    assert logits.shape == (2, 10), logits.shape

    # tight check against a reference with matching bf16 operand rounding
    ref_bf16 = jax.block_until_ready(net_reference(x, raw, emulate_bf16=True))
    err = float(jnp.max(jnp.abs(logits - ref_bf16)))
    assert err < 2e-3, f"mismatch vs bf16-matched reference: max abs err {err}"

    # informational: drift vs the pure-f32 PyTorch-semantics reference
    ref_f32 = jax.block_until_ready(net_reference(x, raw, emulate_bf16=False))
    _drift = float(jnp.max(jnp.abs(logits - ref_f32)))

    print("KERNEL_OK")
</pallas_src>

<mosaic_0001>
module attributes {stable_mosaic.version = 11 : i64} {
  func.func @conv_relu_pool_kernel(%arg0: i32, %arg1: memref<224x75xbf16, #tpu.memory_space<vmem>>, %arg2: memref<224x75xbf16, #tpu.memory_space<vmem>>, %arg3: memref<224x75xbf16, #tpu.memory_space<vmem>>, %arg4: memref<224x75xbf16, #tpu.memory_space<vmem>>, %arg5: memref<75x128xbf16, #tpu.memory_space<vmem>>, %arg6: memref<1x128xf32, #tpu.memory_space<vmem>>, %arg7: memref<224x128xbf16, #tpu.memory_space<vmem>>) attributes {dimension_semantics = [#tpu.dimension_semantics<parallel>], iteration_bounds = array<i64: 7>, scalar_prefetch = 0 : i64, scratch_operands = 0 : i64, tpu.core_type = #tpu.core_type<tc>, window_params = [{transform_indices = @transform_0, window_bounds = array<i64: 224, 75>}, {transform_indices = @transform_1, window_bounds = array<i64: 224, 75>}, {transform_indices = @transform_2, window_bounds = array<i64: 224, 75>}, {transform_indices = @transform_3, window_bounds = array<i64: 224, 75>}, {pipeline_mode = #tpu.pipeline_mode<synchronous>, transform_indices = @transform_4, window_bounds = array<i64: 75, 128>}, {pipeline_mode = #tpu.pipeline_mode<synchronous>, transform_indices = @transform_5, window_bounds = array<i64: 1, 128>}, {transform_indices = @transform_6, window_bounds = array<i64: 224, 128>}]} {
    %c0 = arith.constant 0 : index
    %c0_0 = arith.constant 0 : index
    %0 = vector.load %arg5[%c0, %c0_0] : memref<75x128xbf16, #tpu.memory_space<vmem>>, vector<75x128xbf16>
    %c0_1 = arith.constant 0 : index
    %c0_2 = arith.constant 0 : index
    %1 = vector.load %arg1[%c0_1, %c0_2] : memref<224x75xbf16, #tpu.memory_space<vmem>>, vector<224x75xbf16>
    %cst = arith.constant dense<0.000000e+00> : vector<224x128xf32>
    %2 = tpu.matmul %1, %0, %cst {dimension_numbers = #tpu.dot_dimension_numbers<[1], [0], [0], [1], [0, 0, 1, 1], [], []>} : vector<224x75xbf16>, vector<75x128xbf16>, vector<224x128xf32> -> vector<224x128xf32>
    %c0_3 = arith.constant 0 : index
    %c0_4 = arith.constant 0 : index
    %3 = vector.load %arg2[%c0_3, %c0_4] : memref<224x75xbf16, #tpu.memory_space<vmem>>, vector<224x75xbf16>
    %cst_5 = arith.constant dense<0.000000e+00> : vector<224x128xf32>
    %4 = tpu.matmul %3, %0, %cst_5 {dimension_numbers = #tpu.dot_dimension_numbers<[1], [0], [0], [1], [0, 0, 1, 1], [], []>} : vector<224x75xbf16>, vector<75x128xbf16>, vector<224x128xf32> -> vector<224x128xf32>
    %5 = arith.maximumf %2, %4 : vector<224x128xf32>
    %c0_6 = arith.constant 0 : index
    %c0_7 = arith.constant 0 : index
    %6 = vector.load %arg3[%c0_6, %c0_7] : memref<224x75xbf16, #tpu.memory_space<vmem>>, vector<224x75xbf16>
    %cst_8 = arith.constant dense<0.000000e+00> : vector<224x128xf32>
    %7 = tpu.matmul %6, %0, %cst_8 {dimension_numbers = #tpu.dot_dimension_numbers<[1], [0], [0], [1], [0, 0, 1, 1], [], []>} : vector<224x75xbf16>, vector<75x128xbf16>, vector<224x128xf32> -> vector<224x128xf32>
    %8 = arith.maximumf %5, %7 : vector<224x128xf32>
    %c0_9 = arith.constant 0 : index
    %c0_10 = arith.constant 0 : index
    %9 = vector.load %arg4[%c0_9, %c0_10] : memref<224x75xbf16, #tpu.memory_space<vmem>>, vector<224x75xbf16>
    %cst_11 = arith.constant dense<0.000000e+00> : vector<224x128xf32>
    %10 = tpu.matmul %9, %0, %cst_11 {dimension_numbers = #tpu.dot_dimension_numbers<[1], [0], [0], [1], [0, 0, 1, 1], [], []>} : vector<224x75xbf16>, vector<75x128xbf16>, vector<224x128xf32> -> vector<224x128xf32>
    %11 = arith.maximumf %8, %10 : vector<224x128xf32>
    %c0_12 = arith.constant 0 : index
    %c0_13 = arith.constant 0 : index
    %12 = vector.load %arg6[%c0_12, %c0_13] : memref<1x128xf32, #tpu.memory_space<vmem>>, vector<1x128xf32>
    %13 = vector.broadcast %12 : vector<1x128xf32> to vector<224x128xf32>
    %14 = arith.addf %11, %13 : vector<224x128xf32>
    %cst_14 = arith.constant 0.000000e+00 : f32
    %15 = vector.broadcast %cst_14 : f32 to vector<224x128xf32>
    %16 = arith.maximumf %14, %15 : vector<224x128xf32>
    %17 = arith.truncf %16 : vector<224x128xf32> to vector<224x128xbf16>
    %c0_15 = arith.constant 0 : index
    %c0_16 = arith.constant 0 : index
    %18 = vector.load %arg7[%c0_15, %c0_16] : memref<224x128xbf16, #tpu.memory_space<vmem>>, vector<224x128xbf16>
    tpu.vector_store %arg7[%c0_15, %c0_16], %17 {strides = array<i32>} : memref<224x128xbf16, #tpu.memory_space<vmem>>, vector<224x128xbf16>,
    return
  }
  func.func @transform_0(%arg0: i32) -> (i32, i32) {
    %c0_i32 = arith.constant 0 : i32
    %c0_i32_0 = arith.constant 0 : i32
    return %arg0, %c0_i32 : i32, i32
  }
  func.func @transform_1(%arg0: i32) -> (i32, i32) {
    %c0_i32 = arith.constant 0 : i32
    %c0_i32_0 = arith.constant 0 : i32
    return %arg0, %c0_i32 : i32, i32
  }
  func.func @transform_2(%arg0: i32) -> (i32, i32) {
    %c0_i32 = arith.constant 0 : i32
    %c0_i32_0 = arith.constant 0 : i32
    return %arg0, %c0_i32 : i32, i32
  }
  func.func @transform_3(%arg0: i32) -> (i32, i32) {
    %c0_i32 = arith.constant 0 : i32
    %c0_i32_0 = arith.constant 0 : i32
    return %arg0, %c0_i32 : i32, i32
  }
  func.func @transform_4(%arg0: i32) -> (i32, i32) {
    %c0_i32 = arith.constant 0 : i32
    %c0_i32_0 = arith.constant 0 : i32
    %c0_i32_1 = arith.constant 0 : i32
    return %c0_i32, %c0_i32_0 : i32, i32
  }
  func.func @transform_5(%arg0: i32) -> (i32, i32) {
    %c0_i32 = arith.constant 0 : i32
    %c0_i32_0 = arith.constant 0 : i32
    %c0_i32_1 = arith.constant 0 : i32
    return %c0_i32, %c0_i32_0 : i32, i32
  }
  func.func @transform_6(%arg0: i32) -> (i32, i32) {
    %c0_i32 = arith.constant 0 : i32
    %c0_i32_0 = arith.constant 0 : i32
    return %arg0, %c0_i32 : i32, i32
  }
}

module attributes {stable_mosaic.version = 11 : i64} {
  func.func @conv_pool_mlp_kernel(%arg0: i32, %arg1: memref<200x150xbf16, #tpu.memory_space<vmem>>, %arg2: memref<200x150xbf16, #tpu.memory_space<vmem>>, %arg3: memref<200x150xbf16, #tpu.memory_space<vmem>>, %arg4: memref<200x150xbf16, #tpu.memory_space<vmem>>, %arg5: memref<150x128xbf16, #tpu.memory_space<vmem>>, %arg6: memref<1x128xf32, #tpu.memory_space<vmem>>, %arg7: memref<25x128x128xbf16, #tpu.memory_space<vmem>>, %arg8: memref<1x128xf32, #tpu.memory_space<vmem>>, %arg9: memref<128x128xbf16, #tpu.memory_space<vmem>>, %arg10: memref<1x128xf32, #tpu.memory_space<vmem>>, %arg11: memref<128x128xbf16, #tpu.memory_space<vmem>>, %arg12: memref<1x128xf32, #tpu.memory_space<vmem>>, %arg13: memref<8x128xf32, #tpu.memory_space<vmem>>) attributes {dimension_semantics = [#tpu.dimension_semantics<arbitrary>], iteration_bounds = array<i64: 1>, scalar_prefetch = 0 : i64, scratch_operands = 0 : i64, tpu.core_type = #tpu.core_type<tc>, window_params = [{pipeline_mode = #tpu.pipeline_mode<synchronous>, transform_indices = @transform_0, window_bounds = array<i64: 200, 150>}, {pipeline_mode = #tpu.pipeline_mode<synchronous>, transform_indices = @transform_1, window_bounds = array<i64: 200, 150>}, {pipeline_mode = #tpu.pipeline_mode<synchronous>, transform_indices = @transform_2, window_bounds = array<i64: 200, 150>}, {pipeline_mode = #tpu.pipeline_mode<synchronous>, transform_indices = @transform_3, window_bounds = array<i64: 200, 150>}, {pipeline_mode = #tpu.pipeline_mode<synchronous>, transform_indices = @transform_4, window_bounds = array<i64: 150, 128>}, {pipeline_mode = #tpu.pipeline_mode<synchronous>, transform_indices = @transform_5, window_bounds = array<i64: 1, 128>}, {pipeline_mode = #tpu.pipeline_mode<synchronous>, transform_indices = @transform_6, window_bounds = array<i64: 25, 128, 128>}, {pipeline_mode = #tpu.pipeline_mode<synchronous>, transform_indices = @transform_7, window_bounds = array<i64: 1, 128>}, {pipeline_mode = #tpu.pipeline_mode<synchronous>, transform_indices = @transform_8, window_bounds = array<i64: 128, 128>}, {pipeline_mode = #tpu.pipeline_mode<synchronous>, transform_indices = @transform_9, window_bounds = array<i64: 1, 128>}, {pipeline_mode = #tpu.pipeline_mode<synchronous>, transform_indices = @transform_10, window_bounds = array<i64: 128, 128>}, {pipeline_mode = #tpu.pipeline_mode<synchronous>, transform_indices = @transform_11, window_bounds = array<i64: 1, 128>}, {pipeline_mode = #tpu.pipeline_mode<synchronous>, transform_indices = @transform_12, window_bounds = array<i64: 8, 128>}]} {
    %c0 = arith.constant 0 : index
    %c0_0 = arith.constant 0 : index
    %0 = vector.load %arg5[%c0, %c0_0] : memref<150x128xbf16, #tpu.memory_space<vmem>>, vector<150x128xbf16>
    %c0_1 = arith.constant 0 : index
    %c0_2 = arith.constant 0 : index
    %1 = vector.load %arg1[%c0_1, %c0_2] : memref<200x150xbf16, #tpu.memory_space<vmem>>, vector<200x150xbf16>
    %cst = arith.constant dense<0.000000e+00> : vector<200x128xf32>
    %2 = tpu.matmul %1, %0, %cst {dimension_numbers = #tpu.dot_dimension_numbers<[1], [0], [0], [1], [0, 0, 1, 1], [], []>} : vector<200x150xbf16>, vector<150x128xbf16>, vector<200x128xf32> -> vector<200x128xf32>
    %c0_3 = arith.constant 0 : index
    %c0_4 = arith.constant 0 : index
    %3 = vector.load %arg2[%c0_3, %c0_4] : memref<200x150xbf16, #tpu.memory_space<vmem>>, vector<200x150xbf16>
    %cst_5 = arith.constant dense<0.000000e+00> : vector<200x128xf32>
    %4 = tpu.matmul %3, %0, %cst_5 {dimension_numbers = #tpu.dot_dimension_numbers<[1], [0], [0], [1], [0, 0, 1, 1], [], []>} : vector<200x150xbf16>, vector<150x128xbf16>, vector<200x128xf32> -> vector<200x128xf32>
    %5 = arith.maximumf %2, %4 : vector<200x128xf32>
    %c0_6 = arith.constant 0 : index
    %c0_7 = arith.constant 0 : index
    %6 = vector.load %arg3[%c0_6, %c0_7] : memref<200x150xbf16, #tpu.memory_space<vmem>>, vector<200x150xbf16>
    %cst_8 = arith.constant dense<0.000000e+00> : vector<200x128xf32>
    %7 = tpu.matmul %6, %0, %cst_8 {dimension_numbers = #tpu.dot_dimension_numbers<[1], [0], [0], [1], [0, 0, 1, 1], [], []>} : vector<200x150xbf16>, vector<150x128xbf16>, vector<200x128xf32> -> vector<200x128xf32>
    %8 = arith.maximumf %5, %7 : vector<200x128xf32>
    %c0_9 = arith.constant 0 : index
    %c0_10 = arith.constant 0 : index
    %9 = vector.load %arg4[%c0_9, %c0_10] : memref<200x150xbf16, #tpu.memory_space<vmem>>, vector<200x150xbf16>
    %cst_11 = arith.constant dense<0.000000e+00> : vector<200x128xf32>
    %10 = tpu.matmul %9, %0, %cst_11 {dimension_numbers = #tpu.dot_dimension_numbers<[1], [0], [0], [1], [0, 0, 1, 1], [], []>} : vector<200x150xbf16>, vector<150x128xbf16>, vector<200x128xf32> -> vector<200x128xf32>
    %11 = arith.maximumf %8, %10 : vector<200x128xf32>
    %c0_12 = arith.constant 0 : index
    %c0_13 = arith.constant 0 : index
    %12 = vector.load %arg6[%c0_12, %c0_13] : memref<1x128xf32, #tpu.memory_space<vmem>>, vector<1x128xf32>
    %13 = vector.broadcast %12 : vector<1x128xf32> to vector<200x128xf32>
    %14 = arith.addf %11, %13 : vector<200x128xf32>
    %cst_14 = arith.constant 0.000000e+00 : f32
    %15 = vector.broadcast %cst_14 : f32 to vector<200x128xf32>
    %16 = arith.maximumf %14, %15 : vector<200x128xf32>
    %cst_15 = arith.constant 0.000000e+00 : f32
    %17 = vector.broadcast %cst_15 : f32 to vector<8x128xf32>
    %c0_16 = arith.constant 0 : index
    %c0_17 = arith.constant 0 : index
    %18 = vector.load %arg8[%c0_16, %c0_17] : memref<1x128xf32, #tpu.memory_space<vmem>>, vector<1x128xf32>
    %19 = vector.broadcast %18 : vector<1x128xf32> to vector<8x128xf32>
    %20 = arith.addf %17, %19 : vector<8x128xf32>
    %21 = vector.extract_strided_slice %16 {offsets = [0, 0], sizes = [8, 128], strides = [1, 1]} : vector<200x128xf32> to vector<8x128xf32>
    %22 = arith.truncf %21 : vector<8x128xf32> to vector<8x128xbf16>
    %c0_18 = arith.constant 0 : index
    %c0_19 = arith.constant 0 : index
    %c0_20 = arith.constant 0 : index
    %23 = vector.load %arg7[%c0_18, %c0_19, %c0_20] : memref<25x128x128xbf16, #tpu.memory_space<vmem>>, vector<1x128x128xbf16>
    %24 = vector.shape_cast %23 : vector<1x128x128xbf16> to vector<128x128xbf16>
    %cst_21 = arith.constant dense<0.000000e+00> : vector<8x128xf32>
    %25 = tpu.matmul %22, %24, %cst_21 {dimension_numbers = #tpu.dot_dimension_numbers<[1], [0], [0], [1], [0, 0, 1, 1], [], []>} : vector<8x128xbf16>, vector<128x128xbf16>, vector<8x128xf32> -> vector<8x128xf32>
    %26 = arith.addf %20, %25 : vector<8x128xf32>
    %27 = vector.extract_strided_slice %16 {offsets = [8, 0], sizes = [8, 128], strides = [1, 1]} : vector<200x128xf32> to vector<8x128xf32>
    %28 = arith.truncf %27 : vector<8x128xf32> to vector<8x128xbf16>
    %c1 = arith.constant 1 : index
    %c0_22 = arith.constant 0 : index
    %c0_23 = arith.constant 0 : index
    %29 = vector.load %arg7[%c1, %c0_22, %c0_23] : memref<25x128x128xbf16, #tpu.memory_space<vmem>>, vector<1x128x128xbf16>
    %30 = vector.shape_cast %29 : vector<1x128x128xbf16> to vector<128x128xbf16>
    %cst_24 = arith.constant dense<0.000000e+00> : vector<8x128xf32>
    %31 = tpu.matmul %28, %30, %cst_24 {dimension_numbers = #tpu.dot_dimension_numbers<[1], [0], [0], [1], [0, 0, 1, 1], [], []>} : vector<8x128xbf16>, vector<128x128xbf16>, vector<8x128xf32> -> vector<8x128xf32>
    %32 = arith.addf %26, %31 : vector<8x128xf32>
    %33 = vector.extract_strided_slice %16 {offsets = [16, 0], sizes = [8, 128], strides = [1, 1]} : vector<200x128xf32> to vector<8x128xf32>
    %34 = arith.truncf %33 : vector<8x128xf32> to vector<8x128xbf16>
    %c2 = arith.constant 2 : index
    %c0_25 = arith.constant 0 : index
    %c0_26 = arith.constant 0 : index
    %35 = vector.load %arg7[%c2, %c0_25, %c0_26] : memref<25x128x128xbf16, #tpu.memory_space<vmem>>, vector<1x128x128xbf16>
    %36 = vector.shape_cast %35 : vector<1x128x128xbf16> to vector<128x128xbf16>
    %cst_27 = arith.constant dense<0.000000e+00> : vector<8x128xf32>
    %37 = tpu.matmul %34, %36, %cst_27 {dimension_numbers = #tpu.dot_dimension_numbers<[1], [0], [0], [1], [0, 0, 1, 1], [], []>} : vector<8x128xbf16>, vector<128x128xbf16>, vector<8x128xf32> -> vector<8x128xf32>
    %38 = arith.addf %32, %37 : vector<8x128xf32>
    %39 = vector.extract_strided_slice %16 {offsets = [24, 0], sizes = [8, 128], strides = [1, 1]} : vector<200x128xf32> to vector<8x128xf32>
    %40 = arith.truncf %39 : vector<8x128xf32> to vector<8x128xbf16>
    %c3 = arith.constant 3 : index
    %c0_28 = arith.constant 0 : index
    %c0_29 = arith.constant 0 : index
    %41 = vector.load %arg7[%c3, %c0_28, %c0_29] : memref<25x128x128xbf16, #tpu.memory_space<vmem>>, vector<1x128x128xbf16>
    %42 = vector.shape_cast %41 : vector<1x128x128xbf16> to vector<128x128xbf16>
    %cst_30 = arith.constant dense<0.000000e+00> : vector<8x128xf32>
    %43 = tpu.matmul %40, %42, %cst_30 {dimension_numbers = #tpu.dot_dimension_numbers<[1], [0], [0], [1], [0, 0, 1, 1], [], []>} : vector<8x128xbf16>, vector<128x128xbf16>, vector<8x128xf32> -> vector<8x128xf32>
    %44 = arith.addf %38, %43 : vector<8x128xf32>
    %45 = vector.extract_strided_slice %16 {offsets = [32, 0], sizes = [8, 128], strides = [1, 1]} : vector<200x128xf32> to vector<8x128xf32>
    %46 = arith.truncf %45 : vector<8x128xf32> to vector<8x128xbf16>
    %c4 = arith.constant 4 : index
    %c0_31 = arith.constant 0 : index
    %c0_32 = arith.constant 0 : index
    %47 = vector.load %arg7[%c4, %c0_31, %c0_32] : memref<25x128x128xbf16, #tpu.memory_space<vmem>>, vector<1x128x128xbf16>
    %48 = vector.shape_cast %47 : vector<1x128x128xbf16> to vector<128x128xbf16>
    %cst_33 = arith.constant dense<0.000000e+00> : vector<8x128xf32>
    %49 = tpu.matmul %46, %48, %cst_33 {dimension_numbers = #tpu.dot_dimension_numbers<[1], [0], [0], [1], [0, 0, 1, 1], [], []>} : vector<8x128xbf16>, vector<128x128xbf16>, vector<8x128xf32> -> vector<8x128xf32>
    %50 = arith.addf %44, %49 : vector<8x128xf32>
    %51 = vector.extract_strided_slice %16 {offsets = [40, 0], sizes = [8, 128], strides = [1, 1]} : vector<200x128xf32> to vector<8x128xf32>
    %52 = arith.truncf %51 : vector<8x128xf32> to vector<8x128xbf16>
    %c5 = arith.constant 5 : index
    %c0_34 = arith.constant 0 : index
    %c0_35 = arith.constant 0 : index
    %53 = vector.load %arg7[%c5, %c0_34, %c0_35] : memref<25x128x128xbf16, #tpu.memory_space<vmem>>, vector<1x128x128xbf16>
    %54 = vector.shape_cast %53 : vector<1x128x128xbf16> to vector<128x128xbf16>
    %cst_36 = arith.constant dense<0.000000e+00> : vector<8x128xf32>
    %55 = tpu.matmul %52, %54, %cst_36 {dimension_numbers = #tpu.dot_dimension_numbers<[1], [0], [0], [1], [0, 0, 1, 1], [], []>} : vector<8x128xbf16>, vector<128x128xbf16>, vector<8x128xf32> -> vector<8x128xf32>
    %56 = arith.addf %50, %55 : vector<8x128xf32>
    %57 = vector.extract_strided_slice %16 {offsets = [48, 0], sizes = [8, 128], strides = [1, 1]} : vector<200x128xf32> to vector<8x128xf32>
    %58 = arith.truncf %57 : vector<8x128xf32> to vector<8x128xbf16>
    %c6 = arith.constant 6 : index
    %c0_37 = arith.constant 0 : index
    %c0_38 = arith.constant 0 : index
    %59 = vector.load %arg7[%c6, %c0_37, %c0_38] : memref<25x128x128xbf16, #tpu.memory_space<vmem>>, vector<1x128x128xbf16>
    %60 = vector.shape_cast %59 : vector<1x128x128xbf16> to vector<128x128xbf16>
    %cst_39 = arith.constant dense<0.000000e+00> : vector<8x128xf32>
    %61 = tpu.matmul %58, %60, %cst_39 {dimension_numbers = #tpu.dot_dimension_numbers<[1], [0], [0], [1], [0, 0, 1, 1], [], []>} : vector<8x128xbf16>, vector<128x128xbf16>, vector<8x128xf32> -> vector<8x128xf32>
    %62 = arith.addf %56, %61 : vector<8x128xf32>
    %63 = vector.extract_strided_slice %16 {offsets = [56, 0], sizes = [8, 128], strides = [1, 1]} : vector<200x128xf32> to vector<8x128xf32>
    %64 = arith.truncf %63 : vector<8x128xf32> to vector<8x128xbf16>
    %c7 = arith.constant 7 : index
    %c0_40 = arith.constant 0 : index
    %c0_41 = arith.constant 0 : index
    %65 = vector.load %arg7[%c7, %c0_40, %c0_41] : memref<25x128x128xbf16, #tpu.memory_space<vmem>>, vector<1x128x128xbf16>
    %66 = vector.shape_cast %65 : vector<1x128x128xbf16> to vector<128x128xbf16>
    %cst_42 = arith.constant dense<0.000000e+00> : vector<8x128xf32>
    %67 = tpu.matmul %64, %66, %cst_42 {dimension_numbers = #tpu.dot_dimension_numbers<[1], [0], [0], [1], [0, 0, 1, 1], [], []>} : vector<8x128xbf16>, vector<128x128xbf16>, vector<8x128xf32> -> vector<8x128xf32>
    %68 = arith.addf %62, %67 : vector<8x128xf32>
    %69 = vector.extract_strided_slice %16 {offsets = [64, 0], sizes = [8, 128], strides = [1, 1]} : vector<200x128xf32> to vector<8x128xf32>
    %70 = arith.truncf %69 : vector<8x128xf32> to vector<8x128xbf16>
    %c8 = arith.constant 8 : index
    %c0_43 = arith.constant 0 : index
    %c0_44 = arith.constant 0 : index
    %71 = vector.load %arg7[%c8, %c0_43, %c0_44] : memref<25x128x128xbf16, #tpu.memory_space<vmem>>, vector<1x128x128xbf16>
    %72 = vector.shape_cast %71 : vector<1x128x128xbf16> to vector<128x128xbf16>
    %cst_45 = arith.constant dense<0.000000e+00> : vector<8x128xf32>
    %73 = tpu.matmul %70, %72, %cst_45 {dimension_numbers = #tpu.dot_dimension_numbers<[1], [0], [0], [1], [0, 0, 1, 1], [], []>} : vector<8x128xbf16>, vector<128x128xbf16>, vector<8x128xf32> -> vector<8x128xf32>
    %74 = arith.addf %68, %73 : vector<8x128xf32>
    %75 = vector.extract_strided_slice %16 {offsets = [72, 0], sizes = [8, 128], strides = [1, 1]} : vector<200x128xf32> to vector<8x128xf32>
    %76 = arith.truncf %75 : vector<8x128xf32> to vector<8x128xbf16>
    %c9 = arith.constant 9 : index
    %c0_46 = arith.constant 0 : index
    %c0_47 = arith.constant 0 : index
    %77 = vector.load %arg7[%c9, %c0_46, %c0_47] : memref<25x128x128xbf16, #tpu.memory_space<vmem>>, vector<1x128x128xbf16>
    %78 = vector.shape_cast %77 : vector<1x128x128xbf16> to vector<128x128xbf16>
    %cst_48 = arith.constant dense<0.000000e+00> : vector<8x128xf32>
    %79 = tpu.matmul %76, %78, %cst_48 {dimension_numbers = #tpu.dot_dimension_numbers<[1], [0], [0], [1], [0, 0, 1, 1], [], []>} : vector<8x128xbf16>, vector<128x128xbf16>, vector<8x128xf32> -> vector<8x128xf32>
    %80 = arith.addf %74, %79 : vector<8x128xf32>
    %81 = vector.extract_strided_slice %16 {offsets = [80, 0], sizes = [8, 128], strides = [1, 1]} : vector<200x128xf32> to vector<8x128xf32>
    %82 = arith.truncf %81 : vector<8x128xf32> to vector<8x128xbf16>
    %c10 = arith.constant 10 : index
    %c0_49 = arith.constant 0 : index
    %c0_50 = arith.constant 0 : index
    %83 = vector.load %arg7[%c10, %c0_49, %c0_50] : memref<25x128x128xbf16, #tpu.memory_space<vmem>>, vector<1x128x128xbf16>
    %84 = vector.shape_cast %83 : vector<1x128x128xbf16> to vector<128x128xbf16>
    %cst_51 = arith.constant dense<0.000000e+00> : vector<8x128xf32>
    %85 = tpu.matmul %82, %84, %cst_51 {dimension_numbers = #tpu.dot_dimension_numbers<[1], [0], [0], [1], [0, 0, 1, 1], [], []>} : vector<8x128xbf16>, vector<128x128xbf16>, vector<8x128xf32> -> vector<8x128xf32>
    %86 = arith.addf %80, %85 : vector<8x128xf32>
    %87 = vector.extract_strided_slice %16 {offsets = [88, 0], sizes = [8, 128], strides = [1, 1]} : vector<200x128xf32> to vector<8x128xf32>
    %88 = arith.truncf %87 : vector<8x128xf32> to vector<8x128xbf16>
    %c11 = arith.constant 11 : index
    %c0_52 = arith.constant 0 : index
    %c0_53 = arith.constant 0 : index
    %89 = vector.load %arg7[%c11, %c0_52, %c0_53] : memref<25x128x128xbf16, #tpu.memory_space<vmem>>, vector<1x128x128xbf16>
    %90 = vector.shape_cast %89 : vector<1x128x128xbf16> to vector<128x128xbf16>
    %cst_54 = arith.constant dense<0.000000e+00> : vector<8x128xf32>
    %91 = tpu.matmul %88, %90, %cst_54 {dimension_numbers = #tpu.dot_dimension_numbers<[1], [0], [0], [1], [0, 0, 1, 1], [], []>} : vector<8x128xbf16>, vector<128x128xbf16>, vector<8x128xf32> -> vector<8x128xf32>
    %92 = arith.addf %86, %91 : vector<8x128xf32>
    %93 = vector.extract_strided_slice %16 {offsets = [96, 0], sizes = [8, 128], strides = [1, 1]} : vector<200x128xf32> to vector<8x128xf32>
    %94 = arith.truncf %93 : vector<8x128xf32> to vector<8x128xbf16>
    %c12 = arith.constant 12 : index
    %c0_55 = arith.constant 0 : index
    %c0_56 = arith.constant 0 : index
    %95 = vector.load %arg7[%c12, %c0_55, %c0_56] : memref<25x128x128xbf16, #tpu.memory_space<vmem>>, vector<1x128x128xbf16>
    %96 = vector.shape_cast %95 : vector<1x128x128xbf16> to vector<128x128xbf16>
    %cst_57 = arith.constant dense<0.000000e+00> : vector<8x128xf32>
    %97 = tpu.matmul %94, %96, %cst_57 {dimension_numbers = #tpu.dot_dimension_numbers<[1], [0], [0], [1], [0, 0, 1, 1], [], []>} : vector<8x128xbf16>, vector<128x128xbf16>, vector<8x128xf32> -> vector<8x128xf32>
    %98 = arith.addf %92, %97 : vector<8x128xf32>
    %99 = vector.extract_strided_slice %16 {offsets = [104, 0], sizes = [8, 128], strides = [1, 1]} : vector<200x128xf32> to vector<8x128xf32>
    %100 = arith.truncf %99 : vector<8x128xf32> to vector<8x128xbf16>
    %c13 = arith.constant 13 : index
    %c0_58 = arith.constant 0 : index
    %c0_59 = arith.constant 0 : index
    %101 = vector.load %arg7[%c13, %c0_58, %c0_59] : memref<25x128x128xbf16, #tpu.memory_space<vmem>>, vector<1x128x128xbf16>
    %102 = vector.shape_cast %101 : vector<1x128x128xbf16> to vector<128x128xbf16>
    %cst_60 = arith.constant dense<0.000000e+00> : vector<8x128xf32>
    %103 = tpu.matmul %100, %102, %cst_60 {dimension_numbers = #tpu.dot_dimension_numbers<[1], [0], [0], [1], [0, 0, 1, 1], [], []>} : vector<8x128xbf16>, vector<128x128xbf16>, vector<8x128xf32> -> vector<8x128xf32>
    %104 = arith.addf %98, %103 : vector<8x128xf32>
    %105 = vector.extract_strided_slice %16 {offsets = [112, 0], sizes = [8, 128], strides = [1, 1]} : vector<200x128xf32> to vector<8x128xf32>
    %106 = arith.truncf %105 : vector<8x128xf32> to vector<8x128xbf16>
    %c14 = arith.constant 14 : index
    %c0_61 = arith.constant 0 : index
    %c0_62 = arith.constant 0 : index
    %107 = vector.load %arg7[%c14, %c0_61, %c0_62] : memref<25x128x128xbf16, #tpu.memory_space<vmem>>, vector<1x128x128xbf16>
    %108 = vector.shape_cast %107 : vector<1x128x128xbf16> to vector<128x128xbf16>
    %cst_63 = arith.constant dense<0.000000e+00> : vector<8x128xf32>
    %109 = tpu.matmul %106, %108, %cst_63 {dimension_numbers = #tpu.dot_dimension_numbers<[1], [0], [0], [1], [0, 0, 1, 1], [], []>} : vector<8x128xbf16>, vector<128x128xbf16>, vector<8x128xf32> -> vector<8x128xf32>
    %110 = arith.addf %104, %109 : vector<8x128xf32>
    %111 = vector.extract_strided_slice %16 {offsets = [120, 0], sizes = [8, 128], strides = [1, 1]} : vector<200x128xf32> to vector<8x128xf32>
    %112 = arith.truncf %111 : vector<8x128xf32> to vector<8x128xbf16>
    %c15 = arith.constant 15 : index
    %c0_64 = arith.constant 0 : index
    %c0_65 = arith.constant 0 : index
    %113 = vector.load %arg7[%c15, %c0_64, %c0_65] : memref<25x128x128xbf16, #tpu.memory_space<vmem>>, vector<1x128x128xbf16>
    %114 = vector.shape_cast %113 : vector<1x128x128xbf16> to vector<128x128xbf16>
    %cst_66 = arith.constant dense<0.000000e+00> : vector<8x128xf32>
    %115 = tpu.matmul %112, %114, %cst_66 {dimension_numbers = #tpu.dot_dimension_numbers<[1], [0], [0], [1], [0, 0, 1, 1], [], []>} : vector<8x128xbf16>, vector<128x128xbf16>, vector<8x128xf32> -> vector<8x128xf32>
    %116 = arith.addf %110, %115 : vector<8x128xf32>
    %117 = vector.extract_strided_slice %16 {offsets = [128, 0], sizes = [8, 128], strides = [1, 1]} : vector<200x128xf32> to vector<8x128xf32>
    %118 = arith.truncf %117 : vector<8x128xf32> to vector<8x128xbf16>
    %c16 = arith.constant 16 : index
    %c0_67 = arith.constant 0 : index
    %c0_68 = arith.constant 0 : index
    %119 = vector.load %arg7[%c16, %c0_67, %c0_68] : memref<25x128x128xbf16, #tpu.memory_space<vmem>>, vector<1x128x128xbf16>
    %120 = vector.shape_cast %119 : vector<1x128x128xbf16> to vector<128x128xbf16>
    %cst_69 = arith.constant dense<0.000000e+00> : vector<8x128xf32>
    %121 = tpu.matmul %118, %120, %cst_69 {dimension_numbers = #tpu.dot_dimension_numbers<[1], [0], [0], [1], [0, 0, 1, 1], [], []>} : vector<8x128xbf16>, vector<128x128xbf16>, vector<8x128xf32> -> vector<8x128xf32>
    %122 = arith.addf %116, %121 : vector<8x128xf32>
    %123 = vector.extract_strided_slice %16 {offsets = [136, 0], sizes = [8, 128], strides = [1, 1]} : vector<200x128xf32> to vector<8x128xf32>
    %124 = arith.truncf %123 : vector<8x128xf32> to vector<8x128xbf16>
    %c17 = arith.constant 17 : index
    %c0_70 = arith.constant 0 : index
    %c0_71 = arith.constant 0 : index
    %125 = vector.load %arg7[%c17, %c0_70, %c0_71] : memref<25x128x128xbf16, #tpu.memory_space<vmem>>, vector<1x128x128xbf16>
    %126 = vector.shape_cast %125 : vector<1x128x128xbf16> to vector<128x128xbf16>
    %cst_72 = arith.constant dense<0.000000e+00> : vector<8x128xf32>
    %127 = tpu.matmul %124, %126, %cst_72 {dimension_numbers = #tpu.dot_dimension_numbers<[1], [0], [0], [1], [0, 0, 1, 1], [], []>} : vector<8x128xbf16>, vector<128x128xbf16>, vector<8x128xf32> -> vector<8x128xf32>
    %128 = arith.addf %122, %127 : vector<8x128xf32>
    %129 = vector.extract_strided_slice %16 {offsets = [144, 0], sizes = [8, 128], strides = [1, 1]} : vector<200x128xf32> to vector<8x128xf32>
    %130 = arith.truncf %129 : vector<8x128xf32> to vector<8x128xbf16>
    %c18 = arith.constant 18 : index
    %c0_73 = arith.constant 0 : index
    %c0_74 = arith.constant 0 : index
    %131 = vector.load %arg7[%c18, %c0_73, %c0_74] : memref<25x128x128xbf16, #tpu.memory_space<vmem>>, vector<1x128x128xbf16>
    %132 = vector.shape_cast %131 : vector<1x128x128xbf16> to vector<128x128xbf16>
    %cst_75 = arith.constant dense<0.000000e+00> : vector<8x128xf32>
    %133 = tpu.matmul %130, %132, %cst_75 {dimension_numbers = #tpu.dot_dimension_numbers<[1], [0], [0], [1], [0, 0, 1, 1], [], []>} : vector<8x128xbf16>, vector<128x128xbf16>, vector<8x128xf32> -> vector<8x128xf32>
    %134 = arith.addf %128, %133 : vector<8x128xf32>
    %135 = vector.extract_strided_slice %16 {offsets = [152, 0], sizes = [8, 128], strides = [1, 1]} : vector<200x128xf32> to vector<8x128xf32>
    %136 = arith.truncf %135 : vector<8x128xf32> to vector<8x128xbf16>
    %c19 = arith.constant 19 : index
    %c0_76 = arith.constant 0 : index
    %c0_77 = arith.constant 0 : index
    %137 = vector.load %arg7[%c19, %c0_76, %c0_77] : memref<25x128x128xbf16, #tpu.memory_space<vmem>>, vector<1x128x128xbf16>
    %138 = vector.shape_cast %137 : vector<1x128x128xbf16> to vector<128x128xbf16>
    %cst_78 = arith.constant dense<0.000000e+00> : vector<8x128xf32>
    %139 = tpu.matmul %136, %138, %cst_78 {dimension_numbers = #tpu.dot_dimension_numbers<[1], [0], [0], [1], [0, 0, 1, 1], [], []>} : vector<8x128xbf16>, vector<128x128xbf16>, vector<8x128xf32> -> vector<8x128xf32>
    %140 = arith.addf %134, %139 : vector<8x128xf32>
    %141 = vector.extract_strided_slice %16 {offsets = [160, 0], sizes = [8, 128], strides = [1, 1]} : vector<200x128xf32> to vector<8x128xf32>
    %142 = arith.truncf %141 : vector<8x128xf32> to vector<8x128xbf16>
    %c20 = arith.constant 20 : index
    %c0_79 = arith.constant 0 : index
    %c0_80 = arith.constant 0 : index
    %143 = vector.load %arg7[%c20, %c0_79, %c0_80] : memref<25x128x128xbf16, #tpu.memory_space<vmem>>, vector<1x128x128xbf16>
    %144 = vector.shape_cast %143 : vector<1x128x128xbf16> to vector<128x128xbf16>
    %cst_81 = arith.constant dense<0.000000e+00> : vector<8x128xf32>
    %145 = tpu.matmul %142, %144, %cst_81 {dimension_numbers = #tpu.dot_dimension_numbers<[1], [0], [0], [1], [0, 0, 1, 1], [], []>} : vector<8x128xbf16>, vector<128x128xbf16>, vector<8x128xf32> -> vector<8x128xf32>
    %146 = arith.addf %140, %145 : vector<8x128xf32>
    %147 = vector.extract_strided_slice %16 {offsets = [168, 0], sizes = [8, 128], strides = [1, 1]} : vector<200x128xf32> to vector<8x128xf32>
    %148 = arith.truncf %147 : vector<8x128xf32> to vector<8x128xbf16>
    %c21 = arith.constant 21 : index
    %c0_82 = arith.constant 0 : index
    %c0_83 = arith.constant 0 : index
    %149 = vector.load %arg7[%c21, %c0_82, %c0_83] : memref<25x128x128xbf16, #tpu.memory_space<vmem>>, vector<1x128x128xbf16>
    %150 = vector.shape_cast %149 : vector<1x128x128xbf16> to vector<128x128xbf16>
    %cst_84 = arith.constant dense<0.000000e+00> : vector<8x128xf32>
    %151 = tpu.matmul %148, %150, %cst_84 {dimension_numbers = #tpu.dot_dimension_numbers<[1], [0], [0], [1], [0, 0, 1, 1], [], []>} : vector<8x128xbf16>, vector<128x128xbf16>, vector<8x128xf32> -> vector<8x128xf32>
    %152 = arith.addf %146, %151 : vector<8x128xf32>
    %153 = vector.extract_strided_slice %16 {offsets = [176, 0], sizes = [8, 128], strides = [1, 1]} : vector<200x128xf32> to vector<8x128xf32>
    %154 = arith.truncf %153 : vector<8x128xf32> to vector<8x128xbf16>
    %c22 = arith.constant 22 : index
    %c0_85 = arith.constant 0 : index
    %c0_86 = arith.constant 0 : index
    %155 = vector.load %arg7[%c22, %c0_85, %c0_86] : memref<25x128x128xbf16, #tpu.memory_space<vmem>>, vector<1x128x128xbf16>
    %156 = vector.shape_cast %155 : vector<1x128x128xbf16> to vector<128x128xbf16>
    %cst_87 = arith.constant dense<0.000000e+00> : vector<8x128xf32>
    %157 = tpu.matmul %154, %156, %cst_87 {dimension_numbers = #tpu.dot_dimension_numbers<[1], [0], [0], [1], [0, 0, 1, 1], [], []>} : vector<8x128xbf16>, vector<128x128xbf16>, vector<8x128xf32> -> vector<8x128xf32>
    %158 = arith.addf %152, %157 : vector<8x128xf32>
    %159 = vector.extract_strided_slice %16 {offsets = [184, 0], sizes = [8, 128], strides = [1, 1]} : vector<200x128xf32> to vector<8x128xf32>
    %160 = arith.truncf %159 : vector<8x128xf32> to vector<8x128xbf16>
    %c23 = arith.constant 23 : index
    %c0_88 = arith.constant 0 : index
    %c0_89 = arith.constant 0 : index
    %161 = vector.load %arg7[%c23, %c0_88, %c0_89] : memref<25x128x128xbf16, #tpu.memory_space<vmem>>, vector<1x128x128xbf16>
    %162 = vector.shape_cast %161 : vector<1x128x128xbf16> to vector<128x128xbf16>
    %cst_90 = arith.constant dense<0.000000e+00> : vector<8x128xf32>
    %163 = tpu.matmul %160, %162, %cst_90 {dimension_numbers = #tpu.dot_dimension_numbers<[1], [0], [0], [1], [0, 0, 1, 1], [], []>} : vector<8x128xbf16>, vector<128x128xbf16>, vector<8x128xf32> -> vector<8x128xf32>
    %164 = arith.addf %158, %163 : vector<8x128xf32>
    %165 = vector.extract_strided_slice %16 {offsets = [192, 0], sizes = [8, 128], strides = [1, 1]} : vector<200x128xf32> to vector<8x128xf32>
    %166 = arith.truncf %165 : vector<8x128xf32> to vector<8x128xbf16>
    %c24 = arith.constant 24 : index
    %c0_91 = arith.constant 0 : index
    %c0_92 = arith.constant 0 : index
    %167 = vector.load %arg7[%c24, %c0_91, %c0_92] : memref<25x128x128xbf16, #tpu.memory_space<vmem>>, vector<1x128x128xbf16>
    %168 = vector.shape_cast %167 : vector<1x128x128xbf16> to vector<128x128xbf16>
    %cst_93 = arith.constant dense<0.000000e+00> : vector<8x128xf32>
    %169 = tpu.matmul %166, %168, %cst_93 {dimension_numbers = #tpu.dot_dimension_numbers<[1], [0], [0], [1], [0, 0, 1, 1], [], []>} : vector<8x128xbf16>, vector<128x128xbf16>, vector<8x128xf32> -> vector<8x128xf32>
    %170 = arith.addf %164, %169 : vector<8x128xf32>
    %cst_94 = arith.constant 0.000000e+00 : f32
    %171 = vector.broadcast %cst_94 : f32 to vector<8x128xf32>
    %172 = arith.maximumf %170, %171 : vector<8x128xf32>
    %173 = arith.truncf %172 : vector<8x128xf32> to vector<8x128xbf16>
    %c0_95 = arith.constant 0 : index
    %c0_96 = arith.constant 0 : index
    %174 = vector.load %arg9[%c0_95, %c0_96] : memref<128x128xbf16, #tpu.memory_space<vmem>>, vector<128x128xbf16>
    %cst_97 = arith.constant dense<0.000000e+00> : vector<8x128xf32>
    %175 = tpu.matmul %173, %174, %cst_97 {dimension_numbers = #tpu.dot_dimension_numbers<[1], [0], [0], [1], [0, 0, 1, 1], [], []>} : vector<8x128xbf16>, vector<128x128xbf16>, vector<8x128xf32> -> vector<8x128xf32>
    %c0_98 = arith.constant 0 : index
    %c0_99 = arith.constant 0 : index
    %176 = vector.load %arg10[%c0_98, %c0_99] : memref<1x128xf32, #tpu.memory_space<vmem>>, vector<1x128xf32>
    %177 = vector.broadcast %176 : vector<1x128xf32> to vector<8x128xf32>
    %178 = arith.addf %175, %177 : vector<8x128xf32>
    %cst_100 = arith.constant 0.000000e+00 : f32
    %179 = vector.broadcast %cst_100 : f32 to vector<8x128xf32>
    %180 = arith.maximumf %178, %179 : vector<8x128xf32>
    %181 = arith.truncf %180 : vector<8x128xf32> to vector<8x128xbf16>
    %c0_101 = arith.constant 0 : index
    %c0_102 = arith.constant 0 : index
    %182 = vector.load %arg11[%c0_101, %c0_102] : memref<128x128xbf16, #tpu.memory_space<vmem>>, vector<128x128xbf16>
    %cst_103 = arith.constant dense<0.000000e+00> : vector<8x128xf32>
    %183 = tpu.matmul %181, %182, %cst_103 {dimension_numbers = #tpu.dot_dimension_numbers<[1], [0], [0], [1], [0, 0, 1, 1], [], []>} : vector<8x128xbf16>, vector<128x128xbf16>, vector<8x128xf32> -> vector<8x128xf32>
    %c0_104 = arith.constant 0 : index
    %c0_105 = arith.constant 0 : index
    %184 = vector.load %arg12[%c0_104, %c0_105] : memref<1x128xf32, #tpu.memory_space<vmem>>, vector<1x128xf32>
    %185 = vector.broadcast %184 : vector<1x128xf32> to vector<8x128xf32>
    %186 = arith.addf %183, %185 : vector<8x128xf32>
    %c0_106 = arith.constant 0 : index
    %c0_107 = arith.constant 0 : index
    %187 = vector.load %arg13[%c0_106, %c0_107] : memref<8x128xf32, #tpu.memory_space<vmem>>, vector<8x128xf32>
    tpu.vector_store %arg13[%c0_106, %c0_107], %186 {strides = array<i32>} : memref<8x128xf32, #tpu.memory_space<vmem>>, vector<8x128xf32>,
    return
  }
  func.func @transform_0(%arg0: i32) -> (i32, i32) {
    %c0_i32 = arith.constant 0 : i32
    %c0_i32_0 = arith.constant 0 : i32
    %c0_i32_1 = arith.constant 0 : i32
    return %c0_i32, %c0_i32_0 : i32, i32
  }
  func.func @transform_1(%arg0: i32) -> (i32, i32) {
    %c0_i32 = arith.constant 0 : i32
    %c0_i32_0 = arith.constant 0 : i32
    %c0_i32_1 = arith.constant 0 : i32
    return %c0_i32, %c0_i32_0 : i32, i32
  }
  func.func @transform_2(%arg0: i32) -> (i32, i32) {
    %c0_i32 = arith.constant 0 : i32
    %c0_i32_0 = arith.constant 0 : i32
    %c0_i32_1 = arith.constant 0 : i32
    return %c0_i32, %c0_i32_0 : i32, i32
  }
  func.func @transform_3(%arg0: i32) -> (i32, i32) {
    %c0_i32 = arith.constant 0 : i32
    %c0_i32_0 = arith.constant 0 : i32
    %c0_i32_1 = arith.constant 0 : i32
    return %c0_i32, %c0_i32_0 : i32, i32
  }
  func.func @transform_4(%arg0: i32) -> (i32, i32) {
    %c0_i32 = arith.constant 0 : i32
    %c0_i32_0 = arith.constant 0 : i32
    %c0_i32_1 = arith.constant 0 : i32
    return %c0_i32, %c0_i32_0 : i32, i32
  }
  func.func @transform_5(%arg0: i32) -> (i32, i32) {
    %c0_i32 = arith.constant 0 : i32
    %c0_i32_0 = arith.constant 0 : i32
    %c0_i32_1 = arith.constant 0 : i32
    return %c0_i32, %c0_i32_0 : i32, i32
  }
  func.func @transform_6(%arg0: i32) -> (i32, i32, i32) {
    %c0_i32 = arith.constant 0 : i32
    %c0_i32_0 = arith.constant 0 : i32
    %c0_i32_1 = arith.constant 0 : i32
    %c0_i32_2 = arith.constant 0 : i32
    return %c0_i32, %c0_i32_0, %c0_i32_1 : i32, i32, i32
  }
  func.func @transform_7(%arg0: i32) -> (i32, i32) {
    %c0_i32 = arith.constant 0 : i32
    %c0_i32_0 = arith.constant 0 : i32
    %c0_i32_1 = arith.constant 0 : i32
    return %c0_i32, %c0_i32_0 : i32, i32
  }
  func.func @transform_8(%arg0: i32) -> (i32, i32) {
    %c0_i32 = arith.constant 0 : i32
    %c0_i32_0 = arith.constant 0 : i32
    %c0_i32_1 = arith.constant 0 : i32
    return %c0_i32, %c0_i32_0 : i32, i32
  }
  func.func @transform_9(%arg0: i32) -> (i32, i32) {
    %c0_i32 = arith.constant 0 : i32
    %c0_i32_0 = arith.constant 0 : i32
    %c0_i32_1 = arith.constant 0 : i32
    return %c0_i32, %c0_i32_0 : i32, i32
  }
  func.func @transform_10(%arg0: i32) -> (i32, i32) {
    %c0_i32 = arith.constant 0 : i32
    %c0_i32_0 = arith.constant 0 : i32
    %c0_i32_1 = arith.constant 0 : i32
    return %c0_i32, %c0_i32_0 : i32, i32
  }
  func.func @transform_11(%arg0: i32) -> (i32, i32) {
    %c0_i32 = arith.constant 0 : i32
    %c0_i32_0 = arith.constant 0 : i32
    %c0_i32_1 = arith.constant 0 : i32
    return %c0_i32, %c0_i32_0 : i32, i32
  }
  func.func @transform_12(%arg0: i32) -> (i32, i32) {
    %c0_i32 = arith.constant 0 : i32
    %c0_i32_0 = arith.constant 0 : i32
    %c0_i32_1 = arith.constant 0 : i32
    return %c0_i32, %c0_i32_0 : i32, i32
  }
}

</mosaic_0001>

<bundles_post_ra>
// kernel: net_forward.2
= control target key start
LH: loop header
LB: loop body
LE: loop exit
PB: predicated region body
PF: predicated region fallthrough
CT: control target
= control target key end

     0   :  { %s2499_s21 = smov 0   ;;  %s2968_s0 = inlined_call_operand.vmem [shape: bf16[1568,75], index: 0, kind: input, shape index: {}]   ;;  %s2969_s1 = inlined_call_operand.vmem [shape: bf16[1568,75], index: 1, kind: input, shape index: {}]   ;;  %s2970_s2 = inlined_call_operand.vmem [shape: bf16[1568,75], index: 2, kind: input, shape index: {}]   ;;  %s2971_s3 = inlined_call_operand.vmem [shape: bf16[1568,75], index: 3, kind: input, shape index: {}]   ;;  %s2972_s4 = inlined_call_operand.vmem [shape: bf16[75,128], index: 4, kind: input, shape index: {}]   ;;  %s2973_s5 = inlined_call_operand.vmem [shape: f32[1,128], index: 5, kind: input, shape index: {}]   ;;  %s2974_s6 = inlined_call_operand.vmem [shape: bf16[1568,128], index: 6, kind: output, shape index: {}]  }
   0x1 LB: > { %s1888_s22 = sadd.s32 4294967295, %s2461_s21   ;;  %p1892_p0 = scmp.ge.s32.totalorder %s2461_s21, 1  ;;  %s2461_s21 = sphi %s2499_s21, %s16_s21  }
   0x2   : > { %p246_p1 = scmp.lt.s32.totalorder %s2461_s21, 8 }
   0x4   : > { %p247_p2 = pnand %p1892_p0, %p246_p1 }
   0x6   : > { %250 = sbr.rel (%p247_p2) target bundleno = 364 (0x16c), region = 44 }
   0xd   : > { %v2394_v0 = vld [vmem:[%s2972_s4] sm:$0xff]   ;;  %v2395_v1 = vld [vmem:[%s2972_s4 + $0x8] sm:$0xff]   ;;  %vm502_vm0 = vcmask 1044480   ;;  %v2396_v2 = vld [vmem:[%s2972_s4 + $0x10] sm:$0xff]   ;;  %s291_s29 = smul.u32 28, %s1888_s22  ;;  %vm503_vm1 = vcmask 1045504  }
   0xe   : > { %2233 = vmatprep.subr.bf16.mxu0 %v2394_v0  ;;  %2271 = vmatprep.subr.bf16.mxu1 %v2394_v0  ;;  %v2463_v3 = vmov 65535   ;;  %v2397_v5 = vld [vmem:[%s2972_s4 + $0x18] sm:$0xff]   ;;  %v2398_v6 = vld [vmem:[%s2972_s4 + $0x20] sm:$0x3f]   ;;  %vm459_vm2 = vcmask 613376  }
   0xf   : > { %2234 = vmatpush3.bf16.msra.mxu0 %v2394_v0  ;;  %2272 = vmatpush3.bf16.msra.mxu1 %v2394_v0  ;;  %v504_v4 = vsel %vm502_vm0, 4294967295, %v2463_v3  ;;  %p292_p3 = scmp.lt.s32.totalorder %s291_s29, 195 }
  0x10   : > { %2235 = vmatprep.subr.bf16.mxu0 %v2395_v1  ;;  %2273 = vmatprep.subr.bf16.mxu1 %v2395_v1  ;;  %v505_v7 = vsel %vm503_vm1, %v504_v4, 0 }
  0x11   : > { %s3030_s29 = smov (!%p292_p3, %s291_s29), 195  ;;  %v507_v8 = vand.u32 %v2398_v6, %v505_v7 }
  0x12   : > { %s2522_s10 = sshll.u32 %s3030_s29, 2 }
  0x13   : > { %2236 = vmatpush3.bf16.msra.mxu0 %v2395_v1  ;;  %2274 = vmatpush3.bf16.msra.mxu1 %v2395_v1  ;;  %s2528_s13 = scalar_lea.vmem %s2968_s0, %s2522_s10  ;;  %s2534_s16 = scalar_lea.vmem %s2969_s1, %s2522_s10 }
  0x14   : > { %2237 = vmatprep.subr.bf16.mxu0 %v2396_v2  ;;  %2275 = vmatprep.subr.bf16.mxu1 %v2396_v2  ;;  %v2399_v9 = vld [vmem:[%s2528_s13] sm:$0xff]   ;;  %v2401_v11 = vld [vmem:[%s2528_s13 + $0x8] sm:$0xff]   ;;  %v2403_v13 = vld [vmem:[%s2528_s13 + $0x10] sm:$0xff]   ;;  %s2569_s19 = scalar_lea.vmem %s2970_s2, %s2522_s10  ;;  %s2576_s23 = scalar_lea.vmem %s2971_s3, %s2522_s10 }
  0x15   : > { %v2400_v10 = vld [vmem:[%s2534_s16] sm:$0xff]   ;;  %2243 = vmatprep.mubr.msk.bf16.mxu0 %vm459_vm2, %v2399_v9  ;;  %v2402_v12 = vld [vmem:[%s2534_s16 + $0x8] sm:$0xff]   ;;  %v2404_v14 = vld [vmem:[%s2534_s16 + $0x10] sm:$0xff]   ;;  %s2856_s28 = scalar_lea.vmem %s2974_s6, %s2522_s10 }
  0x16   : > { %2281 = vmatprep.mubr.msk.bf16.mxu1 %vm459_vm2, %v2400_v10  ;;  %v2405_v15 = vld [vmem:[%s2528_s13 + $0x18] sm:$0xff]   ;;  %v2407_v17 = vld [vmem:[%s2528_s13 + $0x20] sm:$0xff]   ;;  %v2409_v19 = vld [vmem:[%s2528_s13 + $0x28] sm:$0xff]  }
  0x17   : > { %2238 = vmatpush3.bf16.msra.mxu0 %v2396_v2  ;;  %2276 = vmatpush3.bf16.msra.mxu1 %v2396_v2  ;;  %v2406_v16 = vld [vmem:[%s2534_s16 + $0x18] sm:$0xff]   ;;  %v2408_v18 = vld [vmem:[%s2534_s16 + $0x20] sm:$0xff]   ;;  %v2410_v20 = vld [vmem:[%s2534_s16 + $0x28] sm:$0xff]  }
  0x18   : > { %2239 = vmatprep.subr.bf16.mxu0 %v2397_v5  ;;  %2277 = vmatprep.subr.bf16.mxu1 %v2397_v5  ;;  %v2411_v21 = vld [vmem:[%s2528_s13 + $0x30] sm:$0xff]   ;;  %v2413_v23 = vld [vmem:[%s2528_s13 + $0x38] sm:$0xff]   ;;  %v2415_v25 = vld [vmem:[%s2528_s13 + $0x40] sm:$0xff]  }
  0x19   : > { %v2412_v22 = vld [vmem:[%s2534_s16 + $0x30] sm:$0xff]   ;;  %v2414_v24 = vld [vmem:[%s2534_s16 + $0x38] sm:$0xff]   ;;  %v2416_v26 = vld [vmem:[%s2534_s16 + $0x40] sm:$0xff]  }
  0x1a   : > { %v2417_v27 = vld [vmem:[%s2528_s13 + $0x48] sm:$0xff]   ;;  %v2419_v29 = vld [vmem:[%s2528_s13 + $0x50] sm:$0xff]   ;;  %v2421_v31 = vld [vmem:[%s2528_s13 + $0x58] sm:$0xff]  }
  0x1b   : > { %2240 = vmatpush3.bf16.msra.mxu0 %v2397_v5  ;;  %2278 = vmatpush3.bf16.msra.mxu1 %v2397_v5  ;;  %v2418_v28 = vld [vmem:[%s2534_s16 + $0x48] sm:$0xff]   ;;  %v2420_v30 = vld [vmem:[%s2534_s16 + $0x50] sm:$0xff]   ;;  %v2422_v32 = vld [vmem:[%s2534_s16 + $0x58] sm:$0xff]  }
  0x1c   : > { %2241 = vmatprep.subr.bf16.mxu0 %v507_v8  ;;  %2279 = vmatprep.subr.bf16.mxu1 %v507_v8  ;;  %v2423_v33 = vld [vmem:[%s2528_s13 + $0x60] sm:$0xff]   ;;  %v2425_v35 = vld [vmem:[%s2528_s13 + $0x68] sm:$0xff]   ;;  %v2431_v41 = vld [vmem:[%s2569_s19 + $0x10] sm:$0xff]  }
  0x1d   : > { %v2424_v34 = vld [vmem:[%s2534_s16 + $0x60] sm:$0xff]   ;;  %v2426_v36 = vld [vmem:[%s2534_s16 + $0x68] sm:$0xff]   ;;  %v2432_v42 = vld [vmem:[%s2576_s23 + $0x10] sm:$0xff]  }
  0x1e   : > { %v2427_v37 = vld [vmem:[%s2569_s19] sm:$0xff]   ;;  %v2429_v39 = vld [vmem:[%s2569_s19 + $0x8] sm:$0xff]   ;;  %v2433_v43 = vld [vmem:[%s2569_s19 + $0x18] sm:$0xff]  }
  0x1f   : > { %2242 = vmatpush3.bf16.msra.mxu0 %v507_v8  ;;  %2280 = vmatpush3.bf16.msra.mxu1 %v507_v8  ;;  %v2428_v38 = vld [vmem:[%s2576_s23] sm:$0xff]   ;;  %v2430_v40 = vld [vmem:[%s2576_s23 + $0x8] sm:$0xff]   ;;  %v2434_v44 = vld [vmem:[%s2576_s23 + $0x18] sm:$0xff]  }
  0x20   : > { %2309 = vmatprep.subr.bf16.mxu0 %v2394_v0  ;;  %2347 = vmatprep.subr.bf16.mxu1 %v2394_v0  ;;  %v2435_v45 = vld [vmem:[%s2569_s19 + $0x20] sm:$0xff]   ;;  %v2437_v47 = vld [vmem:[%s2569_s19 + $0x28] sm:$0xff]   ;;  %v2439_v49 = vld [vmem:[%s2569_s19 + $0x30] sm:$0xff]  }
  0x21   : > { %v2436_v46 = vld [vmem:[%s2576_s23 + $0x20] sm:$0xff]   ;;  %v2438_v48 = vld [vmem:[%s2576_s23 + $0x28] sm:$0xff]   ;;  %v2440_v50 = vld [vmem:[%s2576_s23 + $0x30] sm:$0xff]  }
  0x22   : > { %2244 = vmatmul.mubr.msk.bf16.vlgmr.msra.gmra.mrb[0].mxu0 %vm459_vm2, %v2401_v11  ;;  %2282 = vmatmul.mubr.msk.bf16.vlgmr.msra.gmra.mrb[0].mxu1 %vm459_vm2, %v2402_v12  ;;  %v2441_v51 = vld [vmem:[%s2569_s19 + $0x38] sm:$0xff]   ;;  %v2443_v53 = vld [vmem:[%s2569_s19 + $0x40] sm:$0xff]   ;;  %v2445_v55 = vld [vmem:[%s2569_s19 + $0x48] sm:$0xff]  }
  0x23   : > { %2310 = vmatpush3.bf16.msra.mxu0 %v2394_v0  ;;  %2348 = vmatpush3.bf16.msra.mxu1 %v2394_v0  ;;  %v2442_v52 = vld [vmem:[%s2576_s23 + $0x38] sm:$0xff]   ;;  %v2444_v54 = vld [vmem:[%s2576_s23 + $0x40] sm:$0xff]   ;;  %v2446_v56 = vld [vmem:[%s2576_s23 + $0x48] sm:$0xff]  }
  0x24   : > { %2247 = vmatprep.mubr.msk.bf16.mxu0 %vm459_vm2, %v2403_v13  ;;  %2285 = vmatprep.mubr.msk.bf16.mxu1 %vm459_vm2, %v2404_v14  ;;  %v2447_v57 = vld [vmem:[%s2569_s19 + $0x50] sm:$0xff]   ;;  %v2449_v59 = vld [vmem:[%s2569_s19 + $0x58] sm:$0xff]   ;;  %v2451_v61 = vld [vmem:[%s2569_s19 + $0x60] sm:$0xff]  }
  0x25   : > { %2311 = vmatprep.subr.bf16.mxu0 %v2395_v1  ;;  %2349 = vmatprep.subr.bf16.mxu1 %v2395_v1  ;;  %v2448_v58 = vld [vmem:[%s2576_s23 + $0x50] sm:$0xff]   ;;  %v2450_v60 = vld [vmem:[%s2576_s23 + $0x58] sm:$0xff]   ;;  %v2452_v62 = vld [vmem:[%s2576_s23 + $0x60] sm:$0xff]  }
  0x26   : > { %v2453_v63 = vld [vmem:[%s2569_s19 + $0x68] sm:$0xff]  }
  0x27   : > { %2312 = vmatpush3.bf16.msra.mxu0 %v2395_v1  ;;  %2350 = vmatpush3.bf16.msra.mxu1 %v2395_v1  ;;  %v2454_v0 = vld [vmem:[%s2576_s23 + $0x68] sm:$0xff]  }
  0x28   : > { %2313 = vmatprep.subr.bf16.mxu0 %v2396_v2  ;;  %2351 = vmatprep.subr.bf16.mxu1 %v2396_v2 }
  0x2a   : > { %2248 = vmatmul.mubr.msk.bf16.gmra.mrb[4].mxu0 %vm459_vm2, %v2405_v15  ;;  %2286 = vmatmul.mubr.msk.bf16.gmra.mrb[4].mxu1 %vm459_vm2, %v2406_v16 }
  0x2b   : > { %2251 = vmatprep.mubr.msk.bf16.mxu0 %vm459_vm2, %v2407_v17  ;;  %2289 = vmatprep.mubr.msk.bf16.mxu1 %vm459_vm2, %v2408_v18 }
  0x2c   : > { %2314 = vmatpush3.bf16.msra.mxu0 %v2396_v2  ;;  %2352 = vmatpush3.bf16.msra.mxu1 %v2396_v2 }
  0x2d   : > { %2315 = vmatprep.subr.bf16.mxu0 %v2397_v5  ;;  %2353 = vmatprep.subr.bf16.mxu1 %v2397_v5 }
  0x30   : > { %2316 = vmatpush3.bf16.msra.mxu0 %v2397_v5  ;;  %2354 = vmatpush3.bf16.msra.mxu1 %v2397_v5 }
  0x31   : > { %2317 = vmatprep.subr.bf16.mxu0 %v507_v8  ;;  %2355 = vmatprep.subr.bf16.mxu1 %v507_v8 }
  0x32   : > { %2252 = vmatmul.mubr.msk.bf16.gmra.mrb[8].mxu0 %vm459_vm2, %v2409_v19  ;;  %2290 = vmatmul.mubr.msk.bf16.gmra.mrb[8].mxu1 %vm459_vm2, %v2410_v20 }
  0x33   : > { %2255 = vmatprep.mubr.msk.bf16.mxu0 %vm459_vm2, %v2411_v21  ;;  %2293 = vmatprep.mubr.msk.bf16.mxu1 %vm459_vm2, %v2412_v22 }
  0x34   : > { %2318 = vmatpush3.bf16.msra.mxu0 %v507_v8  ;;  %2356 = vmatpush3.bf16.msra.mxu1 %v507_v8 }
  0x3a   : > { %2256 = vmatmul.mubr.msk.bf16.gmra.mrb[12].mxu0 %vm459_vm2, %v2413_v23  ;;  %2294 = vmatmul.mubr.msk.bf16.gmra.mrb[12].mxu1 %vm459_vm2, %v2414_v24 }
  0x3b   : > { %2259 = vmatprep.mubr.msk.bf16.mxu0 %vm459_vm2, %v2415_v25  ;;  %2297 = vmatprep.mubr.msk.bf16.mxu1 %vm459_vm2, %v2416_v26 }
  0x42   : > { %2260 = vmatmul.mubr.msk.bf16.gmra.mrb[16].mxu0 %vm459_vm2, %v2417_v27  ;;  %2298 = vmatmul.mubr.msk.bf16.gmra.mrb[16].mxu1 %vm459_vm2, %v2418_v28 }
  0x43   : > { %2263 = vmatprep.mubr.msk.bf16.mxu0 %vm459_vm2, %v2419_v29  ;;  %2301 = vmatprep.mubr.msk.bf16.mxu1 %vm459_vm2, %v2420_v30 }
  0x4a   : > { %2264 = vmatmul.mubr.msk.bf16.gmra.mrb[20].mxu0 %vm459_vm2, %v2421_v31  ;;  %2302 = vmatmul.mubr.msk.bf16.gmra.mrb[20].mxu1 %vm459_vm2, %v2422_v32 }
  0x4b   : > { %2267 = vmatprep.mubr.msk.bf16.mxu0 %vm459_vm2, %v2423_v33  ;;  %2305 = vmatprep.mubr.msk.bf16.mxu1 %vm459_vm2, %v2424_v34 }
  0x52   : > { %2268 = vmatmul.mubr.msk.bf16.gmra.mrb[24].mxu0 %vm459_vm2, %v2425_v35  ;;  %2306 = vmatmul.mubr.msk.bf16.gmra.mrb[24].mxu1 %vm459_vm2, %v2426_v36 }
  0x53   : > { %2319 = vmatprep.mubr.msk.bf16.mxu0 %vm459_vm2, %v2427_v37  ;;  %2357 = vmatprep.mubr.msk.bf16.mxu1 %vm459_vm2, %v2428_v38 }
  0x5a   : > { %2320 = vmatmul.mubr.msk.bf16.vlgmr.msra.gmra.mrb[28].mxu0 %vm459_vm2, %v2429_v39  ;;  %2358 = vmatmul.mubr.msk.bf16.vlgmr.msra.gmra.mrb[28].mxu1 %vm459_vm2, %v2430_v40 }
  0x5b   : > { %2323 = vmatprep.mubr.msk.bf16.mxu0 %vm459_vm2, %v2431_v41  ;;  %2361 = vmatprep.mubr.msk.bf16.mxu1 %vm459_vm2, %v2432_v42 }
  0x62   : > { %2324 = vmatmul.mubr.msk.bf16.gmra.mrb[32].mxu0 %vm459_vm2, %v2433_v43  ;;  %2362 = vmatmul.mubr.msk.bf16.gmra.mrb[32].mxu1 %vm459_vm2, %v2434_v44 }
  0x63   : > { %2327 = vmatprep.mubr.msk.bf16.mxu0 %vm459_vm2, %v2435_v45  ;;  %2365 = vmatprep.mubr.msk.bf16.mxu1 %vm459_vm2, %v2436_v46 }
  0x6a   : > { %2328 = vmatmul.mubr.msk.bf16.gmra.mrb[36].mxu0 %vm459_vm2, %v2437_v47  ;;  %2366 = vmatmul.mubr.msk.bf16.gmra.mrb[36].mxu1 %vm459_vm2, %v2438_v48 }
  0x6b   : > { %2331 = vmatprep.mubr.msk.bf16.mxu0 %vm459_vm2, %v2439_v49  ;;  %2369 = vmatprep.mubr.msk.bf16.mxu1 %vm459_vm2, %v2440_v50 }
  0x72   : > { %2332 = vmatmul.mubr.msk.bf16.gmra.mrb[40].mxu0 %vm459_vm2, %v2441_v51  ;;  %2370 = vmatmul.mubr.msk.bf16.gmra.mrb[40].mxu1 %vm459_vm2, %v2442_v52 }
  0x73   : > { %2335 = vmatprep.mubr.msk.bf16.mxu0 %vm459_vm2, %v2443_v53  ;;  %2373 = vmatprep.mubr.msk.bf16.mxu1 %vm459_vm2, %v2444_v54 }
  0x7a   : > { %2336 = vmatmul.mubr.msk.bf16.gmra.mrb[44].mxu0 %vm459_vm2, %v2445_v55  ;;  %2374 = vmatmul.mubr.msk.bf16.gmra.mrb[44].mxu1 %vm459_vm2, %v2446_v56 }
  0x7b   : > { %2339 = vmatprep.mubr.msk.bf16.mxu0 %vm459_vm2, %v2447_v57  ;;  %2377 = vmatprep.mubr.msk.bf16.mxu1 %vm459_vm2, %v2448_v58 }
  0x82   : > { %2340 = vmatmul.mubr.msk.bf16.gmra.mrb[48].mxu0 %vm459_vm2, %v2449_v59  ;;  %2378 = vmatmul.mubr.msk.bf16.gmra.mrb[48].mxu1 %vm459_vm2, %v2450_v60 }
  0x83   : > { %2343 = vmatprep.mubr.msk.bf16.mxu0 %vm459_vm2, %v2451_v61  ;;  %2381 = vmatprep.mubr.msk.bf16.mxu1 %vm459_vm2, %v2452_v62 }
  0x8a   : > { %2344 = vmatmul.mubr.msk.bf16.gmra.mrb[52].mxu0 %vm459_vm2, %v2453_v63  ;;  %2382 = vmatmul.mubr.msk.bf16.gmra.mrb[52].mxu1 %vm459_vm2, %v2454_v0 }
  0xf5   : > { %v2660_v1 = vpop.f32.mrb[0].mxu0  ;;  %v2662_v2 = vpop.f32.mrb[0].mxu1 }
  0xf6   : > { %v941_v3 = vmax.f32 %v2660_v1, %v2662_v2  ;;  %v2666_v4 = vpop.f32.mrb[1].mxu0  ;;  %v2668_v5 = vpop.f32.mrb[1].mxu1 }
  0xf7   : > { %v2672_v7 = vpop.f32.mrb[2].mxu0  ;;  %v2674_v8 = vpop.f32.mrb[2].mxu1  ;;  %v2993_v63 = vmax.f32 %v2666_v4, %v2668_v5 }
  0xf8   : > { %v2678_v10 = vpop.f32.mrb[3].mxu0  ;;  %v2680_v11 = vpop.f32.mrb[3].mxu1 }
  0xfd   : > { %v2684_v13 = vpop.f32.mrb[4].mxu0  ;;  %v2686_v14 = vpop.f32.mrb[4].mxu1 }
  0xfe   : > { %v2690_v16 = vpop.f32.mrb[5].mxu0  ;;  %v2692_v17 = vpop.f32.mrb[5].mxu1 }
  0xff   : > { %v2696_v19 = vpop.f32.mrb[6].mxu0  ;;  %v2698_v20 = vpop.f32.mrb[6].mxu1 }
 0x100   : > { %v2702_v22 = vpop.f32.mrb[7].mxu0  ;;  %v2704_v23 = vpop.f32.mrb[7].mxu1 }
 0x105   : > { %v2708_v25 = vpop.f32.mrb[8].mxu0  ;;  %v2710_v26 = vpop.f32.mrb[8].mxu1 }
 0x106   : > { %v2714_v28 = vpop.f32.mrb[9].mxu0  ;;  %v2716_v29 = vpop.f32.mrb[9].mxu1 }
 0x107   : > { %v2720_v31 = vpop.f32.mrb[10].mxu0  ;;  %v2722_v32 = vpop.f32.mrb[10].mxu1 }
 0x108   : > { %v2726_v34 = vpop.f32.mrb[11].mxu0  ;;  %v2728_v35 = vpop.f32.mrb[11].mxu1 }
 0x10d   : > { %v2732_v37 = vpop.f32.mrb[12].mxu0  ;;  %v2734_v38 = vpop.f32.mrb[12].mxu1 }
 0x10e   : > { %v2738_v40 = vpop.f32.mrb[13].mxu0  ;;  %v2740_v41 = vpop.f32.mrb[13].mxu1 }
 0x10f   : > { %v2744_v43 = vpop.f32.mrb[14].mxu0  ;;  %v2746_v44 = vpop.f32.mrb[14].mxu1 }
 0x110   : > { %v2750_v46 = vpop.f32.mrb[15].mxu0  ;;  %v2752_v47 = vpop.f32.mrb[15].mxu1 }
 0x115   : > { %v2756_v49 = vpop.f32.mrb[16].mxu0  ;;  %v2758_v50 = vpop.f32.mrb[16].mxu1 }
 0x116   : > { %v2762_v52 = vpop.f32.mrb[17].mxu0  ;;  %v2764_v53 = vpop.f32.mrb[17].mxu1 }
 0x117   : > { %v2768_v55 = vpop.f32.mrb[18].mxu0  ;;  %v2770_v56 = vpop.f32.mrb[18].mxu1 }
 0x118   : > { %v2774_v58 = vpop.f32.mrb[19].mxu0  ;;  %v2776_v59 = vpop.f32.mrb[19].mxu1 }
 0x11d   : > { %v2780_v61 = vpop.f32.mrb[20].mxu0  ;;  %v2782_v62 = vpop.f32.mrb[20].mxu1 }
 0x11e   : > { %v2786_v0 = vpop.f32.mrb[21].mxu0  ;;  %v2788_v54 = vpop.f32.mrb[21].mxu1 }
 0x11f   : > { %v2792_v51 = vpop.f32.mrb[22].mxu0  ;;  %v2794_v48 = vpop.f32.mrb[22].mxu1 }
 0x120   : > { %v2798_v45 = vpop.f32.mrb[23].mxu0  ;;  %v2800_v42 = vpop.f32.mrb[23].mxu1 }
 0x121   : > { %2984 = vst [vmem:[#allocation2_spill] sm:$0xff] %v2800_v42 }
 0x125   : > { %v2804_v39 = vpop.f32.mrb[24].mxu0  ;;  %v2806_v36 = vpop.f32.mrb[24].mxu1 }
 0x126   : > { %2985 = vst [vmem:[#allocation3_spill] sm:$0xff] %v2804_v39  ;;  %2986 = vst [vmem:[#allocation4_spill] sm:$0xff] %v2806_v36  ;;  %v2810_v33 = vpop.f32.mrb[25].mxu0  ;;  %v2812_v30 = vpop.f32.mrb[25].mxu1 }
 0x127   : > { %2987 = vst [vmem:[#allocation5_spill] sm:$0xff] %v2810_v33  ;;  %2988 = vst [vmem:[#allocation6_spill] sm:$0xff] %v2812_v30  ;;  %v2816_v27 = vpop.f32.mrb[26].mxu0  ;;  %v2818_v24 = vpop.f32.mrb[26].mxu1  ;;  %v2834_v30 = vld [vmem:[%s2973_s5] ss:$0 sm:$0xff] }
 0x128   : > { %2989 = vst [vmem:[#allocation7_spill] sm:$0xff] %v2816_v27  ;;  %2990 = vst [vmem:[#allocation8_spill] sm:$0xff] %v2818_v24  ;;  %v2822_v21 = vpop.f32.mrb[27].mxu0  ;;  %v2824_v18 = vpop.f32.mrb[27].mxu1 }
 0x129   : > { %2991 = vst [vmem:[#allocation9_spill] sm:$0xff] %v2822_v21  ;;  %2992 = vst [vmem:[#allocation10_spill] sm:$0xff] %v2824_v18  ;;  %v2994_v18 = vmax.f32 %v2672_v7, %v2674_v8 }
 0x12d   : > { %v2321_v15 = vpop.f32.mrb[28].mxu0  ;;  %v2359_v12 = vpop.f32.mrb[28].mxu1 }
 0x12e   : > { %v1254_v60 = vmax.f32 %v941_v3, %v2321_v15  ;;  %v1141_v9 = vpop.f32.mrb[29].mxu0  ;;  %v1454_v6 = vpop.f32.mrb[29].mxu1  ;;  %v2995_v15 = vmax.f32 %v2678_v10, %v2680_v11 }
 0x12f   : > { %v1252_v24 = vmax.f32 %v2993_v63, %v1141_v9  ;;  %v2322_v27 = vpop.f32.mrb[30].mxu0  ;;  %v2360_v33 = vpop.f32.mrb[30].mxu1 }
 0x130   : > { %v1567_v57 = vmax.f32 %v1254_v60, %v2359_v12  ;;  %v1255_v21 = vmax.f32 %v2994_v18, %v2322_v27  ;;  %v1144_v1 = vpop.f32.mrb[31].mxu0  ;;  %v1457_v2 = vpop.f32.mrb[31].mxu1 }
 0x131   : > { %v1565_v3 = vmax.f32 %v1252_v24, %v1454_v6  ;;  %v1253_v36 = vmax.f32 %v2995_v15, %v1144_v1  ;;  %v2996_v6 = vmax.f32 %v2684_v13, %v2686_v14  ;;  %v2998_v14 = vmax.f32 %v2696_v19, %v2698_v20 }
 0x132   : > { %v1602_v39 = vadd.f32 %v2834_v30, %v1567_v57  ;;  %v1568_v42 = vmax.f32 %v1255_v21, %v2360_v33  ;;  %v2997_v33 = vmax.f32 %v2690_v16, %v2692_v17 }
 0x133   : > { %v1600_v4 = vadd.f32 %v2834_v30, %v1565_v3  ;;  %v1566_v5 = vmax.f32 %v1253_v36, %v1457_v2 }
 0x134   : > { %v1603_v9 = vadd.f32 %v2834_v30, %v1568_v42  ;;  %v1630_v18 = vmax.f32 %v1602_v39, 0.0 }
 0x135   : > { %v1601_v12 = vadd.f32 %v2834_v30, %v1566_v5  ;;  %v2325_v7 = vpop.f32.mrb[32].mxu0  ;;  %v2363_v8 = vpop.f32.mrb[32].mxu1  ;;  %v1628_v60 = vmax.f32 %v1600_v4, 0.0  ;;  %v2999_v4 = vmax.f32 %v2702_v22, %v2704_v23  ;;  %v3000_v22 = vmax.f32 %v2708_v25, %v2710_v26 }
 0x136   : > { %v1631_v27 = vmax.f32 %v1603_v9, 0.0  ;;  %v1258_v10 = vmax.f32 %v2996_v6, %v2325_v7  ;;  %v1157_v11 = vpop.f32.mrb[33].mxu0  ;;  %v1470_v24 = vpop.f32.mrb[33].mxu1 }
 0x137   : > { %v1629_v21 = vmax.f32 %v1601_v12, 0.0  ;;  %v1256_v36 = vmax.f32 %v2997_v33, %v1157_v11  ;;  %v2326_v39 = vpop.f32.mrb[34].mxu0  ;;  %v2364_v42 = vpop.f32.mrb[34].mxu1 }
 0x138   : > { %v2082_v57 = vpack.c.bf16 %v1631_v27, %v1630_v18  ;;  %v1571_v13 = vmax.f32 %v1258_v10, %v2363_v8  ;;  %v1259_v63 = vmax.f32 %v2998_v14, %v2326_v39  ;;  %v1160_v1 = vpop.f32.mrb[35].mxu0  ;;  %v1473_v2 = vpop.f32.mrb[35].mxu1 }
 0x139   : > { %v2077_v3 = vpack.c.bf16 %v1629_v21, %v1628_v60  ;;  %v1569_v15 = vmax.f32 %v1256_v36, %v1470_v24  ;;  %v1257_v5 = vmax.f32 %v2999_v4, %v1160_v1  ;;  %v3001_v60 = vmax.f32 %v2714_v28, %v2716_v29 }
 0x13a   : > { %2144 = vst [vmem:[%s2856_s28 + $0x8] sm:$0xff] %v2082_v57   ;;  %v1606_v16 = vadd.f32 %v2834_v30, %v1571_v13  ;;  %v1572_v17 = vmax.f32 %v1259_v63, %v2364_v42  ;;  %v3002_v57 = vmax.f32 %v2720_v31, %v2722_v32  ;;  %v3003_v1 = vmax.f32 %v2726_v34, %v2728_v35 }
 0x13b   : > { %2078 = vst [vmem:[%s2856_s28] sm:$0xff] %v2077_v3   ;;  %v1604_v9 = vadd.f32 %v2834_v30, %v1569_v15  ;;  %v1570_v12 = vmax.f32 %v1257_v5, %v1473_v2  ;;  %v3004_v34 = vmax.f32 %v2732_v37, %v2734_v38 }
 0x13c   : > { %v1607_v7 = vadd.f32 %v2834_v30, %v1572_v17  ;;  %v1634_v18 = vmax.f32 %v1606_v16, 0.0 }
 0x13d   : > { %v1605_v19 = vadd.f32 %v2834_v30, %v1570_v12  ;;  %v2329_v20 = vpop.f32.mrb[36].mxu0  ;;  %v2367_v8 = vpop.f32.mrb[36].mxu1  ;;  %v1632_v11 = vmax.f32 %v1604_v9, 0.0 }
 0x13e   : > { %v1635_v27 = vmax.f32 %v1607_v7, 0.0  ;;  %v1262_v23 = vmax.f32 %v3000_v22, %v2329_v20  ;;  %v1173_v6 = vpop.f32.mrb[37].mxu0  ;;  %v1486_v10 = vpop.f32.mrb[37].mxu1  ;;  %v3005_v20 = vmax.f32 %v2738_v40, %v2740_v41 }
 0x13f   : > { %v1633_v24 = vmax.f32 %v1605_v19, 0.0  ;;  %v1260_v21 = vmax.f32 %v3001_v60, %v1173_v6  ;;  %v2330_v33 = vpop.f32.mrb[38].mxu0  ;;  %v2368_v36 = vpop.f32.mrb[38].mxu1  ;;  %v3006_v6 = vmax.f32 %v2744_v43, %v2746_v44  ;;  %v3007_v60 = vmax.f32 %v2750_v46, %v2752_v47 }
 0x140   : > { %v2092_v39 = vpack.c.bf16 %v1635_v27, %v1634_v18  ;;  %v1575_v42 = vmax.f32 %v1262_v23, %v2367_v8  ;;  %v1263_v13 = vmax.f32 %v3002_v57, %v2330_v33  ;;  %v1176_v25 = vpop.f32.mrb[39].mxu0  ;;  %v1489_v26 = vpop.f32.mrb[39].mxu1  ;;  %v3008_v46 = vmax.f32 %v2756_v49, %v2758_v50 }
 0x141   : > { %v2087_v14 = vpack.c.bf16 %v1633_v24, %v1632_v11  ;;  %v1573_v63 = vmax.f32 %v1260_v21, %v1486_v10  ;;  %v1261_v2 = vmax.f32 %v3003_v1, %v1176_v25  ;;  %v3009_v1 = vmax.f32 %v2762_v52, %v2764_v53 }
 0x142   : > { %2146 = vst [vmem:[%s2856_s28 + $0x18] sm:$0xff] %v2092_v39   ;;  %v1610_v28 = vadd.f32 %v2834_v30, %v1575_v42  ;;  %v1576_v29 = vmax.f32 %v1263_v13, %v2368_v36 }
 0x143   : > { %2145 = vst [vmem:[%s2856_s28 + $0x10] sm:$0xff] %v2087_v14   ;;  %v1608_v3 = vadd.f32 %v2834_v30, %v1573_v63  ;;  %v1574_v15 = vmax.f32 %v1261_v2, %v1489_v26 }
 0x144   : > { %v1611_v4 = vadd.f32 %v2834_v30, %v1576_v29  ;;  %v1638_v16 = vmax.f32 %v1610_v28, 0.0 }
 0x145   : > { %v1609_v31 = vadd.f32 %v2834_v30, %v1574_v15  ;;  %v2333_v32 = vpop.f32.mrb[40].mxu0  ;;  %v2371_v5 = vpop.f32.mrb[40].mxu1  ;;  %v1636_v7 = vmax.f32 %v1608_v3, 0.0 }
 0x146   : > { %v1639_v17 = vmax.f32 %v1611_v4, 0.0  ;;  %v1266_v35 = vmax.f32 %v3004_v34, %v2333_v32  ;;  %v1189_v9 = vpop.f32.mrb[41].mxu0  ;;  %v1502_v12 = vpop.f32.mrb[41].mxu1  ;;  %v3010_v4 = vmax.f32 %v2768_v55, %v2770_v56 }
 0x147   : > { %v1637_v19 = vmax.f32 %v1609_v31, 0.0  ;;  %v1264_v8 = vmax.f32 %v3005_v20, %v1189_v9  ;;  %v2334_v18 = vpop.f32.mrb[42].mxu0  ;;  %v2372_v27 = vpop.f32.mrb[42].mxu1 }
 0x148   : > { %v2102_v22 = vpack.c.bf16 %v1639_v17, %v1638_v16  ;;  %v1579_v23 = vmax.f32 %v1266_v35, %v2371_v5  ;;  %v1267_v10 = vmax.f32 %v3006_v6, %v2334_v18  ;;  %v1192_v37 = vpop.f32.mrb[43].mxu0  ;;  %v1505_v38 = vpop.f32.mrb[43].mxu1  ;;  %v3011_v16 = vmax.f32 %v2774_v58, %v2776_v59 }
 0x149   : > { %v2097_v11 = vpack.c.bf16 %v1637_v19, %v1636_v7  ;;  %v1577_v24 = vmax.f32 %v1264_v8, %v1502_v12  ;;  %v1265_v21 = vmax.f32 %v3007_v60, %v1192_v37  ;;  %v3012_v58 = vmax.f32 %v2780_v61, %v2782_v62 }
 0x14a   : > { %2148 = vst [vmem:[%s2856_s28 + $0x28] sm:$0xff] %v2102_v22   ;;  %v1614_v40 = vadd.f32 %v2834_v30, %v1579_v23  ;;  %v1580_v41 = vmax.f32 %v1267_v10, %v2372_v27  ;;  %v3013_v22 = vmax.f32 %v2786_v0, %v2788_v54 }
 0x14b   : > { %2147 = vst [vmem:[%s2856_s28 + $0x20] sm:$0xff] %v2097_v11   ;;  %v1612_v33 = vadd.f32 %v2834_v30, %v1577_v24  ;;  %v1578_v36 = vmax.f32 %v1265_v21, %v1505_v38  ;;  %v3014_v11 = vmax.f32 %v2792_v51, %v2794_v48 }
 0x14c   : > { %v1615_v39 = vadd.f32 %v2834_v30, %v1580_v41  ;;  %v1642_v57 = vmax.f32 %v1614_v40, 0.0  ;;  %v3015_v40 = vld [vmem:[#allocation2_spill] sm:$0xff] }
 0x14d   : > { %v1613_v43 = vadd.f32 %v2834_v30, %v1578_v36  ;;  %v2337_v44 = vpop.f32.mrb[44].mxu0  ;;  %v2375_v42 = vpop.f32.mrb[44].mxu1  ;;  %v1640_v14 = vmax.f32 %v1612_v33, 0.0  ;;  %v3016_v41 = vmax.f32 %v2798_v45, %v3015_v40 }
 0x14e   : > { %v1643_v13 = vmax.f32 %v1615_v39, 0.0  ;;  %v1270_v47 = vmax.f32 %v3008_v46, %v2337_v44  ;;  %v1205_v25 = vpop.f32.mrb[45].mxu0  ;;  %v1518_v26 = vpop.f32.mrb[45].mxu1  ;;  %v3018_v46 = vld [vmem:[#allocation4_spill] sm:$0xff] }
 0x14f   : > { %v1641_v63 = vmax.f32 %v1613_v43, 0.0  ;;  %v1268_v2 = vmax.f32 %v3009_v1, %v1205_v25  ;;  %v2338_v28 = vpop.f32.mrb[46].mxu0  ;;  %v2376_v29 = vpop.f32.mrb[46].mxu1  ;;  %v3020_v1 = vld [vmem:[#allocation5_spill] sm:$0xff] }
 0x150   : > { %v2112_v3 = vpack.c.bf16 %v1643_v13, %v1642_v57  ;;  %v1583_v15 = vmax.f32 %v1270_v47, %v2375_v42  ;;  %v1271_v31 = vmax.f32 %v3010_v4, %v2338_v28  ;;  %v1208_v49 = vpop.f32.mrb[47].mxu0  ;;  %v1521_v50 = vpop.f32.mrb[47].mxu1  ;;  %v3017_v13 = vld [vmem:[#allocation3_spill] sm:$0xff] }
 0x151   : > { %v2107_v32 = vpack.c.bf16 %v1641_v63, %v1640_v14  ;;  %v1581_v5 = vmax.f32 %v1268_v2, %v1518_v26  ;;  %v1269_v17 = vmax.f32 %v3011_v16, %v1208_v49  ;;  %v3019_v45 = vmax.f32 %v3017_v13, %v3018_v46  ;;  %v3021_v2 = vld [vmem:[#allocation6_spill] sm:$0xff]  ;;  %v3023_v49 = vld [vmem:[#allocation7_spill] sm:$0xff] }
 0x152   : > { %2150 = vst [vmem:[%s2856_s28 + $0x38] sm:$0xff] %v2112_v3   ;;  %v1618_v52 = vadd.f32 %v2834_v30, %v1583_v15  ;;  %v1584_v53 = vmax.f32 %v1271_v31, %v2376_v29  ;;  %v3022_v28 = vmax.f32 %v3020_v1, %v3021_v2 }
 0x153   : > { %2149 = vst [vmem:[%s2856_s28 + $0x30] sm:$0xff] %v2107_v32   ;;  %v1616_v34 = vadd.f32 %v2834_v30, %v1581_v5  ;;  %v1582_v35 = vmax.f32 %v1269_v17, %v1521_v50  ;;  %v3024_v50 = vld [vmem:[#allocation8_spill] sm:$0xff] }
 0x154   : > { %v1619_v9 = vadd.f32 %v2834_v30, %v1584_v53  ;;  %v1646_v7 = vmax.f32 %v1618_v52, 0.0  ;;  %v3025_v32 = vmax.f32 %v3023_v49, %v3024_v50 }
 0x155   : > { %v1617_v55 = vadd.f32 %v2834_v30, %v1582_v35  ;;  %v2341_v56 = vpop.f32.mrb[48].mxu0  ;;  %v2379_v12 = vpop.f32.mrb[48].mxu1  ;;  %v1644_v18 = vmax.f32 %v1616_v34, 0.0  ;;  %v3026_v34 = vld [vmem:[#allocation9_spill] sm:$0xff]  ;;  %v3027_v35 = vld [vmem:[#allocation10_spill] sm:$0xff] }
 0x156   : > { %v1647_v19 = vmax.f32 %v1619_v9, 0.0  ;;  %v1274_v59 = vmax.f32 %v3012_v58, %v2341_v56  ;;  %v1221_v20 = vpop.f32.mrb[49].mxu0  ;;  %v1534_v8 = vpop.f32.mrb[49].mxu1  ;;  %v3028_v9 = vmax.f32 %v3026_v34, %v3027_v35 }
 0x157   : > { %v1645_v27 = vmax.f32 %v1617_v55, 0.0  ;;  %v1272_v23 = vmax.f32 %v3013_v22, %v1221_v20  ;;  %v2342_v6 = vpop.f32.mrb[50].mxu0  ;;  %v2380_v10 = vpop.f32.mrb[50].mxu1 }
 0x158   : > { %v2122_v37 = vpack.c.bf16 %v1647_v19, %v1646_v7  ;;  %v1587_v38 = vmax.f32 %v1274_v59, %v2379_v12  ;;  %v1275_v24 = vmax.f32 %v3014_v11, %v2342_v6  ;;  %v1224_v61 = vpop.f32.mrb[51].mxu0  ;;  %v1537_v62 = vpop.f32.mrb[51].mxu1 }
 0x159   : > { %v2117_v60 = vpack.c.bf16 %v1645_v27, %v1644_v18  ;;  %v1585_v21 = vmax.f32 %v1272_v23, %v1534_v8  ;;  %v1273_v33 = vmax.f32 %v3016_v41, %v1224_v61 }
 0x15a   : > { %2152 = vst [vmem:[%s2856_s28 + $0x48] sm:$0xff] %v2122_v37   ;;  %v1622_v54 = vadd.f32 %v2834_v30, %v1587_v38  ;;  %v1588_v0 = vmax.f32 %v1275_v24, %v2380_v10 }
 0x15b   : > { %2151 = vst [vmem:[%s2856_s28 + $0x40] sm:$0xff] %v2117_v60   ;;  %v1620_v36 = vadd.f32 %v2834_v30, %v1585_v21  ;;  %v1586_v39 = vmax.f32 %v1273_v33, %v1537_v62 }
 0x15c   : > { %v1623_v43 = vadd.f32 %v2834_v30, %v1588_v0  ;;  %v1650_v42 = vmax.f32 %v1622_v54, 0.0 }
 0x15d   : > { %v1621_v48 = vadd.f32 %v2834_v30, %v1586_v39  ;;  %v2345_v51 = vpop.f32.mrb[52].mxu0  ;;  %v2383_v44 = vpop.f32.mrb[52].mxu1  ;;  %v1648_v14 = vmax.f32 %v1620_v36, 0.0 }
 0x15e   : > { %v1651_v57 = vmax.f32 %v1623_v43, 0.0  ;;  %v1278_v47 = vmax.f32 %v3019_v45, %v2345_v51  ;;  %v1237_v25 = vpop.f32.mrb[53].mxu0  ;;  %v1550_v26 = vpop.f32.mrb[53].mxu1 }
 0x15f   : > { %v1649_v63 = vmax.f32 %v1621_v48, 0.0  ;;  %v1276_v29 = vmax.f32 %v3022_v28, %v1237_v25  ;;  %v2346_v3 = vpop.f32.mrb[54].mxu0  ;;  %v2384_v15 = vpop.f32.mrb[54].mxu1 }
 0x160   : > { %v2132_v4 = vpack.c.bf16 %v1651_v57, %v1650_v42  ;;  %v1591_v31 = vmax.f32 %v1278_v47, %v2383_v44  ;;  %v1279_v5 = vmax.f32 %v3025_v32, %v2346_v3  ;;  %v1240_v16 = vpop.f32.mrb[55].mxu0  ;;  %v1553_v17 = vpop.f32.mrb[55].mxu1 }
 0x161   : > { %v2127_v52 = vpack.c.bf16 %v1649_v63, %v1648_v14  ;;  %v1589_v53 = vmax.f32 %v1276_v29, %v1550_v26  ;;  %v1277_v55 = vmax.f32 %v3028_v9, %v1240_v16 }
 0x162   : > { %2154 = vst [vmem:[%s2856_s28 + $0x58] sm:$0xff] %v2132_v4   ;;  %v1626_v56 = vadd.f32 %v2834_v30, %v1591_v31  ;;  %v1592_v12 = vmax.f32 %v1279_v5, %v2384_v15 }
 0x163   : > { %2153 = vst [vmem:[%s2856_s28 + $0x50] sm:$0xff] %v2127_v52   ;;  %v1624_v7 = vadd.f32 %v2834_v30, %v1589_v53  ;;  %v1590_v19 = vmax.f32 %v1277_v55, %v1553_v17 }
 0x164   : > { %v1627_v58 = vadd.f32 %v2834_v30, %v1592_v12  ;;  %v1654_v20 = vmax.f32 %v1626_v56, 0.0 }
 0x165   : > { %v1625_v59 = vadd.f32 %v2834_v30, %v1590_v19  ;;  %v1652_v18 = vmax.f32 %v1624_v7, 0.0 }
 0x166   : > { %v1655_v8 = vmax.f32 %v1627_v58, 0.0 }
 0x167   : > { %v1653_v27 = vmax.f32 %v1625_v59, 0.0 }
 0x168   : > { %v2142_v22 = vpack.c.bf16 %v1655_v8, %v1654_v20 }
 0x169   : > { %v2137_v23 = vpack.c.bf16 %v1653_v27, %v1652_v18 }
 0x16a   : > { %2156 = vst [vmem:[%s2856_s28 + $0x68] sm:$0xff] %v2142_v22  }
 0x16b   : > { %2155 = vst [vmem:[%s2856_s28 + $0x60] sm:$0xff] %v2137_v23  }
 0x16c PF: > { %s16_s21 = sadd.s32 1, %s2461_s21  }
 0x16d   : > { %p13_p4 = scmp.ge.s32.totalorder %s16_s21, 9  }
 0x16f   :  { %15 = sbr.rel (!%p13_p4) target bundleno = 1 (0x1), region = 83 }

// kernel: net_forward.3
= control target key start
LH: loop header
LB: loop body
LE: loop exit
PB: predicated region body
PF: predicated region fallthrough
CT: control target
= control target key end

     0   :  { %v6453_v0 = vmov 0   ;;  %vm257_vm0 = vcmask 179200   ;;  %vm297_vm1 = vcmask 1042432   ;;  %vm6455_vm2 = vmmov 0   ;;  %s8400_s4 = inlined_call_operand.vmem [shape: bf16[150,128], index: 4, kind: input, shape index: {}]   ;;  %s8401_s0 = inlined_call_operand.vmem [shape: bf16[200,150], index: 0, kind: input, shape index: {}]   ;;  %s8402_s1 = inlined_call_operand.vmem [shape: bf16[200,150], index: 1, kind: input, shape index: {}]   ;;  %s8403_s2 = inlined_call_operand.vmem [shape: bf16[200,150], index: 2, kind: input, shape index: {}]   ;;  %s8404_s3 = inlined_call_operand.vmem [shape: bf16[200,150], index: 3, kind: input, shape index: {}]   ;;  %s8405_s6 = inlined_call_operand.vmem [shape: bf16[25,128,128], index: 6, kind: input, shape index: {}]   ;;  %s8406_s5 = inlined_call_operand.vmem [shape: f32[1,128], index: 5, kind: input, shape index: {}]   ;;  %s8407_s8 = inlined_call_operand.vmem [shape: bf16[128,128], index: 8, kind: input, shape index: {}]   ;;  %s8408_s10 = inlined_call_operand.vmem [shape: bf16[128,128], index: 10, kind: input, shape index: {}]   ;;  %s8409_s7 = inlined_call_operand.vmem [shape: f32[1,128], index: 7, kind: input, shape index: {}]   ;;  %s8410_s9 = inlined_call_operand.vmem [shape: f32[1,128], index: 9, kind: input, shape index: {}]   ;;  %s8411_s11 = inlined_call_operand.vmem [shape: f32[1,128], index: 11, kind: input, shape index: {}]   ;;  %s8412_s12 = inlined_call_operand.vmem [shape: f32[8,128], index: 12, kind: output, shape index: {}]  }
   0x1   :  { %301 = vmatprep.subr.bf16.mxu1 %v6453_v0  ;;  %v6525_v1 = vld [vmem:[%s8400_s4] sm:$0xff]   ;;  %v6531_v2 = vld [vmem:[%s8400_s4 + $0x8] sm:$0xff]   ;;  %v6538_v3 = vld [vmem:[%s8400_s4 + $0x10] sm:$0xff]  }
   0x2   :  { %302 = vmatpush1.bf16.msra.mxu1 %v6525_v1  ;;  %v6545_v4 = vld [vmem:[%s8400_s4 + $0x18] sm:$0xff]   ;;  %v6086_v5 = vld [vmem:[%s8401_s0 + $0x4] ss:$8 sps:$4 sm:$0xff]   ;;  %v6570_v8 = vld [vmem:[%s8400_s4 + $0x30] sm:$0xff]  }
   0x3   :  { %303 = vmatprep.subr.bf16.mxu1 %v6453_v0  ;;  %4460 = vmatprep.mubr.msk.bf16.mxu1 %vm257_vm0, %v6086_v5  ;;  %v6556_v6 = vld [vmem:[%s8400_s4 + $0x20] sm:$0xff]   ;;  %v6563_v7 = vld [vmem:[%s8400_s4 + $0x28] sm:$0xff]   ;;  %v6577_v9 = vld [vmem:[%s8400_s4 + $0x38] sm:$0xff]  }
   0x4   :  { %v6583_v10 = vld [vmem:[%s8400_s4 + $0x40] sm:$0xff]   ;;  %v6083_v11 = vld [vmem:[%s8400_s4 + $0x48] ss:$0 sps:$4 sm:$0x77]   ;;  %v6087_v14 = vld [vmem:[%s8401_s0 + $0x14] ss:$8 sps:$4 sm:$0xff]  }
   0x5   :  { %v6592_v12 = vsel %vm297_vm1, %v6083_v11, 0  ;;  %v6084_v13 = vld [vmem:[%s8401_s0] ss:$8 sps:$4 sm:$0xff]   ;;  %v6089_v15 = vld [vmem:[%s8401_s0 + $0x10] ss:$8 sps:$4 sm:$0xff]  }
   0x6   :  { %304 = vmatpush1.bf16.msra.mxu1 %v6531_v2  ;;  %v6090_v16 = vld [vmem:[%s8401_s0 + $0x24] ss:$8 sps:$4 sm:$0xff]   ;;  %v6092_v17 = vld [vmem:[%s8401_s0 + $0x20] ss:$8 sps:$4 sm:$0xff]   ;;  %v6093_v18 = vld [vmem:[%s8401_s0 + $0x34] ss:$8 sps:$4 sm:$0xff]  }
   0x7   :  { %305 = vmatprep.subr.bf16.mxu1 %v6453_v0  ;;  %v6095_v19 = vld [vmem:[%s8401_s0 + $0x30] ss:$8 sps:$4 sm:$0xff]   ;;  %v6096_v20 = vld [vmem:[%s8401_s0 + $0x44] ss:$8 sps:$4 sm:$0xff]   ;;  %v6098_v21 = vld [vmem:[%s8401_s0 + $0x40] ss:$8 sps:$4 sm:$0xff]  }
   0x8   :  { %v6099_v22 = vld [vmem:[%s8401_s0 + $0x54] ss:$8 sps:$4 sm:$0xff]   ;;  %v6101_v23 = vld [vmem:[%s8401_s0 + $0x50] ss:$8 sps:$4 sm:$0xff]   ;;  %v6102_v24 = vld [vmem:[%s8401_s0 + $0x64] ss:$8 sps:$4 sm:$0xff]  }
   0x9   :  { %v6104_v25 = vld [vmem:[%s8401_s0 + $0x60] ss:$8 sps:$4 sm:$0xff]   ;;  %v6105_v26 = vld [vmem:[%s8401_s0 + $0x74] ss:$8 sps:$4 sm:$0xff]   ;;  %v6107_v27 = vld [vmem:[%s8401_s0 + $0x70] ss:$8 sps:$4 sm:$0xff]  }
   0xa   :  { %306 = vmatpush1.bf16.msra.mxu1 %v6538_v3  ;;  %v6108_v28 = vld [vmem:[%s8401_s0 + $0x84] ss:$8 sps:$4 sm:$0xff]   ;;  %v6110_v29 = vld [vmem:[%s8401_s0 + $0x80] ss:$8 sps:$4 sm:$0xff]   ;;  %v6111_v30 = vld [vmem:[%s8401_s0 + $0x94] ss:$8 sps:$4 sm:$0xff]  }
   0xb   :  { %307 = vmatprep.subr.bf16.mxu1 %v6453_v0  ;;  %v6113_v31 = vld [vmem:[%s8401_s0 + $0x90] ss:$8 sps:$4 sm:$0xff]   ;;  %v6114_v32 = vld [vmem:[%s8401_s0 + $0xa4] ss:$8 sps:$4 sm:$0xff]   ;;  %v6116_v33 = vld [vmem:[%s8401_s0 + $0xa0] ss:$8 sps:$4 sm:$0xff]  }
   0xc   :  { %v6117_v34 = vld [vmem:[%s8401_s0 + $0xb4] ss:$8 sps:$4 sm:$0xff]   ;;  %v85_v35 = vld [vmem:[%s8401_s0 + $0xc0] sm:$0xff]  ;;  %v6119_v36 = vld [vmem:[%s8401_s0 + $0xb0] ss:$8 sps:$4 sm:$0xff]  }
   0xd   :  { %v4449_v37 = vcombine.high %v85_v35, %v85_v35  ;;  %v4448_v38 = vcombine.low %v85_v35, %v85_v35  ;;  %v6124_v39 = vld [vmem:[%s8402_s1 + $0x4] ss:$8 sps:$4 sm:$0xff]   ;;  %v6122_v40 = vld [vmem:[%s8402_s1] ss:$8 sps:$4 sm:$0xff]   ;;  %v6125_v41 = vld [vmem:[%s8402_s1 + $0x14] ss:$8 sps:$4 sm:$0xff]  }
   0xe   :  { %308 = vmatpush1.bf16.msra.mxu1 %v6545_v4  ;;  %v6127_v42 = vld [vmem:[%s8402_s1 + $0x10] ss:$8 sps:$4 sm:$0xff]   ;;  %v6128_v43 = vld [vmem:[%s8402_s1 + $0x24] ss:$8 sps:$4 sm:$0xff]   ;;  %v6130_v44 = vld [vmem:[%s8402_s1 + $0x20] ss:$8 sps:$4 sm:$0xff]  }
   0xf   :  { %309 = vmatprep.subr.bf16.mxu1 %v6453_v0  ;;  %v6131_v45 = vld [vmem:[%s8402_s1 + $0x34] ss:$8 sps:$4 sm:$0xff]   ;;  %v6133_v46 = vld [vmem:[%s8402_s1 + $0x30] ss:$8 sps:$4 sm:$0xff]   ;;  %v6134_v47 = vld [vmem:[%s8402_s1 + $0x44] ss:$8 sps:$4 sm:$0xff]  }
  0x10   :  { %v6136_v48 = vld [vmem:[%s8402_s1 + $0x40] ss:$8 sps:$4 sm:$0xff]   ;;  %v6137_v49 = vld [vmem:[%s8402_s1 + $0x54] ss:$8 sps:$4 sm:$0xff]   ;;  %v6139_v50 = vld [vmem:[%s8402_s1 + $0x50] ss:$8 sps:$4 sm:$0xff]  }
  0x11   :  { %v6140_v51 = vld [vmem:[%s8402_s1 + $0x64] ss:$8 sps:$4 sm:$0xff]   ;;  %v6142_v52 = vld [vmem:[%s8402_s1 + $0x60] ss:$8 sps:$4 sm:$0xff]   ;;  %v6143_v53 = vld [vmem:[%s8402_s1 + $0x74] ss:$8 sps:$4 sm:$0xff]  }
  0x12   :  { %310 = vmatpush1.bf16.msra.mxu1 %v6556_v6  ;;  %v6145_v54 = vld [vmem:[%s8402_s1 + $0x70] ss:$8 sps:$4 sm:$0xff]   ;;  %v6146_v55 = vld [vmem:[%s8402_s1 + $0x84] ss:$8 sps:$4 sm:$0xff]   ;;  %v6148_v56 = vld [vmem:[%s8402_s1 + $0x80] ss:$8 sps:$4 sm:$0xff]  }
  0x13   :  { %311 = vmatprep.subr.bf16.mxu1 %v6453_v0  ;;  %v6149_v57 = vld [vmem:[%s8402_s1 + $0x94] ss:$8 sps:$4 sm:$0xff]   ;;  %v6151_v58 = vld [vmem:[%s8402_s1 + $0x90] ss:$8 sps:$4 sm:$0xff]   ;;  %v6152_v59 = vld [vmem:[%s8402_s1 + $0xa4] ss:$8 sps:$4 sm:$0xff]  }
  0x14   :  { %v6154_v60 = vld [vmem:[%s8402_s1 + $0xa0] ss:$8 sps:$4 sm:$0xff]   ;;  %v6155_v61 = vld [vmem:[%s8402_s1 + $0xb4] ss:$8 sps:$4 sm:$0xff]   ;;  %v6157_v63 = vld [vmem:[%s8402_s1 + $0xb0] ss:$8 sps:$4 sm:$0xff]  }
  0x15   :  { %v461_v62 = vld [vmem:[%s8402_s1 + $0xc0] sm:$0xff]  ;;  %v6177_v35 = vld [vmem:[%s8403_s2 + $0x50] ss:$8 sps:$4 sm:$0xff]  }
  0x16   :  { %312 = vmatpush1.bf16.msra.mxu1 %v6563_v7  ;;  %v4498_v5 = vcombine.high %v461_v62, %v461_v62  ;;  %v4497_v11 = vcombine.low %v461_v62, %v461_v62 }
  0x17   :  { %313 = vmatprep.subr.bf16.mxu1 %v6453_v0 }
  0x1a   :  { %314 = vmatpush1.bf16.msra.mxu1 %v6570_v8 }
  0x1b   :  { %315 = vmatprep.subr.bf16.mxu1 %v6453_v0 }
  0x1e   :  { %316 = vmatpush1.bf16.msra.mxu1 %v6577_v9 }
  0x1f   :  { %317 = vmatprep.subr.bf16.mxu1 %v6453_v0 }
  0x22   :  { %318 = vmatpush1.bf16.msra.mxu1 %v6583_v10 }
  0x23   :  { %319 = vmatprep.subr.bf16.mxu1 %v6453_v0 }
  0x26   :  { %320 = vmatpush1.bf16.msra.mxu1 %v6592_v12 }
  0x27   :  { %615 = vmatprep.subr.bf16.mxu1 %v6453_v0 }
  0x29   :  { %334 = vmatmul.mubr.bf16.vlgmr.msra.gmra.mrb[0].mxu1 %v6084_v13  ;;  %v6162_v13 = vld [vmem:[%s8403_s2 + $0x4] ss:$8 sps:$4 sm:$0xff]  }
  0x2a   :  { %616 = vmatpush1.bf16.msra.mxu1 %v6525_v1  ;;  %4461 = vmatprep.mubr.msk.bf16.mxu1 %vm257_vm0, %v6087_v14  ;;  %v6160_v14 = vld [vmem:[%s8403_s2] ss:$8 sps:$4 sm:$0xff]  }
  0x2b   :  { %617 = vmatprep.subr.bf16.mxu1 %v6453_v0 }
  0x2e   :  { %618 = vmatpush1.bf16.msra.mxu1 %v6531_v2 }
  0x2f   :  { %619 = vmatprep.subr.bf16.mxu1 %v6453_v0 }
  0x31   :  { %342 = vmatmul.mubr.bf16.gmra.mrb[4].mxu1 %v6089_v15  ;;  %v6163_v15 = vld [vmem:[%s8403_s2 + $0x14] ss:$8 sps:$4 sm:$0xff]  }
  0x32   :  { %4462 = vmatprep.mubr.msk.bf16.mxu1 %vm257_vm0, %v6090_v16  ;;  %620 = vmatpush1.bf16.msra.mxu1 %v6538_v3 }
  0x33   :  { %621 = vmatprep.subr.bf16.mxu1 %v6453_v0 }
  0x36   :  { %622 = vmatpush1.bf16.msra.mxu1 %v6545_v4 }
  0x37   :  { %623 = vmatprep.subr.bf16.mxu1 %v6453_v0 }
  0x39   :  { %350 = vmatmul.mubr.bf16.gmra.mrb[8].mxu1 %v6092_v17 }
  0x3a   :  { %4463 = vmatprep.mubr.msk.bf16.mxu1 %vm257_vm0, %v6093_v18  ;;  %624 = vmatpush1.bf16.msra.mxu1 %v6556_v6  ;;  %v6165_v18 = vld [vmem:[%s8403_s2 + $0x10] ss:$8 sps:$4 sm:$0xff]  }
  0x3b   :  { %625 = vmatprep.subr.bf16.mxu1 %v6453_v0 }
  0x3e   :  { %626 = vmatpush1.bf16.msra.mxu1 %v6563_v7 }
  0x3f   :  { %627 = vmatprep.subr.bf16.mxu1 %v6453_v0 }
  0x41   :  { %358 = vmatmul.mubr.bf16.gmra.mrb[12].mxu1 %v6095_v19 }
  0x42   :  { %4464 = vmatprep.mubr.msk.bf16.mxu1 %vm257_vm0, %v6096_v20  ;;  %628 = vmatpush1.bf16.msra.mxu1 %v6570_v8  ;;  %v6166_v20 = vld [vmem:[%s8403_s2 + $0x24] ss:$8 sps:$4 sm:$0xff]  }
  0x43   :  { %629 = vmatprep.subr.bf16.mxu1 %v6453_v0 }
  0x46   :  { %630 = vmatpush1.bf16.msra.mxu1 %v6577_v9 }
  0x47   :  { %631 = vmatprep.subr.bf16.mxu1 %v6453_v0 }
  0x49   :  { %366 = vmatmul.mubr.bf16.gmra.mrb[16].mxu1 %v6098_v21 }
  0x4a   :  { %4465 = vmatprep.mubr.msk.bf16.mxu1 %vm257_vm0, %v6099_v22  ;;  %632 = vmatpush1.bf16.msra.mxu1 %v6583_v10 }
  0x4b   :  { %633 = vmatprep.subr.bf16.mxu1 %v6453_v0 }
  0x4e   :  { %634 = vmatpush1.bf16.msra.mxu1 %v6592_v12 }
  0x4f   :  { %954 = vmatprep.subr.bf16.mxu1 %v6453_v0 }
  0x51   :  { %374 = vmatmul.mubr.bf16.gmra.mrb[20].mxu1 %v6101_v23 }
  0x52   :  { %4466 = vmatprep.mubr.msk.bf16.mxu1 %vm257_vm0, %v6102_v24  ;;  %v6169_v24 = vld [vmem:[%s8403_s2 + $0x34] ss:$8 sps:$4 sm:$0xff]  }
  0x59   :  { %382 = vmatmul.mubr.bf16.gmra.mrb[24].mxu1 %v6104_v25 }
  0x5a   :  { %4467 = vmatprep.mubr.msk.bf16.mxu1 %vm257_vm0, %v6105_v26 }
  0x61   :  { %390 = vmatmul.mubr.bf16.gmra.mrb[28].mxu1 %v6107_v27  ;;  %v6171_v27 = vld [vmem:[%s8403_s2 + $0x30] ss:$8 sps:$4 sm:$0xff]  }
  0x62   :  { %4468 = vmatprep.mubr.msk.bf16.mxu1 %vm257_vm0, %v6108_v28 }
  0x69   :  { %398 = vmatmul.mubr.bf16.gmra.mrb[32].mxu1 %v6110_v29 }
  0x6a   :  { %4469 = vmatprep.mubr.msk.bf16.mxu1 %vm257_vm0, %v6111_v30 }
  0x71   :  { %406 = vmatmul.mubr.bf16.gmra.mrb[36].mxu1 %v6113_v31  ;;  %v6174_v31 = vld [vmem:[%s8403_s2 + $0x40] ss:$8 sps:$4 sm:$0xff]  }
  0x72   :  { %4470 = vmatprep.mubr.msk.bf16.mxu1 %vm257_vm0, %v6114_v32 }
  0x79   :  { %414 = vmatmul.mubr.bf16.gmra.mrb[40].mxu1 %v6116_v33 }
  0x7a   :  { %4471 = vmatprep.mubr.msk.bf16.mxu1 %vm257_vm0, %v6117_v34 }
  0x81   :  { %422 = vmatmul.mubr.bf16.gmra.mrb[44].mxu1 %v6119_v36 }
  0x82   :  { %4472 = vmatprep.mubr.msk.bf16.mxu1 %vm257_vm0, %v4449_v37 }
  0x89   :  { %430 = vmatmul.mubr.bf16.gmra.mrb[48].mxu1 %v4448_v38  ;;  %v6180_v38 = vld [vmem:[%s8403_s2 + $0x60] ss:$8 sps:$4 sm:$0xff]  }
  0x8a   :  { %4499 = vmatprep.mubr.msk.bf16.mxu1 %vm257_vm0, %v6124_v39 }
  0x91   :  { %648 = vmatmul.mubr.bf16.vlgmr.msra.gmra.mrb[52].mxu1 %v6122_v40  ;;  %v6181_v40 = vld [vmem:[%s8403_s2 + $0x74] ss:$8 sps:$4 sm:$0xff]  }
  0x92   :  { %955 = vmatpush1.bf16.msra.mxu1 %v6525_v1  ;;  %4500 = vmatprep.mubr.msk.bf16.mxu1 %vm257_vm0, %v6125_v41 }
  0x93   :  { %956 = vmatprep.subr.bf16.mxu1 %v6453_v0 }
  0x96   :  { %957 = vmatpush1.bf16.msra.mxu1 %v6531_v2 }
  0x97   :  { %958 = vmatprep.subr.bf16.mxu1 %v6453_v0 }
  0x99   :  { %656 = vmatmul.mubr.bf16.gmra.mrb[56].mxu1 %v6127_v42 }
  0x9a   :  { %4501 = vmatprep.mubr.msk.bf16.mxu1 %vm257_vm0, %v6128_v43  ;;  %959 = vmatpush1.bf16.msra.mxu1 %v6538_v3  ;;  %v6183_v43 = vld [vmem:[%s8403_s2 + $0x70] ss:$8 sps:$4 sm:$0xff]  }
  0x9b   :  { %960 = vmatprep.subr.bf16.mxu1 %v6453_v0 }
  0x9e   :  { %961 = vmatpush1.bf16.msra.mxu1 %v6545_v4 }
  0x9f   :  { %962 = vmatprep.subr.bf16.mxu1 %v6453_v0 }
  0xa1   :  { %664 = vmatmul.mubr.bf16.gmra.mrb[60].mxu1 %v6130_v44 }
  0xa2   :  { %4502 = vmatprep.mubr.msk.bf16.mxu1 %vm257_vm0, %v6131_v45  ;;  %963 = vmatpush1.bf16.msra.mxu1 %v6556_v6  ;;  %v6184_v45 = vld [vmem:[%s8403_s2 + $0x84] ss:$8 sps:$4 sm:$0xff]  }
  0xa3   :  { %964 = vmatprep.subr.bf16.mxu1 %v6453_v0 }
  0xa6   :  { %965 = vmatpush1.bf16.msra.mxu1 %v6563_v7 }
  0xa7   :  { %966 = vmatprep.subr.bf16.mxu1 %v6453_v0 }
  0xa9   :  { %672 = vmatmul.mubr.bf16.gmra.mrb[64].mxu1 %v6133_v46 }
  0xaa   :  { %4503 = vmatprep.mubr.msk.bf16.mxu1 %vm257_vm0, %v6134_v47  ;;  %967 = vmatpush1.bf16.msra.mxu1 %v6570_v8 }
  0xab   :  { %968 = vmatprep.subr.bf16.mxu1 %v6453_v0 }
  0xae   :  { %969 = vmatpush1.bf16.msra.mxu1 %v6577_v9 }
  0xaf   :  { %970 = vmatprep.subr.bf16.mxu1 %v6453_v0 }
  0xb1   :  { %680 = vmatmul.mubr.bf16.gmra.mrb[68].mxu1 %v6136_v48 }
  0xb2   :  { %4504 = vmatprep.mubr.msk.bf16.mxu1 %vm257_vm0, %v6137_v49  ;;  %971 = vmatpush1.bf16.msra.mxu1 %v6583_v10  ;;  %v6186_v49 = vld [vmem:[%s8403_s2 + $0x80] ss:$8 sps:$4 sm:$0xff]  }
  0xb3   :  { %972 = vmatprep.subr.bf16.mxu1 %v6453_v0 }
  0xb6   :  { %973 = vmatpush1.bf16.msra.mxu1 %v6592_v12 }
  0xb7   :  { %1293 = vmatprep.subr.bf16.mxu1 %v6453_v0 }
  0xb9   :  { %688 = vmatmul.mubr.bf16.gmra.mrb[72].mxu1 %v6139_v50 }
  0xba   :  { %4505 = vmatprep.mubr.msk.bf16.mxu1 %vm257_vm0, %v6140_v51  ;;  %v6187_v51 = vld [vmem:[%s8403_s2 + $0x94] ss:$8 sps:$4 sm:$0xff]  }
  0xc1   :  { %696 = vmatmul.mubr.bf16.gmra.mrb[76].mxu1 %v6142_v52 }
  0xc2   :  { %4506 = vmatprep.mubr.msk.bf16.mxu1 %vm257_vm0, %v6143_v53 }
  0xc9   :  { %704 = vmatmul.mubr.bf16.gmra.mrb[80].mxu1 %v6145_v54 }
  0xca   :  { %4507 = vmatprep.mubr.msk.bf16.mxu1 %vm257_vm0, %v6146_v55  ;;  %v6189_v55 = vld [vmem:[%s8403_s2 + $0x90] ss:$8 sps:$4 sm:$0xff]  }
  0xd1   :  { %712 = vmatmul.mubr.bf16.gmra.mrb[84].mxu1 %v6148_v56 }
  0xd2   :  { %4508 = vmatprep.mubr.msk.bf16.mxu1 %vm257_vm0, %v6149_v57  ;;  %v6190_v57 = vld [vmem:[%s8403_s2 + $0xa4] ss:$8 sps:$4 sm:$0xff]  }
  0xd9   :  { %720 = vmatmul.mubr.bf16.gmra.mrb[88].mxu1 %v6151_v58 }
  0xda   :  { %4509 = vmatprep.mubr.msk.bf16.mxu1 %vm257_vm0, %v6152_v59 }
  0xe1   :  { %728 = vmatmul.mubr.bf16.gmra.mrb[92].mxu1 %v6154_v60 }
  0xe2   :  { %4510 = vmatprep.mubr.msk.bf16.mxu1 %vm257_vm0, %v6155_v61  ;;  %v6192_v61 = vld [vmem:[%s8403_s2 + $0xa0] ss:$8 sps:$4 sm:$0xff]  }
  0xe9   :  { %736 = vmatmul.mubr.bf16.gmra.mrb[96].mxu1 %v6157_v63  ;;  %v6193_v63 = vld [vmem:[%s8403_s2 + $0xb4] ss:$8 sps:$4 sm:$0xff]  }
  0xea   :  { %4511 = vmatprep.mubr.msk.bf16.mxu1 %vm257_vm0, %v4498_v5 }
  0xf1   :  { %744 = vmatmul.mubr.bf16.gmra.mrb[100].mxu1 %v4497_v11  ;;  %v800_v11 = vld [vmem:[%s8403_s2 + $0xc0] sm:$0xff] }
  0xf2   :  { %4538 = vmatprep.mubr.msk.bf16.mxu1 %vm257_vm0, %v6162_v13 }
  0xf9   :  { %987 = vmatmul.mubr.bf16.vlgmr.msra.gmra.mrb[104].mxu1 %v6160_v14 }
  0xfa   :  { %1294 = vmatpush1.bf16.msra.mxu1 %v6525_v1  ;;  %4539 = vmatprep.mubr.msk.bf16.mxu1 %vm257_vm0, %v6163_v15  ;;  %v6195_v15 = vld [vmem:[%s8403_s2 + $0xb0] ss:$8 sps:$4 sm:$0xff]  }
  0xfb   :  { %1295 = vmatprep.subr.bf16.mxu1 %v6453_v0 }
  0xfc   :  { %v6821_v16 = vpop.f32.mrb[0].mxu1 }
  0xfd   :  { %v337_v17 = vpop.f32.mrb[1].mxu1 }
  0xfe   :  { %v6826_v19 = vpop.f32.mrb[2].mxu1  ;;  %1296 = vmatpush1.bf16.msra.mxu1 %v6531_v2  ;;  %v6168_v2 = vld [vmem:[%s8403_s2 + $0x20] ss:$8 sps:$4 sm:$0xff]  }
  0xff   :  { %v340_v1 = vpop.f32.mrb[3].mxu1  ;;  %1297 = vmatprep.subr.bf16.mxu1 %v6453_v0 }
 0x101   :  { %995 = vmatmul.mubr.bf16.gmra.mrb[108].mxu1 %v6165_v18  ;;  %v4537_v18 = vcombine.high %v800_v11, %v800_v11 }
 0x102   :  { %4540 = vmatprep.mubr.msk.bf16.mxu1 %vm257_vm0, %v6166_v20  ;;  %1298 = vmatpush1.bf16.msra.mxu1 %v6538_v3 }
 0x103   :  { %1299 = vmatprep.subr.bf16.mxu1 %v6453_v0 }
 0x104   :  { %v6836_v21 = vpop.f32.mrb[4].mxu1 }
 0x105   :  { %v345_v22 = vpop.f32.mrb[5].mxu1 }
 0x106   :  { %v6841_v23 = vpop.f32.mrb[6].mxu1  ;;  %1300 = vmatpush1.bf16.msra.mxu1 %v6545_v4  ;;  %v6172_v4 = vld [vmem:[%s8403_s2 + $0x44] ss:$8 sps:$4 sm:$0xff]  }
 0x107   :  { %v348_v25 = vpop.f32.mrb[7].mxu1  ;;  %1301 = vmatprep.subr.bf16.mxu1 %v6453_v0 }
 0x108   :  { %v6200_v25 = vld [vmem:[%s8404_s3 + $0x4] ss:$8 sps:$4 sm:$0xff]  }
 0x109   :  { %1003 = vmatmul.mubr.bf16.gmra.mrb[112].mxu1 %v6168_v2  ;;  %v4536_v2 = vcombine.low %v800_v11, %v800_v11 }
 0x10a   :  { %4541 = vmatprep.mubr.msk.bf16.mxu1 %vm257_vm0, %v6169_v24  ;;  %1302 = vmatpush1.bf16.msra.mxu1 %v6556_v6 }
 0x10b   :  { %1303 = vmatprep.subr.bf16.mxu1 %v6453_v0 }
 0x10c   :  { %v6851_v3 = vpop.f32.mrb[8].mxu1 }
 0x10d   :  { %v353_v26 = vpop.f32.mrb[9].mxu1 }
 0x10e   :  { %v6856_v28 = vpop.f32.mrb[10].mxu1  ;;  %1304 = vmatpush1.bf16.msra.mxu1 %v6563_v7  ;;  %v6175_v7 = vld [vmem:[%s8403_s2 + $0x54] ss:$8 sps:$4 sm:$0xff]  }
 0x10f   :  { %v356_v29 = vpop.f32.mrb[11].mxu1  ;;  %1305 = vmatprep.subr.bf16.mxu1 %v6453_v0 }
 0x110   :  { %v6198_v29 = vld [vmem:[%s8404_s3] ss:$8 sps:$4 sm:$0xff]  }
 0x111   :  { %1011 = vmatmul.mubr.bf16.gmra.mrb[116].mxu1 %v6171_v27 }
 0x112   :  { %4542 = vmatprep.mubr.msk.bf16.mxu1 %vm257_vm0, %v6172_v4  ;;  %1306 = vmatpush1.bf16.msra.mxu1 %v6570_v8 }
 0x113   :  { %1307 = vmatprep.subr.bf16.mxu1 %v6453_v0 }
 0x114   :  { %v6866_v6 = vpop.f32.mrb[12].mxu1 }
 0x115   :  { %v361_v30 = vpop.f32.mrb[13].mxu1 }
 0x116   :  { %v6871_v32 = vpop.f32.mrb[14].mxu1  ;;  %1308 = vmatpush1.bf16.msra.mxu1 %v6577_v9  ;;  %v6178_v9 = vld [vmem:[%s8403_s2 + $0x64] ss:$8 sps:$4 sm:$0xff]  }
 0x117   :  { %v364_v33 = vpop.f32.mrb[15].mxu1  ;;  %1309 = vmatprep.subr.bf16.mxu1 %v6453_v0 }
 0x119   :  { %1019 = vmatmul.mubr.bf16.gmra.mrb[120].mxu1 %v6174_v31  ;;  %v6201_v31 = vld [vmem:[%s8404_s3 + $0x14] ss:$8 sps:$4 sm:$0xff]  }
 0x11a   :  { %4543 = vmatprep.mubr.msk.bf16.mxu1 %vm257_vm0, %v6175_v7  ;;  %1310 = vmatpush1.bf16.msra.mxu1 %v6583_v10 }
 0x11b   :  { %1311 = vmatprep.subr.bf16.mxu1 %v6453_v0 }
 0x11c   :  { %v6881_v8 = vpop.f32.mrb[16].mxu1 }
 0x11d   :  { %v369_v34 = vpop.f32.mrb[17].mxu1 }
 0x11e   :  { %v6886_v36 = vpop.f32.mrb[18].mxu1  ;;  %1312 = vmatpush1.bf16.msra.mxu1 %v6592_v12 }
 0x11f   :  { %v372_v37 = vpop.f32.mrb[19].mxu1 }
 0x121   :  { %1027 = vmatmul.mubr.bf16.gmra.mrb[124].mxu1 %v6177_v35 }
 0x122   :  { %4544 = vmatprep.mubr.msk.bf16.mxu1 %vm257_vm0, %v6178_v9  ;;  %v6203_v9 = vld [vmem:[%s8404_s3 + $0x10] ss:$8 sps:$4 sm:$0xff]  }
 0x124   :  { %v6893_v0 = vpop.f32.mrb[20].mxu1 }
 0x125   :  { %v377_v10 = vpop.f32.mrb[21].mxu1 }
 0x126   :  { %v6898_v39 = vpop.f32.mrb[22].mxu1  ;;  %v6204_v10 = vld [vmem:[%s8404_s3 + $0x24] ss:$8 sps:$4 sm:$0xff]  }
 0x127   :  { %v380_v41 = vpop.f32.mrb[23].mxu1 }
 0x129   :  { %1035 = vmatmul.mubr.bf16.gmra.mrb[128].mxu1 %v6180_v38 }
 0x12a   :  { %4545 = vmatprep.mubr.msk.bf16.mxu1 %vm257_vm0, %v6181_v40 }
 0x12c   :  { %v6904_v12 = vpop.f32.mrb[24].mxu1 }
 0x12d   :  { %v385_v42 = vpop.f32.mrb[25].mxu1 }
 0x12e   :  { %v6909_v44 = vpop.f32.mrb[26].mxu1 }
 0x12f   :  { %v388_v46 = vpop.f32.mrb[27].mxu1 }
 0x131   :  { %1043 = vmatmul.mubr.bf16.gmra.mrb[132].mxu1 %v6183_v43 }
 0x132   :  { %4546 = vmatprep.mubr.msk.bf16.mxu1 %vm257_vm0, %v6184_v45  ;;  %v6206_v45 = vld [vmem:[%s8404_s3 + $0x20] ss:$8 sps:$4 sm:$0xff]  }
 0x134   :  { %v6915_v47 = vpop.f32.mrb[28].mxu1 }
 0x135   :  { %v393_v48 = vpop.f32.mrb[29].mxu1 }
 0x136   :  { %v6920_v50 = vpop.f32.mrb[30].mxu1  ;;  %v6207_v48 = vld [vmem:[%s8404_s3 + $0x34] ss:$8 sps:$4 sm:$0xff]  }
 0x137   :  { %v396_v52 = vpop.f32.mrb[31].mxu1 }
 0x139   :  { %1051 = vmatmul.mubr.bf16.gmra.mrb[136].mxu1 %v6186_v49 }
 0x13a   :  { %4547 = vmatprep.mubr.msk.bf16.mxu1 %vm257_vm0, %v6187_v51 }
 0x13c   :  { %v6926_v53 = vpop.f32.mrb[32].mxu1 }
 0x13d   :  { %v401_v54 = vpop.f32.mrb[33].mxu1 }
 0x13e   :  { %v6931_v56 = vpop.f32.mrb[34].mxu1 }
 0x13f   :  { %v404_v58 = vpop.f32.mrb[35].mxu1 }
 0x141   :  { %1059 = vmatmul.mubr.bf16.gmra.mrb[140].mxu1 %v6189_v55 }
 0x142   :  { %4548 = vmatprep.mubr.msk.bf16.mxu1 %vm257_vm0, %v6190_v57  ;;  %v6209_v57 = vld [vmem:[%s8404_s3 + $0x30] ss:$8 sps:$4 sm:$0xff]  }
 0x144   :  { %v6937_v59 = vpop.f32.mrb[36].mxu1 }
 0x145   :  { %v409_v60 = vpop.f32.mrb[37].mxu1 }
 0x146   :  { %v6942_v62 = vpop.f32.mrb[38].mxu1  ;;  %v6210_v60 = vld [vmem:[%s8404_s3 + $0x44] ss:$8 sps:$4 sm:$0xff]  }
 0x147   :  { %v412_v5 = vpop.f32.mrb[39].mxu1 }
 0x149   :  { %1067 = vmatmul.mubr.bf16.gmra.mrb[144].mxu1 %v6192_v61 }
 0x14a   :  { %4549 = vmatprep.mubr.msk.bf16.mxu1 %vm257_vm0, %v6193_v63 }
 0x14c   :  { %v6951_v13 = vpop.f32.mrb[40].mxu1 }
 0x14d   :  { %v417_v14 = vpop.f32.mrb[41].mxu1 }
 0x14e   :  { %v6956_v17 = vpop.f32.mrb[42].mxu1 }
 0x14f   :  { %v420_v20 = vpop.f32.mrb[43].mxu1 }
 0x150   :  { %v6213_v20 = vld [vmem:[%s8404_s3 + $0x54] ss:$8 sps:$4 sm:$0xff]  }
 0x151   :  { %1075 = vmatmul.mubr.bf16.gmra.mrb[148].mxu1 %v6195_v15  ;;  %v6212_v15 = vld [vmem:[%s8404_s3 + $0x40] ss:$8 sps:$4 sm:$0xff]  }
 0x152   :  { %4550 = vmatprep.mubr.msk.bf16.mxu1 %vm257_vm0, %v4537_v18 }
 0x154   :  { %v6959_v1 = vpop.f32.mrb[44].mxu1 }
 0x155   :  { %v425_v22 = vpop.f32.mrb[45].mxu1 }
 0x156   :  { %v6961_v24 = vpop.f32.mrb[46].mxu1 }
 0x157   :  { %v428_v26 = vpop.f32.mrb[47].mxu1 }
 0x159   :  { %1083 = vmatmul.mubr.bf16.gmra.mrb[152].mxu1 %v4536_v2 }
 0x15a   :  { %4577 = vmatprep.mubr.msk.bf16.mxu1 %vm257_vm0, %v6200_v25 }
 0x15c   :  { %v6967_v27 = vpop.f32.mrb[48].mxu1 }
 0x15d   :  { %v433_v4 = vpop.f32.mrb[49].mxu1 }
 0x15e   :  { %v434_v30 = vpop.f32.mrb[50].mxu1 }
 0x15f   :  { %v435_v7 = vpop.f32.mrb[51].mxu1 }
 0x160   :  { %v6242_v7 = vld [vmem:[%s8405_s6 + $0x28] sm:$0xff]  }
 0x161   :  { %1326 = vmatmul.mubr.bf16.vlgmr.msra.gmra.mrb[156].mxu1 %v6198_v29  ;;  %v6215_v29 = vld [vmem:[%s8404_s3 + $0x50] ss:$8 sps:$4 sm:$0xff]  }
 0x162   :  { %4578 = vmatprep.mubr.msk.bf16.mxu1 %vm257_vm0, %v6201_v31  ;;  %v6216_v31 = vld [vmem:[%s8404_s3 + $0x64] ss:$8 sps:$4 sm:$0xff]  }
 0x164   :  { %v6976_v33 = vpop.f32.mrb[52].mxu1 }
 0x165   :  { %v751_v34 = vmax.f32 %v6821_v16, %v6976_v33  ;;  %v651_v35 = vpop.f32.mrb[53].mxu1 }
 0x166   :  { %v6983_v37 = vpop.f32.mrb[54].mxu1 }
 0x167   :  { %v752_v38 = vmax.f32 %v6826_v19, %v6983_v37  ;;  %v654_v40 = vpop.f32.mrb[55].mxu1 }
 0x169   :  { %1334 = vmatmul.mubr.bf16.gmra.mrb[160].mxu1 %v6203_v9 }
 0x16a   :  { %4579 = vmatprep.mubr.msk.bf16.mxu1 %vm257_vm0, %v6204_v10 }
 0x16c   :  { %v6991_v41 = vpop.f32.mrb[56].mxu1 }
 0x16d   :  { %v753_v42 = vmax.f32 %v6836_v21, %v6991_v41  ;;  %v659_v43 = vpop.f32.mrb[57].mxu1 }
 0x16e   :  { %v6998_v46 = vpop.f32.mrb[58].mxu1  ;;  %v6218_v43 = vld [vmem:[%s8404_s3 + $0x60] ss:$8 sps:$4 sm:$0xff]  }
 0x16f   :  { %v754_v49 = vmax.f32 %v6841_v23, %v6998_v46  ;;  %v662_v51 = vpop.f32.mrb[59].mxu1 }
 0x171   :  { %1342 = vmatmul.mubr.bf16.gmra.mrb[164].mxu1 %v6206_v45 }
 0x172   :  { %4580 = vmatprep.mubr.msk.bf16.mxu1 %vm257_vm0, %v6207_v48  ;;  %v6219_v48 = vld [vmem:[%s8404_s3 + $0x74] ss:$8 sps:$4 sm:$0xff]  }
 0x174   :  { %v7006_v52 = vpop.f32.mrb[60].mxu1 }
 0x175   :  { %v667_v55 = vpop.f32.mrb[61].mxu1  ;;  %v8413_v19 = vmax.f32 %v6851_v3, %v7006_v52 }
 0x176   :  { %v7013_v58 = vpop.f32.mrb[62].mxu1 }
 0x177   :  { %v670_v63 = vpop.f32.mrb[63].mxu1  ;;  %v8414_v21 = vmax.f32 %v6856_v28, %v7013_v58 }
 0x179   :  { %1350 = vmatmul.mubr.bf16.gmra.mrb[168].mxu1 %v6209_v57 }
 0x17a   :  { %4581 = vmatprep.mubr.msk.bf16.mxu1 %vm257_vm0, %v6210_v60  ;;  %v6239_v60 = vld [vmem:[%s8405_s6 + $0x18] sm:$0xff]  }
 0x17c   :  { %v7021_v5 = vpop.f32.mrb[64].mxu1 }
 0x17d   :  { %v675_v14 = vpop.f32.mrb[65].mxu1  ;;  %v8415_v23 = vmax.f32 %v6866_v6, %v7021_v5 }
 0x17e   :  { %v7028_v18 = vpop.f32.mrb[66].mxu1  ;;  %v6221_v14 = vld [vmem:[%s8404_s3 + $0x70] ss:$8 sps:$4 sm:$0xff]  }
 0x17f   :  { %v678_v2 = vpop.f32.mrb[67].mxu1  ;;  %v8416_v3 = vmax.f32 %v6871_v32, %v7028_v18 }
 0x181   :  { %1358 = vmatmul.mubr.bf16.gmra.mrb[172].mxu1 %v6212_v15 }
 0x182   :  { %4582 = vmatprep.mubr.msk.bf16.mxu1 %vm257_vm0, %v6213_v20  ;;  %v6222_v20 = vld [vmem:[%s8404_s3 + $0x84] ss:$8 sps:$4 sm:$0xff]  }
 0x184   :  { %v7036_v25 = vpop.f32.mrb[68].mxu1 }
 0x185   :  { %v683_v4 = vpop.f32.mrb[69].mxu1  ;;  %v8417_v28 = vmax.f32 %v6881_v8, %v7036_v25 }
 0x186   :  { %v7043_v30 = vpop.f32.mrb[70].mxu1 }
 0x187   :  { %v686_v35 = vpop.f32.mrb[71].mxu1  ;;  %v8418_v6 = vmax.f32 %v6886_v36, %v7043_v30 }
 0x189   :  { %1366 = vmatmul.mubr.bf16.gmra.mrb[176].mxu1 %v6215_v29  ;;  %v6224_v29 = vld [vmem:[%s8404_s3 + $0x80] ss:$8 sps:$4 sm:$0xff]  }
 0x18a   :  { %4583 = vmatprep.mubr.msk.bf16.mxu1 %vm257_vm0, %v6216_v31  ;;  %v6236_v31 = vld [vmem:[%s8405_s6] sm:$0xff]  }
 0x18c   :  { %v7051_v9 = vpop.f32.mrb[72].mxu1 }
 0x18d   :  { %v691_v40 = vpop.f32.mrb[73].mxu1  ;;  %v8419_v32 = vmax.f32 %v6893_v0, %v7051_v9 }
 0x18e   :  { %v7058_v45 = vpop.f32.mrb[74].mxu1  ;;  %v6225_v40 = vld [vmem:[%s8404_s3 + $0x94] ss:$8 sps:$4 sm:$0xff]  }
 0x18f   :  { %v694_v55 = vpop.f32.mrb[75].mxu1  ;;  %v8420_v8 = vmax.f32 %v6898_v39, %v7058_v45 }
 0x191   :  { %1374 = vmatmul.mubr.bf16.gmra.mrb[180].mxu1 %v6218_v43  ;;  %v6454_v43 = vmov 0.0  }
 0x192   :  { %4584 = vmatprep.mubr.msk.bf16.mxu1 %vm257_vm0, %v6219_v48  ;;  %5437 = vmatprep.subr.bf16.mxu1 %v6454_v43  ;;  %v6231_v48 = vld [vmem:[%s8404_s3 + $0xb4] ss:$8 sps:$4 sm:$0xff]  }
 0x193   :  { %5537 = vmatprep.subr.bf16.mxu0 %v6454_v43  ;;  %5438 = vmatpush3.bf16.msra.mxu1 %v6236_v31  ;;  %v6227_v31 = vld [vmem:[%s8404_s3 + $0x90] ss:$8 sps:$4 sm:$0xff]  }
 0x194   :  { %v7066_v57 = vpop.f32.mrb[76].mxu1  ;;  %5439 = vmatprep.subr.bf16.mxu1 %v6454_v43  ;;  %5553 = vmatprep.mubr.msk.bf16.mxu0 %vm6455_vm2, %v6454_v43 }
 0x195   :  { %v699_v63 = vpop.f32.mrb[77].mxu1  ;;  %v8421_v36 = vmax.f32 %v6904_v12, %v7066_v57 }
 0x196   :  { %v7073_v15 = vpop.f32.mrb[78].mxu1 }
 0x197   :  { %v702_v4 = vpop.f32.mrb[79].mxu1  ;;  %v8422_v0 = vmax.f32 %v6909_v44, %v7073_v15 }
 0x198   :  { %v6237_v4 = vld [vmem:[%s8405_s6 + $0x8] sm:$0xff]  }
 0x199   :  { %1382 = vmatmul.mubr.bf16.gmra.mrb[184].mxu1 %v6221_v14 }
 0x19a   :  { %4585 = vmatprep.mubr.msk.bf16.mxu1 %vm257_vm0, %v6222_v20  ;;  %5440 = vmatpush3.bf16.msra.mxu1 %v6237_v4 }
 0x19b   :  { %5441 = vmatprep.subr.bf16.mxu1 %v6454_v43 }
 0x19c   :  { %v7087_v35 = vpop.f32.mrb[80].mxu1 }
 0x19d   :  { %v707_v55 = vpop.f32.mrb[81].mxu1  ;;  %v8423_v39 = vmax.f32 %v6915_v47, %v7087_v35 }
 0x19e   :  { %v7096_v63 = vpop.f32.mrb[82].mxu1  ;;  %v6238_v55 = vld [vmem:[%s8405_s6 + $0x10] sm:$0xff]  }
 0x19f   :  { %v710_v20 = vpop.f32.mrb[83].mxu1  ;;  %5442 = vmatpush3.bf16.msra.mxu1 %v6238_v55  ;;  %v8424_v12 = vmax.f32 %v6920_v50, %v7096_v63 }
 0x1a0   :  { %v6228_v20 = vld [vmem:[%s8404_s3 + $0xa4] ss:$8 sps:$4 sm:$0xff]   ;;  %5443 = vmatprep.subr.bf16.mxu1 %v6454_v43 }
 0x1a1   :  { %1390 = vmatmul.mubr.bf16.gmra.mrb[188].mxu1 %v6224_v29 }
 0x1a2   :  { %4586 = vmatprep.mubr.msk.bf16.mxu1 %vm257_vm0, %v6225_v40 }
 0x1a3   :  { %5444 = vmatpush3.bf16.msra.mxu1 %v6239_v60 }
 0x1a4   :  { %v7112_v14 = vpop.f32.mrb[84].mxu1  ;;  %5445 = vmatprep.subr.bf16.mxu1 %v6454_v43 }
 0x1a5   :  { %v715_v40 = vpop.f32.mrb[85].mxu1  ;;  %v8425_v44 = vmax.f32 %v6926_v53, %v7112_v14 }
 0x1a6   :  { %v7119_v4 = vpop.f32.mrb[86].mxu1  ;;  %v6230_v40 = vld [vmem:[%s8404_s3 + $0xa0] ss:$8 sps:$4 sm:$0xff]  }
 0x1a7   :  { %v718_v2 = vpop.f32.mrb[87].mxu1  ;;  %v8426_v47 = vmax.f32 %v6931_v56, %v7119_v4 }
 0x1a8   :  { %v6240_v2 = vld [vmem:[%s8405_s6 + $0x20] sm:$0xff]  }
 0x1a9   :  { %1398 = vmatmul.mubr.bf16.gmra.mrb[192].mxu1 %v6227_v31 }
 0x1aa   :  { %4587 = vmatprep.mubr.msk.bf16.mxu1 %vm257_vm0, %v6228_v20  ;;  %v6241_v20 = vld [vmem:[%s8405_s6 + $0x140] sm:$0xff]   ;;  %5446 = vmatpush3.bf16.msra.mxu1 %v6240_v2 }
 0x1ab   :  { %5538 = vmatpush3.bf16.msra.mxu0 %v6241_v20  ;;  %5447 = vmatprep.subr.bf16.mxu1 %v6454_v43  ;;  %v1139_v2 = vld [vmem:[%s8404_s3 + $0xc0] sm:$0xff] }
 0x1ac   :  { %v7135_v55 = vpop.f32.mrb[88].mxu1  ;;  %5539 = vmatprep.subr.bf16.mxu0 %v6454_v43  ;;  %v4576_v31 = vcombine.high %v1139_v2, %v1139_v2 }
 0x1ad   :  { %v723_v60 = vpop.f32.mrb[89].mxu1  ;;  %v8427_v50 = vmax.f32 %v6937_v59, %v7135_v55 }
 0x1ae   :  { %v7145_v29 = vpop.f32.mrb[90].mxu1  ;;  %v6243_v60 = vld [vmem:[%s8405_s6 + $0x148] sm:$0xff]   ;;  %5448 = vmatpush3.bf16.msra.mxu1 %v6242_v7  ;;  %v6245_v7 = vld [vmem:[%s8405_s6 + $0x150] sm:$0xff]  }
 0x1af   :  { %v726_v10 = vpop.f32.mrb[91].mxu1  ;;  %5540 = vmatpush3.bf16.msra.mxu0 %v6243_v60  ;;  %5449 = vmatprep.subr.bf16.mxu1 %v6454_v43  ;;  %v8428_v53 = vmax.f32 %v6942_v62, %v7145_v29 }
 0x1b0   :  { %v6244_v10 = vld [vmem:[%s8405_s6 + $0x30] sm:$0xff]   ;;  %5541 = vmatprep.subr.bf16.mxu0 %v6454_v43 }
 0x1b1   :  { %1406 = vmatmul.mubr.bf16.gmra.mrb[196].mxu1 %v6230_v40  ;;  %v6247_v40 = vld [vmem:[%s8405_s6 + $0x158] sm:$0xff]  }
 0x1b2   :  { %4588 = vmatprep.mubr.msk.bf16.mxu1 %vm257_vm0, %v6231_v48  ;;  %v6233_v48 = vld [vmem:[%s8404_s3 + $0xb0] ss:$8 sps:$4 sm:$0xff]   ;;  %5450 = vmatpush3.bf16.msra.mxu1 %v6244_v10 }
 0x1b3   :  { %5542 = vmatpush3.bf16.msra.mxu0 %v6245_v7  ;;  %5451 = vmatprep.subr.bf16.mxu1 %v6454_v43  ;;  %v4575_v7 = vcombine.low %v1139_v2, %v1139_v2  ;;  %v6251_v2 = vld [vmem:[%s8405_s6 + $0x168] sm:$0xff]  }
 0x1b4   :  { %v7165_v20 = vpop.f32.mrb[92].mxu1  ;;  %5543 = vmatprep.subr.bf16.mxu0 %v6454_v43 }
 0x1b5   :  { %v731_v51 = vpop.f32.mrb[93].mxu1  ;;  %v8429_v56 = vmax.f32 %v6951_v13, %v7165_v20 }
 0x1b6   :  { %v7176_v60 = vpop.f32.mrb[94].mxu1  ;;  %v6246_v51 = vld [vmem:[%s8405_s6 + $0x38] sm:$0xff]  }
 0x1b7   :  { %v734_v22 = vpop.f32.mrb[95].mxu1  ;;  %5452 = vmatpush3.bf16.msra.mxu1 %v6246_v51  ;;  %5544 = vmatpush3.bf16.msra.mxu0 %v6247_v40  ;;  %v6255_v40 = vld [vmem:[%s8405_s6 + $0x178] sm:$0xff]   ;;  %v8430_v59 = vmax.f32 %v6956_v17, %v7176_v60 }
 0x1b8   :  { %5457 = vmatprep.subr.bf16.mxu1 %v6454_v43  ;;  %5545 = vmatprep.subr.bf16.mxu0 %v6454_v43 }
 0x1b9   :  { %1414 = vmatmul.mubr.bf16.gmra.mrb[200].mxu1 %v6233_v48 }
 0x1ba   :  { %4589 = vmatprep.mubr.msk.bf16.mxu1 %vm257_vm0, %v4576_v31  ;;  %v6249_v31 = vld [vmem:[%s8405_s6 + $0x160] sm:$0xff]  }
 0x1bb   :  { %5546 = vmatpush3.bf16.msra.mxu0 %v6249_v31 }
 0x1bc   :  { %v7190_v22 = vpop.f32.mrb[96].mxu1  ;;  %5547 = vmatprep.subr.bf16.mxu0 %v6454_v43 }
 0x1bd   :  { %v739_v48 = vpop.f32.mrb[97].mxu1  ;;  %v8431_v62 = vmax.f32 %v6959_v1, %v7190_v22  ;;  %v7351_v1 = vld [vmem:[%s8406_s5] ss:$0 sm:$0xff] }
 0x1be   :  { %v7197_v26 = vpop.f32.mrb[98].mxu1 }
 0x1bf   :  { %v742_v51 = vpop.f32.mrb[99].mxu1  ;;  %5548 = vmatpush3.bf16.msra.mxu0 %v6251_v2  ;;  %v8432_v13 = vmax.f32 %v6961_v24, %v7197_v26 }
 0x1c0   :  { %5549 = vmatprep.subr.bf16.mxu0 %v6454_v43 }
 0x1c1   :  { %1422 = vmatmul.mubr.bf16.gmra.mrb[204].mxu1 %v4575_v7  ;;  %v6253_v7 = vld [vmem:[%s8405_s6 + $0x170] sm:$0xff]  }
 0x1c2   :  { %5453 = vmatprep.mubr.msk.bf16.mxu1 %vm6455_vm2, %v6454_v43 }
 0x1c3   :  { %5550 = vmatpush3.bf16.msra.mxu0 %v6253_v7 }
 0x1c4   :  { %v7210_v48 = vpop.f32.mrb[100].mxu1  ;;  %5551 = vmatprep.subr.bf16.mxu0 %v6454_v43 }
 0x1c5   :  { %v747_v11 = vpop.f32.mrb[101].mxu1  ;;  %v8433_v17 = vmax.f32 %v6967_v27, %v7210_v48 }
 0x1c6   :  { %v748_v31 = vpop.f32.mrb[102].mxu1 }
 0x1c7   :  { %v749_v51 = vpop.f32.mrb[103].mxu1  ;;  %5552 = vmatpush3.bf16.msra.mxu0 %v6255_v40 }
 0x1c8   :  { %5557 = vmatprep.subr.bf16.mxu0 %v6454_v43 }
 0x1cc   :  { %v988_v2 = vpop.f32.mrb[104].mxu1 }
 0x1cd   :  { %v7225_v11 = vmax.f32 %v751_v34, %v988_v2  ;;  %v990_v31 = vpop.f32.mrb[105].mxu1 }
 0x1ce   :  { %v991_v10 = vpop.f32.mrb[106].mxu1 }
 0x1cf   :  { %v7231_v7 = vmax.f32 %v752_v38, %v991_v10  ;;  %v993_v51 = vpop.f32.mrb[107].mxu1 }
 0x1d4   :  { %v996_v61 = vpop.f32.mrb[108].mxu1 }
 0x1d5   :  { %v7236_v40 = vmax.f32 %v753_v42, %v996_v61  ;;  %v998_v54 = vpop.f32.mrb[109].mxu1 }
 0x1d6   :  { %v999_v16 = vpop.f32.mrb[110].mxu1 }
 0x1d7   :  { %v7241_v33 = vmax.f32 %v754_v49, %v999_v16  ;;  %v1001_v34 = vpop.f32.mrb[111].mxu1 }
 0x1dc   :  { %v1004_v2 = vpop.f32.mrb[112].mxu1 }
 0x1dd   :  { %v7246_v37 = vmax.f32 %v8413_v19, %v1004_v2  ;;  %v1006_v38 = vpop.f32.mrb[113].mxu1 }
 0x1de   :  { %v1007_v10 = vpop.f32.mrb[114].mxu1 }
 0x1df   :  { %v7251_v41 = vmax.f32 %v8414_v21, %v1007_v10  ;;  %v1009_v42 = vpop.f32.mrb[115].mxu1 }
 0x1e4   :  { %v1012_v54 = vpop.f32.mrb[116].mxu1 }
 0x1e5   :  { %v7256_v46 = vmax.f32 %v8415_v23, %v1012_v54  ;;  %v1014_v49 = vpop.f32.mrb[117].mxu1 }
 0x1e6   :  { %v1015_v61 = vpop.f32.mrb[118].mxu1 }
 0x1e7   :  { %v7261_v52 = vmax.f32 %v8416_v3, %v1015_v61  ;;  %v1017_v31 = vpop.f32.mrb[119].mxu1 }
 0x1ec   :  { %v1020_v51 = vpop.f32.mrb[120].mxu1 }
 0x1ed   :  { %v7266_v58 = vmax.f32 %v8417_v28, %v1020_v51  ;;  %v1022_v16 = vpop.f32.mrb[121].mxu1 }
 0x1ee   :  { %v1023_v34 = vpop.f32.mrb[122].mxu1 }
 0x1ef   :  { %v7271_v5 = vmax.f32 %v8418_v6, %v1023_v34  ;;  %v1025_v2 = vpop.f32.mrb[123].mxu1 }
 0x1f4   :  { %v1028_v19 = vpop.f32.mrb[124].mxu1 }
 0x1f5   :  { %v7276_v18 = vmax.f32 %v8419_v32, %v1028_v19  ;;  %v1030_v38 = vpop.f32.mrb[125].mxu1 }
 0x1f6   :  { %v1031_v10 = vpop.f32.mrb[126].mxu1 }
 0x1f7   :  { %v7281_v25 = vmax.f32 %v8420_v8, %v1031_v10  ;;  %v1033_v21 = vpop.f32.mrb[127].mxu1 }
 0x1fc   :  { %v1036_v42 = vpop.f32.mrb[128].mxu1 }
 0x1fd   :  { %v7286_v30 = vmax.f32 %v8421_v36, %v1036_v42  ;;  %v1038_v54 = vpop.f32.mrb[129].mxu1 }
 0x1fe   :  { %v1039_v23 = vpop.f32.mrb[130].mxu1 }
 0x1ff   :  { %v7291_v9 = vmax.f32 %v8422_v0, %v1039_v23  ;;  %v1041_v49 = vpop.f32.mrb[131].mxu1 }
 0x204   :  { %v1044_v61 = vpop.f32.mrb[132].mxu1 }
 0x205   :  { %v7296_v45 = vmax.f32 %v8423_v39, %v1044_v61  ;;  %v1046_v3 = vpop.f32.mrb[133].mxu1 }
 0x206   :  { %v1047_v31 = vpop.f32.mrb[134].mxu1 }
 0x207   :  { %v7301_v57 = vmax.f32 %v8424_v12, %v1047_v31  ;;  %v1049_v51 = vpop.f32.mrb[135].mxu1 }
 0x20c   :  { %v1052_v28 = vpop.f32.mrb[136].mxu1 }
 0x20d   :  { %v7306_v15 = vmax.f32 %v8425_v44, %v1052_v28  ;;  %v1054_v16 = vpop.f32.mrb[137].mxu1  ;;  %v6248_v28 = vld [vmem:[%s8405_s6 + $0x40] sm:$0xff]  }
 0x20e   :  { %v1055_v34 = vpop.f32.mrb[138].mxu1 }
 0x20f   :  { %v7311_v35 = vmax.f32 %v8426_v47, %v1055_v34  ;;  %v1057_v6 = vpop.f32.mrb[139].mxu1 }
 0x214   :  { %v1060_v2 = vpop.f32.mrb[140].mxu1 }
 0x215   :  { %v7316_v63 = vmax.f32 %v8427_v50, %v1060_v2  ;;  %v1062_v19 = vpop.f32.mrb[141].mxu1  ;;  %v6252_v50 = vld [vmem:[%s8405_s6 + $0x50] sm:$0xff]  }
 0x216   :  { %v1063_v32 = vpop.f32.mrb[142].mxu1 }
 0x217   :  { %v7321_v14 = vmax.f32 %v8428_v53, %v1063_v32  ;;  %v1065_v38 = vpop.f32.mrb[143].mxu1 }
 0x21c   :  { %v1068_v10 = vpop.f32.mrb[144].mxu1 }
 0x21d   :  { %v7326_v4 = vmax.f32 %v8429_v56, %v1068_v10  ;;  %v1070_v8 = vpop.f32.mrb[145].mxu1  ;;  %v6254_v10 = vld [vmem:[%s8405_s6 + $0x58] sm:$0xff]  }
 0x21e   :  { %v1071_v21 = vpop.f32.mrb[146].mxu1 }
 0x21f   :  { %v7331_v55 = vmax.f32 %v8430_v59, %v1071_v21  ;;  %v1073_v42 = vpop.f32.mrb[147].mxu1  ;;  %v6256_v59 = vld [vmem:[%s8405_s6 + $0x60] sm:$0xff]  }
 0x224   :  { %v1076_v36 = vpop.f32.mrb[148].mxu1 }
 0x225   :  { %v7336_v29 = vmax.f32 %v8431_v62, %v1076_v36  ;;  %v1078_v54 = vpop.f32.mrb[149].mxu1  ;;  %v6257_v62 = vld [vmem:[%s8405_s6 + $0x180] sm:$0xff]  }
 0x226   :  { %v1079_v23 = vpop.f32.mrb[150].mxu1 }
 0x227   :  { %v7341_v20 = vmax.f32 %v8432_v13, %v1079_v23  ;;  %v1081_v0 = vpop.f32.mrb[151].mxu1 }
 0x228   :  { %v6258_v0 = vld [vmem:[%s8405_s6 + $0x68] sm:$0xff]  }
 0x22c   :  { %v1084_v49 = vpop.f32.mrb[152].mxu1 }
 0x22d   :  { %v7346_v60 = vmax.f32 %v8433_v17, %v1084_v49  ;;  %v1086_v61 = vpop.f32.mrb[153].mxu1 }
 0x22e   :  { %v1087_v39 = vpop.f32.mrb[154].mxu1  ;;  %v6260_v61 = vld [vmem:[%s8405_s6 + $0x70] sm:$0xff]  }
 0x22f   :  { %v1088_v3 = vpop.f32.mrb[155].mxu1 }
 0x234   :  { %v1327_v22 = vpop.f32.mrb[156].mxu1 }
 0x235   :  { %v1429_v24 = vmax.f32 %v7225_v11, %v1327_v22  ;;  %v1329_v26 = vpop.f32.mrb[157].mxu1  ;;  %v6261_v22 = vld [vmem:[%s8405_s6 + $0x190] sm:$0xff]  }
 0x236   :  { %v1330_v31 = vpop.f32.mrb[158].mxu1 }
 0x237   :  { %v1461_v12 = vadd.f32 %v7351_v1, %v1429_v24  ;;  %v1430_v51 = vmax.f32 %v7231_v7, %v1330_v31  ;;  %v1332_v27 = vpop.f32.mrb[159].mxu1  ;;  %v6250_v7 = vld [vmem:[%s8405_s6 + $0x48] sm:$0xff]  }
 0x239   :  { %v1486_v48 = vmax.f32 %v1461_v12, 0.0  ;;  %v1462_v39 = vadd.f32 %v7351_v1, %v1430_v51  ;;  %v6262_v12 = vld [vmem:[%s8405_s6 + $0x78] sm:$0xff]  }
 0x23b   :  { %v1519_v44 = vpack.c.bf16 %v1486_v48, %v1486_v48  ;;  %v1487_v51 = vmax.f32 %v1462_v39, 0.0 }
 0x23c   :  { %v7359_v16 = vpop.f32.mrb[160].mxu1 }
 0x23d   :  { %v1431_v34 = vmax.f32 %v7236_v40, %v7359_v16  ;;  %v1337_v47 = vpop.f32.mrb[161].mxu1  ;;  %5454 = vmatmul.mubr.bf16.vlgmr.msra.gmra.mrb[208].mxu1 %v1519_v44  ;;  %v6264_v44 = vld [vmem:[%s8405_s6 + $0x80] sm:$0xff]   ;;  %v6278_v40 = vld [vmem:[%s8405_s6 + $0xb8] sm:$0xff]  }
 0x23e   :  { %5458 = vmatpush3.bf16.msra.mxu1 %v6248_v28  ;;  %v7363_v11 = vpop.f32.mrb[162].mxu1  ;;  %5473 = vmatprep.mubr.msk.bf16.mxu1 %vm6455_vm2, %v6454_v43  ;;  %v6263_v28 = vld [vmem:[%s8405_s6 + $0x198] sm:$0xff]   ;;  %v1625_v47 = vpack.c.bf16 %v1487_v51, %v1487_v51 }
 0x23f   :  { %v1432_v6 = vmax.f32 %v7241_v33, %v7363_v11  ;;  %v1340_v2 = vpop.f32.mrb[163].mxu1  ;;  %5459 = vmatprep.subr.bf16.mxu1 %v6454_v43  ;;  %v6294_v33 = vld [vmem:[%s8405_s6 + $0xf8] sm:$0xff]  }
 0x240   :  { %v6265_v2 = vld [vmem:[%s8405_s6 + $0x1a0] sm:$0xff]  }
 0x242   :  { %5460 = vmatpush3.bf16.msra.mxu1 %v6250_v7 }
 0x243   :  { %5461 = vmatprep.subr.bf16.mxu1 %v6454_v43 }
 0x244   :  { %v7377_v19 = vpop.f32.mrb[164].mxu1 }
 0x245   :  { %v1433_v32 = vmax.f32 %v7246_v37, %v7377_v19  ;;  %v1345_v53 = vpop.f32.mrb[165].mxu1  ;;  %v6311_v37 = vld [vmem:[%s8405_s6 + $0x258] sm:$0xff]  }
 0x246   :  { %5462 = vmatpush3.bf16.msra.mxu1 %v6252_v50  ;;  %v1346_v38 = vpop.f32.mrb[166].mxu1 }
 0x247   :  { %v1434_v56 = vmax.f32 %v7251_v41, %v1346_v38  ;;  %v1348_v8 = vpop.f32.mrb[167].mxu1  ;;  %5463 = vmatprep.subr.bf16.mxu1 %v6454_v43 }
 0x249   :  { %v1466_v21 = vadd.f32 %v7351_v1, %v1434_v56 }
 0x24a   :  { %5464 = vmatpush3.bf16.msra.mxu1 %v6254_v10  ;;  %v6266_v10 = vld [vmem:[%s8405_s6 + $0x88] sm:$0xff]  }
 0x24b   :  { %v1491_v42 = vmax.f32 %v1466_v21, 0.0  ;;  %5465 = vmatprep.subr.bf16.mxu1 %v6454_v43  ;;  %v6267_v21 = vld [vmem:[%s8405_s6 + $0x1a8] sm:$0xff]  }
 0x24c   :  { %v7391_v36 = vpop.f32.mrb[168].mxu1 }
 0x24d   :  { %v2053_v41 = vpack.c.bf16 %v1491_v42, %v1491_v42  ;;  %v1435_v54 = vmax.f32 %v7256_v46, %v7391_v36  ;;  %v1353_v23 = vpop.f32.mrb[169].mxu1  ;;  %v6259_v46 = vld [vmem:[%s8405_s6 + $0x188] sm:$0xff]   ;;  %v6269_v36 = vld [vmem:[%s8405_s6 + $0x1b0] sm:$0xff]  }
 0x24e   :  { %5466 = vmatpush3.bf16.msra.mxu1 %v6256_v59  ;;  %v7398_v13 = vpop.f32.mrb[170].mxu1  ;;  %v6268_v59 = vld [vmem:[%s8405_s6 + $0x90] sm:$0xff]  }
 0x24f   :  { %v1436_v49 = vmax.f32 %v7261_v52, %v7398_v13  ;;  %5554 = vmatmul.mubr.bf16.vlgmr.msra.gmra.mrb[0].mxu0 %v2053_v41  ;;  %5467 = vmatprep.subr.bf16.mxu1 %v6454_v43  ;;  %v1356_v17 = vpop.f32.mrb[171].mxu1  ;;  %v6287_v13 = vld [vmem:[%s8405_s6 + $0x1f8] sm:$0xff]  }
 0x250   :  { %5558 = vmatpush3.bf16.msra.mxu0 %v6257_v62  ;;  %5573 = vmatprep.mubr.msk.bf16.mxu0 %vm6455_vm2, %v6454_v43  ;;  %v1467_v62 = vadd.f32 %v7351_v1, %v1435_v54  ;;  %v6270_v17 = vld [vmem:[%s8405_s6 + $0x98] sm:$0xff]  }
 0x251   :  { %5559 = vmatprep.subr.bf16.mxu0 %v6454_v43  ;;  %v6271_v54 = vld [vmem:[%s8405_s6 + $0x1b8] sm:$0xff]  }
 0x252   :  { %5468 = vmatpush3.bf16.msra.mxu1 %v6258_v0  ;;  %v1492_v39 = vmax.f32 %v1467_v62, 0.0 }
 0x253   :  { %5469 = vmatprep.subr.bf16.mxu1 %v6454_v43 }
 0x254   :  { %5560 = vmatpush3.bf16.msra.mxu0 %v6259_v46  ;;  %v7417_v3 = vpop.f32.mrb[172].mxu1  ;;  %v2160_v51 = vpack.c.bf16 %v1492_v39, %v1492_v39  ;;  %v6280_v39 = vld [vmem:[%s8405_s6 + $0xc0] sm:$0xff]  }
 0x255   :  { %v1437_v24 = vmax.f32 %v7266_v58, %v7417_v3  ;;  %v1361_v26 = vpop.f32.mrb[173].mxu1  ;;  %5561 = vmatprep.subr.bf16.mxu0 %v6454_v43  ;;  %v6304_v58 = vld [vmem:[%s8405_s6 + $0x120] sm:$0xff]  }
 0x256   :  { %5470 = vmatpush3.bf16.msra.mxu1 %v6260_v61  ;;  %v7425_v31 = vpop.f32.mrb[174].mxu1  ;;  %v6305_v3 = vld [vmem:[%s8405_s6 + $0x240] sm:$0xff]  }
 0x257   :  { %v1438_v27 = vmax.f32 %v7271_v5, %v7425_v31  ;;  %5471 = vmatprep.subr.bf16.mxu1 %v6454_v43  ;;  %v1364_v48 = vpop.f32.mrb[175].mxu1  ;;  %v6317_v5 = vld [vmem:[%s8405_s6 + $0x288] sm:$0xff]   ;;  %v6318_v31 = vld [vmem:[%s8405_s6 + $0x290] sm:$0xff]  }
 0x258   :  { %5562 = vmatpush3.bf16.msra.mxu0 %v6261_v22  ;;  %v6272_v22 = vld [vmem:[%s8405_s6 + $0xa0] sm:$0xff]  }
 0x259   :  { %5563 = vmatprep.subr.bf16.mxu0 %v6454_v43 }
 0x25a   :  { %5472 = vmatpush3.bf16.msra.mxu1 %v6262_v12  ;;  %v6273_v12 = vld [vmem:[%s8405_s6 + $0x1c0] sm:$0xff]  }
 0x25b   :  { %5477 = vmatprep.subr.bf16.mxu1 %v6454_v43 }
 0x25c   :  { %5564 = vmatpush3.bf16.msra.mxu0 %v6263_v28  ;;  %v7441_v7 = vpop.f32.mrb[176].mxu1 }
 0x25d   :  { %v1439_v50 = vmax.f32 %v7276_v18, %v7441_v7  ;;  %5474 = vmatmul.mubr.bf16.vlgmr.msra.gmra.mrb[208].mxu1 %v1625_v47  ;;  %v1369_v53 = vpop.f32.mrb[177].mxu1  ;;  %5565 = vmatprep.subr.bf16.mxu0 %v6454_v43  ;;  %v6274_v47 = vld [vmem:[%s8405_s6 + $0xa8] sm:$0xff]   ;;  %v6326_v7 = vld [vmem:[%s8405_s6 + $0x2d0] sm:$0xff]  }
 0x25e   :  { %5478 = vmatpush3.bf16.msra.mxu1 %v6264_v44  ;;  %v7449_v38 = vpop.f32.mrb[178].mxu1  ;;  %5493 = vmatprep.mubr.msk.bf16.mxu1 %vm6455_vm2, %v6454_v43  ;;  %v6325_v18 = vld [vmem:[%s8405_s6 + $0x2c8] sm:$0xff]  }
 0x25f   :  { %v1440_v56 = vmax.f32 %v7281_v25, %v7449_v38  ;;  %5479 = vmatprep.subr.bf16.mxu1 %v6454_v43  ;;  %v1372_v8 = vpop.f32.mrb[179].mxu1  ;;  %v6333_v25 = vld [vmem:[%s8405_s6 + $0x308] sm:$0xff]   ;;  %v6334_v38 = vld [vmem:[%s8405_s6 + $0x310] sm:$0xff]  }
 0x260   :  { %5566 = vmatpush3.bf16.msra.mxu0 %v6265_v2  ;;  %v6276_v8 = vld [vmem:[%s8405_s6 + $0xb0] sm:$0xff]  }
 0x261   :  { %5567 = vmatprep.subr.bf16.mxu0 %v6454_v43 }
 0x262   :  { %5480 = vmatpush3.bf16.msra.mxu1 %v6266_v10  ;;  %v6275_v10 = vld [vmem:[%s8405_s6 + $0x1c8] sm:$0xff]  }
 0x263   :  { %5481 = vmatprep.subr.bf16.mxu1 %v6454_v43 }
 0x264   :  { %5568 = vmatpush3.bf16.msra.mxu0 %v6267_v21  ;;  %v7467_v42 = vpop.f32.mrb[180].mxu1  ;;  %v1463_v21 = vadd.f32 %v7351_v1, %v1431_v34 }
 0x265   :  { %v1441_v41 = vmax.f32 %v7286_v30, %v7467_v42  ;;  %v1377_v23 = vpop.f32.mrb[181].mxu1  ;;  %5569 = vmatprep.subr.bf16.mxu0 %v6454_v43  ;;  %v6341_v30 = vld [vmem:[%s8405_s6 + $0x348] sm:$0xff]   ;;  %v6342_v42 = vld [vmem:[%s8405_s6 + $0x350] sm:$0xff]  }
 0x266   :  { %5482 = vmatpush3.bf16.msra.mxu1 %v6268_v59  ;;  %v7476_v0 = vpop.f32.mrb[182].mxu1  ;;  %v1488_v16 = vmax.f32 %v1463_v21, 0.0 }
 0x267   :  { %v1442_v46 = vmax.f32 %v7291_v9, %v7476_v0  ;;  %5483 = vmatprep.subr.bf16.mxu1 %v6454_v43  ;;  %v1380_v61 = vpop.f32.mrb[183].mxu1  ;;  %v6349_v9 = vld [vmem:[%s8405_s6 + $0x388] sm:$0xff]   ;;  %v6351_v0 = vld [vmem:[%s8405_s6 + $0x398] sm:$0xff]  }
 0x268   :  { %5570 = vmatpush3.bf16.msra.mxu0 %v6269_v36  ;;  %v6277_v36 = vld [vmem:[%s8405_s6 + $0x1d0] sm:$0xff]  }
 0x269   :  { %5571 = vmatprep.subr.bf16.mxu0 %v6454_v43 }
 0x26a   :  { %5484 = vmatpush3.bf16.msra.mxu1 %v6270_v17 }
 0x26b   :  { %5485 = vmatprep.subr.bf16.mxu1 %v6454_v43 }
 0x26c   :  { %5572 = vmatpush3.bf16.msra.mxu0 %v6271_v54  ;;  %v7492_v26 = vpop.f32.mrb[184].mxu1  ;;  %v6279_v54 = vld [vmem:[%s8405_s6 + $0x1d8] sm:$0xff]  }
 0x26d   :  { %v1443_v48 = vmax.f32 %v7296_v45, %v7492_v26  ;;  %v1385_v28 = vpop.f32.mrb[185].mxu1  ;;  %5577 = vmatprep.subr.bf16.mxu0 %v6454_v43  ;;  %v6357_v45 = vld [vmem:[%s8405_s6 + $0x3c8] sm:$0xff]   ;;  %v6358_v26 = vld [vmem:[%s8405_s6 + $0x3d0] sm:$0xff]  }
 0x26e   :  { %5486 = vmatpush3.bf16.msra.mxu1 %v6272_v22  ;;  %v7500_v44 = vpop.f32.mrb[186].mxu1  ;;  %v1732_v22 = vpack.c.bf16 %v1488_v16, %v1488_v16  ;;  %v6285_v16 = vld [vmem:[%s8405_s6 + $0x1f0] sm:$0xff]  }
 0x26f   :  { %v1444_v2 = vmax.f32 %v7301_v57, %v7500_v44  ;;  %5574 = vmatmul.mubr.bf16.vlgmr.msra.gmra.mrb[0].mxu0 %v2160_v51  ;;  %5487 = vmatprep.subr.bf16.mxu1 %v6454_v43  ;;  %v1388_v53 = vpop.f32.mrb[187].mxu1  ;;  %v6281_v51 = vld [vmem:[%s8405_s6 + $0x1e0] sm:$0xff]   ;;  %v6365_v44 = vld [vmem:[%s8405_s6 + $0x408] sm:$0xff]  }
 0x270   :  { %5578 = vmatpush3.bf16.msra.mxu0 %v6273_v12  ;;  %5593 = vmatprep.mubr.msk.bf16.mxu0 %vm6455_vm2, %v6454_v43 }
 0x271   :  { %5579 = vmatprep.subr.bf16.mxu0 %v6454_v43 }
 0x272   :  { %5488 = vmatpush3.bf16.msra.mxu1 %v6274_v47 }
 0x273   :  { %5489 = vmatprep.subr.bf16.mxu1 %v6454_v43 }
 0x274   :  { %5580 = vmatpush3.bf16.msra.mxu0 %v6275_v10  ;;  %v7522_v59 = vpop.f32.mrb[188].mxu1  ;;  %v6282_v10 = vld [vmem:[%s8405_s6 + $0xc8] sm:$0xff]  }
 0x275   :  { %v1445_v62 = vmax.f32 %v7306_v15, %v7522_v59  ;;  %v1393_v23 = vpop.f32.mrb[189].mxu1  ;;  %5581 = vmatprep.subr.bf16.mxu0 %v6454_v43  ;;  %v6373_v15 = vld [vmem:[%s8405_s6 + $0x448] sm:$0xff]   ;;  %v6374_v59 = vld [vmem:[%s8405_s6 + $0x450] sm:$0xff]  }
 0x276   :  { %5490 = vmatpush3.bf16.msra.mxu1 %v6276_v8  ;;  %v7530_v17 = vpop.f32.mrb[190].mxu1  ;;  %v6284_v23 = vld [vmem:[%s8405_s6 + $0xd0] sm:$0xff]  }
 0x277   :  { %v1446_v34 = vmax.f32 %v7311_v35, %v7530_v17  ;;  %5491 = vmatprep.subr.bf16.mxu1 %v6454_v43  ;;  %v1396_v61 = vpop.f32.mrb[191].mxu1  ;;  %v6381_v35 = vld [vmem:[%s8405_s6 + $0x488] sm:$0xff]   ;;  %v6382_v17 = vld [vmem:[%s8405_s6 + $0x490] sm:$0xff]  }
 0x278   :  { %5582 = vmatpush3.bf16.msra.mxu0 %v6277_v36  ;;  %v6283_v36 = vld [vmem:[%s8405_s6 + $0x1e8] sm:$0xff]   ;;  %v1468_v61 = vadd.f32 %v7351_v1, %v1436_v49 }
 0x279   :  { %5583 = vmatprep.subr.bf16.mxu0 %v6454_v43 }
 0x27a   :  { %5492 = vmatpush3.bf16.msra.mxu1 %v6278_v40  ;;  %v1493_v49 = vmax.f32 %v1468_v61, 0.0 }
 0x27b   :  { %5497 = vmatprep.subr.bf16.mxu1 %v6454_v43 }
 0x27c   :  { %5584 = vmatpush3.bf16.msra.mxu0 %v6279_v54  ;;  %v7546_v12 = vpop.f32.mrb[192].mxu1 }
 0x27d   :  { %v1447_v28 = vmax.f32 %v7316_v63, %v7546_v12  ;;  %5494 = vmatmul.mubr.bf16.vlgmr.msra.gmra.mrb[208].mxu1 %v1732_v22  ;;  %v1401_v47 = vpop.f32.mrb[193].mxu1  ;;  %5585 = vmatprep.subr.bf16.mxu0 %v6454_v43  ;;  %v6389_v63 = vld [vmem:[%s8405_s6 + $0x4c8] sm:$0xff]   ;;  %v6390_v12 = vld [vmem:[%s8405_s6 + $0x4d0] sm:$0xff]  }
 0x27e   :  { %5498 = vmatpush3.bf16.msra.mxu1 %v6280_v39  ;;  %v7554_v53 = vpop.f32.mrb[194].mxu1  ;;  %5513 = vmatprep.mubr.msk.bf16.mxu1 %vm6455_vm2, %v6454_v43 }
 0x27f   :  { %v1448_v8 = vmax.f32 %v7321_v14, %v7554_v53  ;;  %5499 = vmatprep.subr.bf16.mxu1 %v6454_v43  ;;  %v1404_v21 = vpop.f32.mrb[195].mxu1  ;;  %v6397_v14 = vld [vmem:[%s8405_s6 + $0x508] sm:$0xff]   ;;  %v6398_v53 = vld [vmem:[%s8405_s6 + $0x510] sm:$0xff]  }
 0x280   :  { %5586 = vmatpush3.bf16.msra.mxu0 %v6281_v51  ;;  %v6286_v51 = vld [vmem:[%s8405_s6 + $0xd8] sm:$0xff]  }
 0x281   :  { %5587 = vmatprep.subr.bf16.mxu0 %v6454_v43 }
 0x282   :  { %5500 = vmatpush3.bf16.msra.mxu1 %v6282_v10  ;;  %v6288_v10 = vld [vmem:[%s8405_s6 + $0xe0] sm:$0xff]  }
 0x283   :  { %5501 = vmatprep.subr.bf16.mxu1 %v6454_v43 }
 0x284   :  { %5588 = vmatpush3.bf16.msra.mxu0 %v6283_v36  ;;  %v7572_v40 = vpop.f32.mrb[196].mxu1  ;;  %v6289_v36 = vld [vmem:[%s8405_s6 + $0x200] sm:$0xff]  }
 0x285   :  { %v1449_v54 = vmax.f32 %v7326_v4, %v7572_v40  ;;  %v1409_v39 = vpop.f32.mrb[197].mxu1  ;;  %5589 = vmatprep.subr.bf16.mxu0 %v6454_v43  ;;  %v6405_v4 = vld [vmem:[%s8405_s6 + $0x548] sm:$0xff]   ;;  %v6436_v40 = vld [vmem:[%s8407_s8] sm:$0xff]  }
 0x286   :  { %5502 = vmatpush3.bf16.msra.mxu1 %v6284_v23  ;;  %v7584_v22 = vpop.f32.mrb[198].mxu1  ;;  %v2267_v23 = vpack.c.bf16 %v1493_v49, %v1493_v49  ;;  %v6291_v49 = vld [vmem:[%s8405_s6 + $0x208] sm:$0xff]  }
 0x287   :  { %v1450_v47 = vmax.f32 %v7331_v55, %v7584_v22  ;;  %5503 = vmatprep.subr.bf16.mxu1 %v6454_v43  ;;  %v1412_v52 = vpop.f32.mrb[199].mxu1  ;;  %v6412_v55 = vld [vmem:[%s8405_s6 + $0x580] sm:$0xff]  }
 0x288   :  { %5590 = vmatpush3.bf16.msra.mxu0 %v6285_v16  ;;  %v6295_v52 = vld [vmem:[%s8405_s6 + $0x218] sm:$0xff]  }
 0x289   :  { %5591 = vmatprep.subr.bf16.mxu0 %v6454_v43 }
 0x28a   :  { %5504 = vmatpush3.bf16.msra.mxu1 %v6286_v51  ;;  %v6290_v51 = vld [vmem:[%s8405_s6 + $0xe8] sm:$0xff]  }
 0x28b   :  { %5505 = vmatprep.subr.bf16.mxu1 %v6454_v43 }
 0x28c   :  { %5592 = vmatpush3.bf16.msra.mxu0 %v6287_v13  ;;  %v7600_v21 = vpop.f32.mrb[200].mxu1 }
 0x28d   :  { %v1451_v16 = vmax.f32 %v7336_v29, %v7600_v21  ;;  %v1417_v61 = vpop.f32.mrb[201].mxu1  ;;  %5597 = vmatprep.subr.bf16.mxu0 %v6454_v43  ;;  %v6421_v29 = vld [vmem:[%s8405_s6 + $0x5c8] sm:$0xff]   ;;  %v6422_v21 = vld [vmem:[%s8405_s6 + $0x5d0] sm:$0xff]  }
 0x28e   :  { %5506 = vmatpush3.bf16.msra.mxu1 %v6288_v10  ;;  %v7608_v39 = vpop.f32.mrb[202].mxu1  ;;  %v6292_v10 = vld [vmem:[%s8405_s6 + $0xf0] sm:$0xff]  }
 0x28f   :  { %5594 = vmatmul.mubr.bf16.vlgmr.msra.gmra.mrb[0].mxu0 %v2267_v23  ;;  %5507 = vmatprep.subr.bf16.mxu1 %v6454_v43  ;;  %v1420_v13 = vpop.f32.mrb[203].mxu1  ;;  %v1464_v23 = vadd.f32 %v7351_v1, %v1432_v6  ;;  %v6293_v61 = vld [vmem:[%s8405_s6 + $0x210] sm:$0xff]  }
 0x290   :  { %5598 = vmatpush3.bf16.msra.mxu0 %v6289_v36  ;;  %5613 = vmatprep.mubr.msk.bf16.mxu0 %vm6455_vm2, %v6454_v43 }
 0x291   :  { %5599 = vmatprep.subr.bf16.mxu0 %v6454_v43  ;;  %v1489_v6 = vmax.f32 %v1464_v23, 0.0  ;;  %v6297_v23 = vld [vmem:[%s8405_s6 + $0x220] sm:$0xff]  }
 0x292   :  { %5508 = vmatpush3.bf16.msra.mxu1 %v6290_v51 }
 0x293   :  { %5509 = vmatprep.subr.bf16.mxu1 %v6454_v43 }
 0x294   :  { %5600 = vmatpush3.bf16.msra.mxu0 %v6291_v49  ;;  %v7630_v36 = vpop.f32.mrb[204].mxu1 }
 0x295   :  { %v1453_v51 = vmax.f32 %v7346_v60, %v7630_v36  ;;  %5601 = vmatprep.subr.bf16.mxu0 %v6454_v43  ;;  %v1425_v13 = vpop.f32.mrb[205].mxu1  ;;  %v6443_v60 = vld [vmem:[%s8407_s8 + $0x38] sm:$0xff]   ;;  %v4591_v36 = vld [vmem:[%s8409_s7] ss:$0 sm:$0xff] }
 0x296   :  { %5510 = vmatpush3.bf16.msra.mxu1 %v6292_v10  ;;  %v1426_v11 = vpop.f32.mrb[206].mxu1  ;;  %v6296_v10 = vld [vmem:[%s8405_s6 + $0x100] sm:$0xff]   ;;  %v1839_v13 = vpack.c.bf16 %v1489_v6, %v1489_v6  ;;  %v1469_v6 = vadd.f32 %v7351_v1, %v1437_v24 }
 0x297   :  { %5511 = vmatprep.subr.bf16.mxu1 %v6454_v43  ;;  %v1427_v49 = vpop.f32.mrb[207].mxu1  ;;  %v6301_v11 = vld [vmem:[%s8405_s6 + $0x230] sm:$0xff]  }
 0x298   :  { %5602 = vmatpush3.bf16.msra.mxu0 %v6293_v61  ;;  %v6298_v61 = vld [vmem:[%s8405_s6 + $0x108] sm:$0xff]   ;;  %v6302_v49 = vld [vmem:[%s8405_s6 + $0x118] sm:$0xff]  }
 0x299   :  { %5603 = vmatprep.subr.bf16.mxu0 %v6454_v43 }
 0x29a   :  { %5512 = vmatpush3.bf16.msra.mxu1 %v6294_v33  ;;  %v6300_v33 = vld [vmem:[%s8405_s6 + $0x110] sm:$0xff]  }
 0x29b   :  { %5517 = vmatprep.subr.bf16.mxu1 %v6454_v43 }
 0x29c   :  { %5604 = vmatpush3.bf16.msra.mxu0 %v6295_v52  ;;  %v6299_v52 = vld [vmem:[%s8405_s6 + $0x228] sm:$0xff]  }
 0x29d   :  { %5514 = vmatmul.mubr.bf16.vlgmr.msra.gmra.mrb[208].mxu1 %v1839_v13  ;;  %5605 = vmatprep.subr.bf16.mxu0 %v6454_v43  ;;  %v1494_v13 = vmax.f32 %v1469_v6, 0.0  ;;  %v6310_v6 = vld [vmem:[%s8405_s6 + $0x138] sm:$0xff]  }
 0x29e   :  { %5518 = vmatpush3.bf16.msra.mxu1 %v6296_v10  ;;  %5533 = vmatprep.mubr.msk.bf16.mxu1 %vm6455_vm2, %v6454_v43  ;;  %v6303_v10 = vld [vmem:[%s8405_s6 + $0x238] sm:$0xff]  }
 0x29f   :  { %5519 = vmatprep.subr.bf16.mxu1 %v6454_v43  ;;  %v2374_v24 = vpack.c.bf16 %v1494_v13, %v1494_v13  ;;  %v6314_v13 = vld [vmem:[%s8405_s6 + $0x270] sm:$0xff]  }
 0x2a0   :  { %5606 = vmatpush3.bf16.msra.mxu0 %v6297_v23  ;;  %v6306_v23 = vld [vmem:[%s8405_s6 + $0x128] sm:$0xff]  }
 0x2a1   :  { %5607 = vmatprep.subr.bf16.mxu0 %v6454_v43 }
 0x2a2   :  { %5520 = vmatpush3.bf16.msra.mxu1 %v6298_v61  ;;  %v6307_v61 = vld [vmem:[%s8405_s6 + $0x248] sm:$0xff]  }
 0x2a3   :  { %5521 = vmatprep.subr.bf16.mxu1 %v6454_v43 }
 0x2a4   :  { %5608 = vmatpush3.bf16.msra.mxu0 %v6299_v52  ;;  %v6308_v52 = vld [vmem:[%s8405_s6 + $0x130] sm:$0xff]  }
 0x2a5   :  { %5609 = vmatprep.subr.bf16.mxu0 %v6454_v43 }
 0x2a6   :  { %5522 = vmatpush3.bf16.msra.mxu1 %v6300_v33  ;;  %v1465_v33 = vadd.f32 %v7351_v1, %v1433_v32  ;;  %v6312_v32 = vld [vmem:[%s8405_s6 + $0x260] sm:$0xff]  }
 0x2a7   :  { %5523 = vmatprep.subr.bf16.mxu1 %v6454_v43 }
 0x2a8   :  { %5610 = vmatpush3.bf16.msra.mxu0 %v6301_v11  ;;  %v6309_v11 = vld [vmem:[%s8405_s6 + $0x250] sm:$0xff]  }
 0x2a9   :  { %5611 = vmatprep.subr.bf16.mxu0 %v6454_v43 }
 0x2aa   :  { %5524 = vmatpush3.bf16.msra.mxu1 %v6302_v49  ;;  %v1490_v49 = vmax.f32 %v1465_v33, 0.0  ;;  %v6321_v33 = vld [vmem:[%s8405_s6 + $0x2a8] sm:$0xff]  }
 0x2ab   :  { %5525 = vmatprep.subr.bf16.mxu1 %v6454_v43 }
 0x2ac   :  { %5612 = vmatpush3.bf16.msra.mxu0 %v6303_v10  ;;  %v1946_v19 = vpack.c.bf16 %v1490_v49, %v1490_v49  ;;  %v6313_v10 = vld [vmem:[%s8405_s6 + $0x268] sm:$0xff]   ;;  %v6323_v49 = vld [vmem:[%s8405_s6 + $0x2b8] sm:$0xff]  }
 0x2ad   :  { %5617 = vmatprep.subr.bf16.mxu0 %v6454_v43 }
 0x2ae   :  { %5526 = vmatpush3.bf16.msra.mxu1 %v6304_v58  ;;  %v1470_v58 = vadd.f32 %v7351_v1, %v1438_v27  ;;  %v6319_v27 = vld [vmem:[%s8405_s6 + $0x298] sm:$0xff]  }
 0x2af   :  { %5614 = vmatmul.mubr.bf16.vlgmr.msra.gmra.mrb[0].mxu0 %v2374_v24  ;;  %5527 = vmatprep.subr.bf16.mxu1 %v6454_v43 }
 0x2b0   :  { %5618 = vmatpush3.bf16.msra.mxu0 %v6305_v3  ;;  %5633 = vmatprep.mubr.msk.bf16.mxu0 %vm6455_vm2, %v6454_v43  ;;  %v6315_v3 = vld [vmem:[%s8405_s6 + $0x278] sm:$0xff]   ;;  %v1495_v24 = vmax.f32 %v1470_v58, 0.0  ;;  %v6330_v58 = vld [vmem:[%s8405_s6 + $0x2f0] sm:$0xff]  }
 0x2b1   :  { %5619 = vmatprep.subr.bf16.mxu0 %v6454_v43 }
 0x2b2   :  { %5528 = vmatpush3.bf16.msra.mxu1 %v6306_v23  ;;  %v6316_v23 = vld [vmem:[%s8405_s6 + $0x280] sm:$0xff]  }
 0x2b3   :  { %5529 = vmatprep.subr.bf16.mxu1 %v6454_v43 }
 0x2b4   :  { %5620 = vmatpush3.bf16.msra.mxu0 %v6307_v61  ;;  %v2481_v61 = vpack.c.bf16 %v1495_v24, %v1495_v24  ;;  %v6331_v24 = vld [vmem:[%s8405_s6 + $0x2f8] sm:$0xff]  }
 0x2b5   :  { %5621 = vmatprep.subr.bf16.mxu0 %v6454_v43 }
 0x2b6   :  { %5530 = vmatpush3.bf16.msra.mxu1 %v6308_v52  ;;  %v6320_v52 = vld [vmem:[%s8405_s6 + $0x2a0] sm:$0xff]  }
 0x2b7   :  { %5531 = vmatprep.subr.bf16.mxu1 %v6454_v43 }
 0x2b8   :  { %5622 = vmatpush3.bf16.msra.mxu0 %v6309_v11  ;;  %v6322_v11 = vld [vmem:[%s8405_s6 + $0x2b0] sm:$0xff]  }
 0x2b9   :  { %5623 = vmatprep.subr.bf16.mxu0 %v6454_v43 }
 0x2ba   :  { %5532 = vmatpush3.bf16.msra.mxu1 %v6310_v6  ;;  %v1471_v6 = vadd.f32 %v7351_v1, %v1439_v50  ;;  %v6327_v50 = vld [vmem:[%s8405_s6 + $0x2d8] sm:$0xff]  }
 0x2bb   :  { %5937 = vmatprep.subr.bf16.mxu1 %v6454_v43 }
 0x2bc   :  { %5624 = vmatpush3.bf16.msra.mxu0 %v6311_v37  ;;  %v1496_v37 = vmax.f32 %v1471_v6, 0.0 }
 0x2bd   :  { %5534 = vmatmul.mubr.bf16.vlgmr.msra.gmra.mrb[208].mxu1 %v1946_v19  ;;  %5625 = vmatprep.subr.bf16.mxu0 %v6454_v43  ;;  %v6324_v19 = vld [vmem:[%s8405_s6 + $0x2c0] sm:$0xff]  }
 0x2be   :  { %5953 = vmatprep.mubr.msk.bf16.mxu1 %vm6455_vm2, %v6454_v43  ;;  %5938 = vmatpush3.bf16.msra.mxu1 %v6436_v40  ;;  %v6447_v40 = vld [vmem:[%s8408_s10 + $0x18] sm:$0xff]  }
 0x2bf   :  { %5939 = vmatprep.subr.bf16.mxu1 %v6454_v43 }
 0x2c0   :  { %5626 = vmatpush3.bf16.msra.mxu0 %v6312_v32  ;;  %v2588_v32 = vpack.c.bf16 %v1496_v37, %v1496_v37 }
 0x2c1   :  { %5627 = vmatprep.subr.bf16.mxu0 %v6454_v43 }
 0x2c4   :  { %5628 = vmatpush3.bf16.msra.mxu0 %v6313_v10  ;;  %v6328_v10 = vld [vmem:[%s8405_s6 + $0x2e0] sm:$0xff]  }
 0x2c5   :  { %5629 = vmatprep.subr.bf16.mxu0 %v6454_v43 }
 0x2c8   :  { %5630 = vmatpush3.bf16.msra.mxu0 %v6314_v13  ;;  %v6329_v13 = vld [vmem:[%s8405_s6 + $0x2e8] sm:$0xff]  }
 0x2c9   :  { %5631 = vmatprep.subr.bf16.mxu0 %v6454_v43 }
 0x2cc   :  { %5632 = vmatpush3.bf16.msra.mxu0 %v6315_v3  ;;  %v1472_v3 = vadd.f32 %v7351_v1, %v1440_v56  ;;  %v6335_v56 = vld [vmem:[%s8405_s6 + $0x318] sm:$0xff]  }
 0x2cd   :  { %5637 = vmatprep.subr.bf16.mxu0 %v6454_v43 }
 0x2cf   :  { %5634 = vmatmul.mubr.bf16.vlgmr.msra.gmra.mrb[0].mxu0 %v2481_v61  ;;  %v6332_v61 = vld [vmem:[%s8405_s6 + $0x300] sm:$0xff]  }
 0x2d0   :  { %5638 = vmatpush3.bf16.msra.mxu0 %v6316_v23  ;;  %5653 = vmatprep.mubr.msk.bf16.mxu0 %vm6455_vm2, %v6454_v43  ;;  %v1497_v23 = vmax.f32 %v1472_v3, 0.0  ;;  %v6353_v3 = vld [vmem:[%s8405_s6 + $0x3a8] sm:$0xff]  }
 0x2d1   :  { %5639 = vmatprep.subr.bf16.mxu0 %v6454_v43 }
 0x2d4   :  { %5640 = vmatpush3.bf16.msra.mxu0 %v6317_v5  ;;  %v2695_v5 = vpack.c.bf16 %v1497_v23, %v1497_v23  ;;  %v7929_v23 = vld [vmem:[%s8406_s5] ss:$0 sm:$0xff] }
 0x2d5   :  { %5641 = vmatprep.subr.bf16.mxu0 %v6454_v43 }
 0x2d8   :  { %5642 = vmatpush3.bf16.msra.mxu0 %v6318_v31  ;;  %v6336_v31 = vld [vmem:[%s8405_s6 + $0x320] sm:$0xff]  }
 0x2d9   :  { %5643 = vmatprep.subr.bf16.mxu0 %v6454_v43 }
 0x2dc   :  { %5644 = vmatpush3.bf16.msra.mxu0 %v6319_v27  ;;  %v6337_v27 = vld [vmem:[%s8405_s6 + $0x328] sm:$0xff]  }
 0x2dd   :  { %5645 = vmatprep.subr.bf16.mxu0 %v6454_v43 }
 0x2e0   :  { %5646 = vmatpush3.bf16.msra.mxu0 %v6320_v52  ;;  %v6338_v52 = vld [vmem:[%s8405_s6 + $0x330] sm:$0xff]  }
 0x2e1   :  { %5647 = vmatprep.subr.bf16.mxu0 %v6454_v43 }
 0x2e4   :  { %5648 = vmatpush3.bf16.msra.mxu0 %v6321_v33  ;;  %v1473_v33 = vadd.f32 %v7351_v1, %v1441_v41  ;;  %v6343_v41 = vld [vmem:[%s8405_s6 + $0x358] sm:$0xff]  }
 0x2e5   :  { %5649 = vmatprep.subr.bf16.mxu0 %v6454_v43 }
 0x2e6   :  { %v1498_v6 = vmax.f32 %v1473_v33, 0.0  ;;  %v1476_v33 = vadd.f32 %v7929_v23, %v1444_v2 }
 0x2e8   :  { %5650 = vmatpush3.bf16.msra.mxu0 %v6322_v11  ;;  %v6339_v11 = vld [vmem:[%s8405_s6 + $0x338] sm:$0xff]   ;;  %v2802_v37 = vpack.c.bf16 %v1498_v6, %v1498_v6  ;;  %v1501_v6 = vmax.f32 %v1476_v33, 0.0  ;;  %v6392_v33 = vld [vmem:[%s8405_s6 + $0x4e0] sm:$0xff]  }
 0x2e9   :  { %5651 = vmatprep.subr.bf16.mxu0 %v6454_v43 }
 0x2ec   :  { %5652 = vmatpush3.bf16.msra.mxu0 %v6323_v49  ;;  %v6340_v49 = vld [vmem:[%s8405_s6 + $0x340] sm:$0xff]  }
 0x2ed   :  { %5657 = vmatprep.subr.bf16.mxu0 %v6454_v43 }
 0x2ef   :  { %5654 = vmatmul.mubr.bf16.vlgmr.msra.gmra.mrb[0].mxu0 %v2588_v32  ;;  %v6345_v32 = vld [vmem:[%s8405_s6 + $0x368] sm:$0xff]  }
 0x2f0   :  { %5658 = vmatpush3.bf16.msra.mxu0 %v6324_v19  ;;  %5673 = vmatprep.mubr.msk.bf16.mxu0 %vm6455_vm2, %v6454_v43  ;;  %v6344_v19 = vld [vmem:[%s8405_s6 + $0x360] sm:$0xff]  }
 0x2f1   :  { %5659 = vmatprep.subr.bf16.mxu0 %v6454_v43 }
 0x2f4   :  { %5660 = vmatpush3.bf16.msra.mxu0 %v6325_v18  ;;  %v6346_v18 = vld [vmem:[%s8405_s6 + $0x370] sm:$0xff]  }
 0x2f5   :  { %5661 = vmatprep.subr.bf16.mxu0 %v6454_v43 }
 0x2f8   :  { %5662 = vmatpush3.bf16.msra.mxu0 %v6326_v7  ;;  %v1474_v7 = vadd.f32 %v7351_v1, %v1442_v46  ;;  %v6350_v1 = vld [vmem:[%s8405_s6 + $0x390] sm:$0xff]   ;;  %v6352_v46 = vld [vmem:[%s8405_s6 + $0x3a0] sm:$0xff]  }
 0x2f9   :  { %5663 = vmatprep.subr.bf16.mxu0 %v6454_v43 }
 0x2fc   :  { %5664 = vmatpush3.bf16.msra.mxu0 %v6327_v50  ;;  %v6347_v50 = vld [vmem:[%s8405_s6 + $0x378] sm:$0xff]  }
 0x2fd   :  { %5665 = vmatprep.subr.bf16.mxu0 %v6454_v43 }
 0x300   :  { %5666 = vmatpush3.bf16.msra.mxu0 %v6328_v10  ;;  %v1499_v10 = vmax.f32 %v1474_v7, 0.0  ;;  %v6370_v7 = vld [vmem:[%s8405_s6 + $0x430] sm:$0xff]  }
 0x301   :  { %5667 = vmatprep.subr.bf16.mxu0 %v6454_v43 }
 0x304   :  { %5668 = vmatpush3.bf16.msra.mxu0 %v6329_v13  ;;  %v6348_v13 = vld [vmem:[%s8405_s6 + $0x380] sm:$0xff]  }
 0x305   :  { %5669 = vmatprep.subr.bf16.mxu0 %v6454_v43 }
 0x308   :  { %5670 = vmatpush3.bf16.msra.mxu0 %v6330_v58  ;;  %v2909_v58 = vpack.c.bf16 %v1499_v10, %v1499_v10  ;;  %v6371_v10 = vld [vmem:[%s8405_s6 + $0x438] sm:$0xff]  }
 0x309   :  { %5671 = vmatprep.subr.bf16.mxu0 %v6454_v43 }
 0x30c   :  { %5672 = vmatpush3.bf16.msra.mxu0 %v6331_v24  ;;  %v6354_v24 = vld [vmem:[%s8405_s6 + $0x3b0] sm:$0xff]  }
 0x30d   :  { %5677 = vmatprep.subr.bf16.mxu0 %v6454_v43 }
 0x30f   :  { %5674 = vmatmul.mubr.bf16.vlgmr.msra.gmra.mrb[0].mxu0 %v2695_v5  ;;  %v6355_v5 = vld [vmem:[%s8405_s6 + $0x3b8] sm:$0xff]  }
 0x310   :  { %5678 = vmatpush3.bf16.msra.mxu0 %v6332_v61  ;;  %5693 = vmatprep.mubr.msk.bf16.mxu0 %vm6455_vm2, %v6454_v43  ;;  %v1475_v61 = vadd.f32 %v7929_v23, %v1443_v48  ;;  %v6359_v48 = vld [vmem:[%s8405_s6 + $0x3d8] sm:$0xff]  }
 0x311   :  { %5679 = vmatprep.subr.bf16.mxu0 %v6454_v43 }
 0x314   :  { %5680 = vmatpush3.bf16.msra.mxu0 %v6333_v25  ;;  %v1500_v25 = vmax.f32 %v1475_v61, 0.0 }
 0x315   :  { %5681 = vmatprep.subr.bf16.mxu0 %v6454_v43 }
 0x318   :  { %5682 = vmatpush3.bf16.msra.mxu0 %v6334_v38  ;;  %v6356_v38 = vld [vmem:[%s8405_s6 + $0x3c0] sm:$0xff]  }
 0x319   :  { %5683 = vmatprep.subr.bf16.mxu0 %v6454_v43 }
 0x31c   :  { %5684 = vmatpush3.bf16.msra.mxu0 %v6335_v56  ;;  %v3016_v56 = vpack.c.bf16 %v1500_v25, %v1500_v25 }
 0x31d   :  { %5685 = vmatprep.subr.bf16.mxu0 %v6454_v43 }
 0x320   :  { %5686 = vmatpush3.bf16.msra.mxu0 %v6336_v31  ;;  %v6360_v31 = vld [vmem:[%s8405_s6 + $0x3e0] sm:$0xff]  }
 0x321   :  { %5687 = vmatprep.subr.bf16.mxu0 %v6454_v43 }
 0x324   :  { %5688 = vmatpush3.bf16.msra.mxu0 %v6337_v27  ;;  %v6361_v27 = vld [vmem:[%s8405_s6 + $0x3e8] sm:$0xff]  }
 0x325   :  { %5689 = vmatprep.subr.bf16.mxu0 %v6454_v43 }
 0x328   :  { %5690 = vmatpush3.bf16.msra.mxu0 %v6338_v52  ;;  %v6362_v52 = vld [vmem:[%s8405_s6 + $0x3f0] sm:$0xff]  }
 0x329   :  { %5691 = vmatprep.subr.bf16.mxu0 %v6454_v43 }
 0x32c   :  { %5692 = vmatpush3.bf16.msra.mxu0 %v6339_v11  ;;  %v6363_v11 = vld [vmem:[%s8405_s6 + $0x3f8] sm:$0xff]  }
 0x32d   :  { %5697 = vmatprep.subr.bf16.mxu0 %v6454_v43 }
 0x32f   :  { %5694 = vmatmul.mubr.bf16.vlgmr.msra.gmra.mrb[0].mxu0 %v2802_v37  ;;  %v3123_v37 = vpack.c.bf16 %v1501_v6, %v1501_v6  ;;  %v6394_v6 = vld [vmem:[%s8405_s6 + $0x4f0] sm:$0xff]  }
 0x330   :  { %5698 = vmatpush3.bf16.msra.mxu0 %v6340_v49  ;;  %5713 = vmatprep.mubr.msk.bf16.mxu0 %vm6455_vm2, %v6454_v43  ;;  %v6364_v49 = vld [vmem:[%s8405_s6 + $0x400] sm:$0xff]  }
 0x331   :  { %5699 = vmatprep.subr.bf16.mxu0 %v6454_v43 }
 0x334   :  { %5700 = vmatpush3.bf16.msra.mxu0 %v6341_v30 }
 0x335   :  { %5701 = vmatprep.subr.bf16.mxu0 %v6454_v43 }
 0x338   :  { %5702 = vmatpush3.bf16.msra.mxu0 %v6342_v42 }
 0x339   :  { %5703 = vmatprep.subr.bf16.mxu0 %v6454_v43 }
 0x33c   :  { %5704 = vmatpush3.bf16.msra.mxu0 %v6343_v41  ;;  %v6366_v41 = vld [vmem:[%s8405_s6 + $0x410] sm:$0xff]  }
 0x33d   :  { %5705 = vmatprep.subr.bf16.mxu0 %v6454_v43 }
 0x340   :  { %5706 = vmatpush3.bf16.msra.mxu0 %v6344_v19  ;;  %v6367_v19 = vld [vmem:[%s8405_s6 + $0x418] sm:$0xff]  }
 0x341   :  { %5707 = vmatprep.subr.bf16.mxu0 %v6454_v43 }
 0x344   :  { %5708 = vmatpush3.bf16.msra.mxu0 %v6345_v32  ;;  %v6368_v32 = vld [vmem:[%s8405_s6 + $0x420] sm:$0xff]  }
 0x345   :  { %5709 = vmatprep.subr.bf16.mxu0 %v6454_v43 }
 0x348   :  { %5710 = vmatpush3.bf16.msra.mxu0 %v6346_v18  ;;  %v6369_v18 = vld [vmem:[%s8405_s6 + $0x428] sm:$0xff]  }
 0x349   :  { %5711 = vmatprep.subr.bf16.mxu0 %v6454_v43 }
 0x34c   :  { %5712 = vmatpush3.bf16.msra.mxu0 %v6347_v50  ;;  %v1477_v50 = vadd.f32 %v7929_v23, %v1445_v62  ;;  %v6375_v62 = vld [vmem:[%s8405_s6 + $0x458] sm:$0xff]  }
 0x34d   :  { %5717 = vmatprep.subr.bf16.mxu0 %v6454_v43 }
 0x34f   :  { %5714 = vmatmul.mubr.bf16.vlgmr.msra.gmra.mrb[0].mxu0 %v2909_v58  ;;  %v6372_v58 = vld [vmem:[%s8405_s6 + $0x440] sm:$0xff]  }
 0x350   :  { %5718 = vmatpush3.bf16.msra.mxu0 %v6348_v13  ;;  %5733 = vmatprep.mubr.msk.bf16.mxu0 %vm6455_vm2, %v6454_v43  ;;  %v1502_v13 = vmax.f32 %v1477_v50, 0.0  ;;  %v6404_v50 = vld [vmem:[%s8405_s6 + $0x540] sm:$0xff]  }
 0x351   :  { %5719 = vmatprep.subr.bf16.mxu0 %v6454_v43 }
 0x354   :  { %5720 = vmatpush3.bf16.msra.mxu0 %v6349_v9  ;;  %v3230_v9 = vpack.c.bf16 %v1502_v13, %v1502_v13  ;;  %v6406_v13 = vld [vmem:[%s8405_s6 + $0x550] sm:$0xff]  }
 0x355   :  { %5721 = vmatprep.subr.bf16.mxu0 %v6454_v43 }
 0x358   :  { %5722 = vmatpush3.bf16.msra.mxu0 %v6350_v1  ;;  %v6376_v1 = vld [vmem:[%s8405_s6 + $0x460] sm:$0xff]  }
 0x359   :  { %5723 = vmatprep.subr.bf16.mxu0 %v6454_v43 }
 0x35c   :  { %5724 = vmatpush3.bf16.msra.mxu0 %v6351_v0  ;;  %v6377_v0 = vld [vmem:[%s8405_s6 + $0x468] sm:$0xff]  }
 0x35d   :  { %5725 = vmatprep.subr.bf16.mxu0 %v6454_v43 }
 0x360   :  { %5726 = vmatpush3.bf16.msra.mxu0 %v6352_v46  ;;  %v6378_v46 = vld [vmem:[%s8405_s6 + $0x470] sm:$0xff]  }
 0x361   :  { %5727 = vmatprep.subr.bf16.mxu0 %v6454_v43 }
 0x364   :  { %5728 = vmatpush3.bf16.msra.mxu0 %v6353_v3  ;;  %v1478_v3 = vadd.f32 %v7929_v23, %v1446_v34  ;;  %v6383_v34 = vld [vmem:[%s8405_s6 + $0x498] sm:$0xff]  }
 0x365   :  { %5729 = vmatprep.subr.bf16.mxu0 %v6454_v43 }
 0x366   :  { %v1503_v61 = vmax.f32 %v1478_v3, 0.0  ;;  %v1482_v3 = vadd.f32 %v7929_v23, %v1450_v47  ;;  %v6413_v47 = vld [vmem:[%s8405_s6 + $0x588] sm:$0xff]  }
 0x368   :  { %5730 = vmatpush3.bf16.msra.mxu0 %v6354_v24  ;;  %v6379_v24 = vld [vmem:[%s8405_s6 + $0x478] sm:$0xff]   ;;  %v3337_v25 = vpack.c.bf16 %v1503_v61, %v1503_v61  ;;  %v1507_v61 = vmax.f32 %v1482_v3, 0.0 }
 0x369   :  { %5731 = vmatprep.subr.bf16.mxu0 %v6454_v43 }
 0x36a   :  { %v3765_v22 = vpack.c.bf16 %v1507_v61, %v1507_v61 }
 0x36c   :  { %5732 = vmatpush3.bf16.msra.mxu0 %v6355_v5  ;;  %v6380_v5 = vld [vmem:[%s8405_s6 + $0x480] sm:$0xff]  }
 0x36d   :  { %5737 = vmatprep.subr.bf16.mxu0 %v6454_v43 }
 0x36f   :  { %5734 = vmatmul.mubr.bf16.vlgmr.msra.gmra.mrb[0].mxu0 %v3016_v56  ;;  %v6385_v56 = vld [vmem:[%s8405_s6 + $0x4a8] sm:$0xff]  }
 0x370   :  { %5738 = vmatpush3.bf16.msra.mxu0 %v6356_v38  ;;  %5753 = vmatprep.mubr.msk.bf16.mxu0 %vm6455_vm2, %v6454_v43  ;;  %v6384_v38 = vld [vmem:[%s8405_s6 + $0x4a0] sm:$0xff]  }
 0x371   :  { %5739 = vmatprep.subr.bf16.mxu0 %v6454_v43 }
 0x374   :  { %5740 = vmatpush3.bf16.msra.mxu0 %v6357_v45  ;;  %v6386_v45 = vld [vmem:[%s8405_s6 + $0x4b0] sm:$0xff]  }
 0x375   :  { %5741 = vmatprep.subr.bf16.mxu0 %v6454_v43 }
 0x378   :  { %5742 = vmatpush3.bf16.msra.mxu0 %v6358_v26  ;;  %v1479_v26 = vadd.f32 %v7929_v23, %v1447_v28  ;;  %v6391_v28 = vld [vmem:[%s8405_s6 + $0x4d8] sm:$0xff]  }
 0x379   :  { %5743 = vmatprep.subr.bf16.mxu0 %v6454_v43 }
 0x37c   :  { %5744 = vmatpush3.bf16.msra.mxu0 %v6359_v48  ;;  %v6387_v48 = vld [vmem:[%s8405_s6 + $0x4b8] sm:$0xff]  }
 0x37d   :  { %5745 = vmatprep.subr.bf16.mxu0 %v6454_v43 }
 0x380   :  { %5746 = vmatpush3.bf16.msra.mxu0 %v6360_v31  ;;  %v1504_v31 = vmax.f32 %v1479_v26, 0.0  ;;  %v6420_v26 = vld [vmem:[%s8405_s6 + $0x5c0] sm:$0xff]  }
 0x381   :  { %5747 = vmatprep.subr.bf16.mxu0 %v6454_v43 }
 0x384   :  { %5748 = vmatpush3.bf16.msra.mxu0 %v6361_v27  ;;  %v6388_v27 = vld [vmem:[%s8405_s6 + $0x4c0] sm:$0xff]  }
 0x385   :  { %5749 = vmatprep.subr.bf16.mxu0 %v6454_v43 }
 0x388   :  { %5750 = vmatpush3.bf16.msra.mxu0 %v6362_v52  ;;  %v3444_v52 = vpack.c.bf16 %v1504_v31, %v1504_v31  ;;  %v6424_v31 = vld [vmem:[%s8405_s6 + $0x5e0] sm:$0xff]  }
 0x389   :  { %5751 = vmatprep.subr.bf16.mxu0 %v6454_v43 }
 0x38c   :  { %5752 = vmatpush3.bf16.msra.mxu0 %v6363_v11  ;;  %v6393_v11 = vld [vmem:[%s8405_s6 + $0x4e8] sm:$0xff]  }
 0x38d   :  { %5757 = vmatprep.subr.bf16.mxu0 %v6454_v43 }
 0x38f   :  { %5754 = vmatmul.mubr.bf16.vlgmr.msra.gmra.mrb[0].mxu0 %v3123_v37  ;;  %v6395_v37 = vld [vmem:[%s8405_s6 + $0x4f8] sm:$0xff]  }
 0x390   :  { %v7982_v57 = vpop.f32.mrb[208].mxu1  ;;  %5758 = vmatpush3.bf16.msra.mxu0 %v6364_v49  ;;  %5773 = vmatprep.mubr.msk.bf16.mxu0 %vm6455_vm2, %v6454_v43  ;;  %v1480_v49 = vadd.f32 %v7929_v23, %v1448_v8  ;;  %v6399_v8 = vld [vmem:[%s8405_s6 + $0x518] sm:$0xff]  }
 0x391   :  { %v5535_v2 = vpop.f32.mrb[209].mxu1  ;;  %5759 = vmatprep.subr.bf16.mxu0 %v6454_v43 }
 0x392   :  { %v2049_v30 = vpop.f32.mrb[210].mxu1  ;;  %v6396_v2 = vld [vmem:[%s8405_s6 + $0x500] sm:$0xff]  }
 0x393   :  { %v5536_v42 = vpop.f32.mrb[211].mxu1 }
 0x394   :  { %5760 = vmatpush3.bf16.msra.mxu0 %v6365_v44  ;;  %v1505_v44 = vmax.f32 %v1480_v49, 0.0  ;;  %v6400_v42 = vld [vmem:[%s8405_s6 + $0x520] sm:$0xff]   ;;  %v6431_v49 = vld [vmem:[%s8405_s6 + $0x618] sm:$0xff]  }
 0x395   :  { %5761 = vmatprep.subr.bf16.mxu0 %v6454_v43 }
 0x396   :  { %v3551_v30 = vpack.c.bf16 %v1505_v44, %v1505_v44  ;;  %v6433_v44 = vld [vmem:[%s8405_s6 + $0x628] sm:$0xff]  }
 0x398   :  { %5762 = vmatpush3.bf16.msra.mxu0 %v6366_v41  ;;  %v6401_v41 = vld [vmem:[%s8405_s6 + $0x528] sm:$0xff]  }
 0x399   :  { %5763 = vmatprep.subr.bf16.mxu0 %v6454_v43 }
 0x39c   :  { %5764 = vmatpush3.bf16.msra.mxu0 %v6367_v19  ;;  %v6402_v19 = vld [vmem:[%s8405_s6 + $0x530] sm:$0xff]  }
 0x39d   :  { %5765 = vmatprep.subr.bf16.mxu0 %v6454_v43 }
 0x3a0   :  { %5766 = vmatpush3.bf16.msra.mxu0 %v6368_v32  ;;  %v1481_v32 = vadd.f32 %v7929_v23, %v1449_v54  ;;  %v6437_v54 = vld [vmem:[%s8407_s8 + $0x8] sm:$0xff]  }
 0x3a1   :  { %5767 = vmatprep.subr.bf16.mxu0 %v6454_v43  ;;  %5940 = vmatpush3.bf16.msra.mxu1 %v6437_v54  ;;  %v6448_v54 = vld [vmem:[%s8408_s10 + $0x20] sm:$0xff]  }
 0x3a2   :  { %5941 = vmatprep.subr.bf16.mxu1 %v6454_v43 }
 0x3a4   :  { %5768 = vmatpush3.bf16.msra.mxu0 %v6369_v18  ;;  %v6403_v18 = vld [vmem:[%s8405_s6 + $0x538] sm:$0xff]  }
 0x3a5   :  { %5769 = vmatprep.subr.bf16.mxu0 %v6454_v43 }
 0x3a8   :  { %5770 = vmatpush3.bf16.msra.mxu0 %v6370_v7  ;;  %v1506_v7 = vmax.f32 %v1481_v32, 0.0 }
 0x3a9   :  { %5771 = vmatprep.subr.bf16.mxu0 %v6454_v43 }
 0x3ac   :  { %5772 = vmatpush3.bf16.msra.mxu0 %v6371_v10  ;;  %v3658_v10 = vpack.c.bf16 %v1506_v7, %v1506_v7 }
 0x3ad   :  { %5777 = vmatprep.subr.bf16.mxu0 %v6454_v43 }
 0x3af   :  { %5774 = vmatmul.mubr.bf16.vlgmr.msra.gmra.mrb[0].mxu0 %v3230_v9  ;;  %v6407_v9 = vld [vmem:[%s8405_s6 + $0x558] sm:$0xff]  }
 0x3b0   :  { %5778 = vmatpush3.bf16.msra.mxu0 %v6372_v58  ;;  %5793 = vmatprep.mubr.msk.bf16.mxu0 %vm6455_vm2, %v6454_v43  ;;  %v6438_v58 = vld [vmem:[%s8407_s8 + $0x10] sm:$0xff]  }
 0x3b1   :  { %5779 = vmatprep.subr.bf16.mxu0 %v6454_v43  ;;  %5942 = vmatpush3.bf16.msra.mxu1 %v6438_v58  ;;  %v6450_v58 = vld [vmem:[%s8408_s10 + $0x30] sm:$0xff]  }
 0x3b2   :  { %5943 = vmatprep.subr.bf16.mxu1 %v6454_v43 }
 0x3b4   :  { %5780 = vmatpush3.bf16.msra.mxu0 %v6373_v15  ;;  %v6439_v15 = vld [vmem:[%s8407_s8 + $0x18] sm:$0xff]  }
 0x3b5   :  { %5781 = vmatprep.subr.bf16.mxu0 %v6454_v43  ;;  %5944 = vmatpush3.bf16.msra.mxu1 %v6439_v15  ;;  %v5176_v15 = vld [vmem:[%s8410_s9] ss:$0 sm:$0xff] }
 0x3b6   :  { %5945 = vmatprep.subr.bf16.mxu1 %v6454_v43 }
 0x3b8   :  { %5782 = vmatpush3.bf16.msra.mxu0 %v6374_v59  ;;  %v6408_v59 = vld [vmem:[%s8405_s6 + $0x560] sm:$0xff]  }
 0x3b9   :  { %5783 = vmatprep.subr.bf16.mxu0 %v6454_v43 }
 0x3bc   :  { %5784 = vmatpush3.bf16.msra.mxu0 %v6375_v62  ;;  %v6440_v62 = vld [vmem:[%s8407_s8 + $0x20] sm:$0xff]  }
 0x3bd   :  { %5785 = vmatprep.subr.bf16.mxu0 %v6454_v43  ;;  %5946 = vmatpush3.bf16.msra.mxu1 %v6440_v62 }
 0x3be   :  { %5947 = vmatprep.subr.bf16.mxu1 %v6454_v43 }
 0x3c0   :  { %5786 = vmatpush3.bf16.msra.mxu0 %v6376_v1  ;;  %v6409_v1 = vld [vmem:[%s8405_s6 + $0x568] sm:$0xff]  }
 0x3c1   :  { %5787 = vmatprep.subr.bf16.mxu0 %v6454_v43 }
 0x3c4   :  { %5788 = vmatpush3.bf16.msra.mxu0 %v6377_v0  ;;  %v6441_v0 = vld [vmem:[%s8407_s8 + $0x28] sm:$0xff]  }
 0x3c5   :  { %5789 = vmatprep.subr.bf16.mxu0 %v6454_v43  ;;  %5948 = vmatpush3.bf16.msra.mxu1 %v6441_v0 }
 0x3c6   :  { %5949 = vmatprep.subr.bf16.mxu1 %v6454_v43 }
 0x3c8   :  { %5790 = vmatpush3.bf16.msra.mxu0 %v6378_v46  ;;  %v6410_v46 = vld [vmem:[%s8405_s6 + $0x570] sm:$0xff]  }
 0x3c9   :  { %5791 = vmatprep.subr.bf16.mxu0 %v6454_v43 }
 0x3cc   :  { %5792 = vmatpush3.bf16.msra.mxu0 %v6379_v24  ;;  %v6411_v24 = vld [vmem:[%s8405_s6 + $0x578] sm:$0xff]  }
 0x3cd   :  { %5797 = vmatprep.subr.bf16.mxu0 %v6454_v43 }
 0x3cf   :  { %5794 = vmatmul.mubr.bf16.vlgmr.msra.gmra.mrb[0].mxu0 %v3337_v25  ;;  %v6415_v25 = vld [vmem:[%s8405_s6 + $0x598] sm:$0xff]  }
 0x3d0   :  { %5798 = vmatpush3.bf16.msra.mxu0 %v6380_v5  ;;  %5813 = vmatprep.mubr.msk.bf16.mxu0 %vm6455_vm2, %v6454_v43  ;;  %v6414_v5 = vld [vmem:[%s8405_s6 + $0x590] sm:$0xff]  }
 0x3d1   :  { %5799 = vmatprep.subr.bf16.mxu0 %v6454_v43 }
 0x3d4   :  { %5800 = vmatpush3.bf16.msra.mxu0 %v6381_v35  ;;  %v6416_v35 = vld [vmem:[%s8405_s6 + $0x5a0] sm:$0xff]  }
 0x3d5   :  { %5801 = vmatprep.subr.bf16.mxu0 %v6454_v43 }
 0x3d8   :  { %5802 = vmatpush3.bf16.msra.mxu0 %v6382_v17  ;;  %v6417_v17 = vld [vmem:[%s8405_s6 + $0x5a8] sm:$0xff]  }
 0x3d9   :  { %5803 = vmatprep.subr.bf16.mxu0 %v6454_v43 }
 0x3dc   :  { %5804 = vmatpush3.bf16.msra.mxu0 %v6383_v34  ;;  %v6418_v34 = vld [vmem:[%s8405_s6 + $0x5b0] sm:$0xff]  }
 0x3dd   :  { %5805 = vmatprep.subr.bf16.mxu0 %v6454_v43 }
 0x3e0   :  { %5806 = vmatpush3.bf16.msra.mxu0 %v6384_v38  ;;  %v1483_v38 = vadd.f32 %v7929_v23, %v1451_v16  ;;  %v6423_v16 = vld [vmem:[%s8405_s6 + $0x5d8] sm:$0xff]  }
 0x3e1   :  { %5807 = vmatprep.subr.bf16.mxu0 %v6454_v43 }
 0x3e4   :  { %5808 = vmatpush3.bf16.msra.mxu0 %v6385_v56  ;;  %v6419_v56 = vld [vmem:[%s8405_s6 + $0x5b8] sm:$0xff]  }
 0x3e5   :  { %5809 = vmatprep.subr.bf16.mxu0 %v6454_v43 }
 0x3e8   :  { %5810 = vmatpush3.bf16.msra.mxu0 %v6386_v45  ;;  %v1508_v45 = vmax.f32 %v1483_v38, 0.0 }
 0x3e9   :  { %5811 = vmatprep.subr.bf16.mxu0 %v6454_v43 }
 0x3ec   :  { %5812 = vmatpush3.bf16.msra.mxu0 %v6387_v48  ;;  %v3872_v48 = vpack.c.bf16 %v1508_v45, %v1508_v45 }
 0x3ed   :  { %5817 = vmatprep.subr.bf16.mxu0 %v6454_v43 }
 0x3ef   :  { %5814 = vmatmul.mubr.bf16.vlgmr.msra.gmra.mrb[0].mxu0 %v3444_v52  ;;  %v6426_v52 = vld [vmem:[%s8405_s6 + $0x5f0] sm:$0xff]  }
 0x3f0   :  { %5818 = vmatpush3.bf16.msra.mxu0 %v6388_v27  ;;  %5833 = vmatprep.mubr.msk.bf16.mxu0 %vm6455_vm2, %v6454_v43  ;;  %v6425_v27 = vld [vmem:[%s8405_s6 + $0x5e8] sm:$0xff]  }
 0x3f1   :  { %5819 = vmatprep.subr.bf16.mxu0 %v6454_v43 }
 0x3f4   :  { %5820 = vmatpush3.bf16.msra.mxu0 %v6389_v63  ;;  %v8434_v63 = vmax.f32 %v7341_v20, %v7608_v39  ;;  %v6429_v20 = vld [vmem:[%s8405_s6 + $0x608] sm:$0xff]   ;;  %v6430_v39 = vld [vmem:[%s8405_s6 + $0x610] sm:$0xff]  }
 0x3f5   :  { %5821 = vmatprep.subr.bf16.mxu0 %v6454_v43 }
 0x3f8   :  { %5822 = vmatpush3.bf16.msra.mxu0 %v6390_v12  ;;  %v1484_v12 = vadd.f32 %v7929_v23, %v8434_v63 }
 0x3f9   :  { %5823 = vmatprep.subr.bf16.mxu0 %v6454_v43 }
 0x3fc   :  { %5824 = vmatpush3.bf16.msra.mxu0 %v6391_v28  ;;  %v6427_v28 = vld [vmem:[%s8405_s6 + $0x5f8] sm:$0xff]  }
 0x3fd   :  { %5825 = vmatprep.subr.bf16.mxu0 %v6454_v43 }
 0x400   :  { %5826 = vmatpush3.bf16.msra.mxu0 %v6392_v33  ;;  %v1509_v33 = vmax.f32 %v1484_v12, 0.0 }
 0x401   :  { %5827 = vmatprep.subr.bf16.mxu0 %v6454_v43 }
 0x404   :  { %5828 = vmatpush3.bf16.msra.mxu0 %v6393_v11  ;;  %v6428_v11 = vld [vmem:[%s8405_s6 + $0x600] sm:$0xff]  }
 0x405   :  { %5829 = vmatprep.subr.bf16.mxu0 %v6454_v43 }
 0x408   :  { %5830 = vmatpush3.bf16.msra.mxu0 %v6394_v6  ;;  %v3979_v6 = vpack.c.bf16 %v1509_v33, %v1509_v33 }
 0x409   :  { %5831 = vmatprep.subr.bf16.mxu0 %v6454_v43 }
 0x40c   :  { %5832 = vmatpush3.bf16.msra.mxu0 %v6395_v37  ;;  %v6432_v37 = vld [vmem:[%s8405_s6 + $0x620] sm:$0xff]  }
 0x40d   :  { %5837 = vmatprep.subr.bf16.mxu0 %v6454_v43 }
 0x40f   :  { %5834 = vmatmul.mubr.bf16.vlgmr.msra.gmra.mrb[0].mxu0 %v3551_v30  ;;  %v1485_v30 = vadd.f32 %v7929_v23, %v1453_v51  ;;  %v5977_v51 = vadd.f32 %v4591_v36, %v7982_v57  ;;  %v6446_v57 = vld [vmem:[%s8408_s10 + $0x10] sm:$0xff]  }
 0x410   :  { %5838 = vmatpush3.bf16.msra.mxu0 %v6396_v2  ;;  %5853 = vmatprep.mubr.msk.bf16.mxu0 %vm6455_vm2, %v6454_v43  ;;  %v6434_v2 = vld [vmem:[%s8405_s6 + $0x630] sm:$0xff]  }
 0x411   :  { %5839 = vmatprep.subr.bf16.mxu0 %v6454_v43 }
 0x414   :  { %5840 = vmatpush3.bf16.msra.mxu0 %v6397_v14  ;;  %v6435_v14 = vld [vmem:[%s8405_s6 + $0x638] sm:$0xff]  }
 0x415   :  { %5841 = vmatprep.subr.bf16.mxu0 %v6454_v43 }
 0x418   :  { %5842 = vmatpush3.bf16.msra.mxu0 %v6398_v53  ;;  %v1510_v53 = vmax.f32 %v1485_v30, 0.0 }
 0x419   :  { %5843 = vmatprep.subr.bf16.mxu0 %v6454_v43 }
 0x41c   :  { %5844 = vmatpush3.bf16.msra.mxu0 %v6399_v8  ;;  %v4086_v8 = vpack.c.bf16 %v1510_v53, %v1510_v53 }
 0x41d   :  { %5845 = vmatprep.subr.bf16.mxu0 %v6454_v43 }
 0x420   :  { %5846 = vmatpush3.bf16.msra.mxu0 %v6400_v42  ;;  %v6442_v42 = vld [vmem:[%s8407_s8 + $0x30] sm:$0xff]  }
 0x421   :  { %5847 = vmatprep.subr.bf16.mxu0 %v6454_v43  ;;  %5950 = vmatpush3.bf16.msra.mxu1 %v6442_v42 }
 0x422   :  { %5951 = vmatprep.subr.bf16.mxu1 %v6454_v43 }
 0x424   :  { %5848 = vmatpush3.bf16.msra.mxu0 %v6401_v41 }
 0x425   :  { %5849 = vmatprep.subr.bf16.mxu0 %v6454_v43  ;;  %5952 = vmatpush3.bf16.msra.mxu1 %v6443_v60 }
 0x426   :  { %5957 = vmatprep.subr.bf16.mxu1 %v6454_v43 }
 0x428   :  { %5850 = vmatpush3.bf16.msra.mxu0 %v6402_v19 }
 0x429   :  { %5851 = vmatprep.subr.bf16.mxu0 %v6454_v43 }
 0x42c   :  { %5852 = vmatpush3.bf16.msra.mxu0 %v6403_v18 }
 0x42d   :  { %5857 = vmatprep.subr.bf16.mxu0 %v6454_v43 }
 0x42f   :  { %5854 = vmatmul.mubr.bf16.vlgmr.msra.gmra.mrb[0].mxu0 %v3658_v10 }
 0x430   :  { %5858 = vmatpush3.bf16.msra.mxu0 %v6404_v50  ;;  %5873 = vmatprep.mubr.msk.bf16.mxu0 %vm6455_vm2, %v6454_v43  ;;  %v6444_v50 = vld [vmem:[%s8408_s10] sm:$0xff]  }
 0x431   :  { %5859 = vmatprep.subr.bf16.mxu0 %v6454_v43 }
 0x434   :  { %5860 = vmatpush3.bf16.msra.mxu0 %v6405_v4  ;;  %v6445_v4 = vld [vmem:[%s8408_s10 + $0x8] sm:$0xff]  }
 0x435   :  { %5861 = vmatprep.subr.bf16.mxu0 %v6454_v43 }
 0x438   :  { %5862 = vmatpush3.bf16.msra.mxu0 %v6406_v13  ;;  %v6449_v13 = vld [vmem:[%s8408_s10 + $0x28] sm:$0xff]  }
 0x439   :  { %5863 = vmatprep.subr.bf16.mxu0 %v6454_v43 }
 0x43c   :  { %5864 = vmatpush3.bf16.msra.mxu0 %v6407_v9  ;;  %v6451_v9 = vld [vmem:[%s8408_s10 + $0x38] sm:$0xff]  }
 0x43d   :  { %5865 = vmatprep.subr.bf16.mxu0 %v6454_v43 }
 0x440   :  { %5866 = vmatpush3.bf16.msra.mxu0 %v6408_v59 }
 0x441   :  { %5867 = vmatprep.subr.bf16.mxu0 %v6454_v43 }
 0x444   :  { %5868 = vmatpush3.bf16.msra.mxu0 %v6409_v1 }
 0x445   :  { %5869 = vmatprep.subr.bf16.mxu0 %v6454_v43 }
 0x448   :  { %5870 = vmatpush3.bf16.msra.mxu0 %v6410_v46 }
 0x449   :  { %5871 = vmatprep.subr.bf16.mxu0 %v6454_v43 }
 0x44c   :  { %5872 = vmatpush3.bf16.msra.mxu0 %v6411_v24 }
 0x44d   :  { %5877 = vmatprep.subr.bf16.mxu0 %v6454_v43 }
 0x44f   :  { %5874 = vmatmul.mubr.bf16.vlgmr.msra.gmra.mrb[0].mxu0 %v3765_v22 }
 0x450   :  { %5878 = vmatpush3.bf16.msra.mxu0 %v6412_v55  ;;  %5893 = vmatprep.mubr.msk.bf16.mxu0 %vm6455_vm2, %v6454_v43 }
 0x451   :  { %5879 = vmatprep.subr.bf16.mxu0 %v6454_v43 }
 0x454   :  { %5880 = vmatpush3.bf16.msra.mxu0 %v6413_v47 }
 0x455   :  { %5881 = vmatprep.subr.bf16.mxu0 %v6454_v43 }
 0x458   :  { %5882 = vmatpush3.bf16.msra.mxu0 %v6414_v5 }
 0x459   :  { %5883 = vmatprep.subr.bf16.mxu0 %v6454_v43 }
 0x45c   :  { %5884 = vmatpush3.bf16.msra.mxu0 %v6415_v25 }
 0x45d   :  { %5885 = vmatprep.subr.bf16.mxu0 %v6454_v43 }
 0x460   :  { %5886 = vmatpush3.bf16.msra.mxu0 %v6416_v35 }
 0x461   :  { %5887 = vmatprep.subr.bf16.mxu0 %v6454_v43 }
 0x464   :  { %5888 = vmatpush3.bf16.msra.mxu0 %v6417_v17 }
 0x465   :  { %5889 = vmatprep.subr.bf16.mxu0 %v6454_v43 }
 0x468   :  { %5890 = vmatpush3.bf16.msra.mxu0 %v6418_v34 }
 0x469   :  { %5891 = vmatprep.subr.bf16.mxu0 %v6454_v43 }
 0x46c   :  { %5892 = vmatpush3.bf16.msra.mxu0 %v6419_v56 }
 0x46d   :  { %5897 = vmatprep.subr.bf16.mxu0 %v6454_v43 }
 0x46f   :  { %5894 = vmatmul.mubr.bf16.vlgmr.msra.gmra.mrb[0].mxu0 %v3872_v48 }
 0x470   :  { %5898 = vmatpush3.bf16.msra.mxu0 %v6420_v26  ;;  %5913 = vmatprep.mubr.msk.bf16.mxu0 %vm6455_vm2, %v6454_v43 }
 0x471   :  { %5899 = vmatprep.subr.bf16.mxu0 %v6454_v43 }
 0x474   :  { %5900 = vmatpush3.bf16.msra.mxu0 %v6421_v29 }
 0x475   :  { %5901 = vmatprep.subr.bf16.mxu0 %v6454_v43 }
 0x478   :  { %5902 = vmatpush3.bf16.msra.mxu0 %v6422_v21 }
 0x479   :  { %5903 = vmatprep.subr.bf16.mxu0 %v6454_v43 }
 0x47c   :  { %5904 = vmatpush3.bf16.msra.mxu0 %v6423_v16 }
 0x47d   :  { %5905 = vmatprep.subr.bf16.mxu0 %v6454_v43 }
 0x480   :  { %5906 = vmatpush3.bf16.msra.mxu0 %v6424_v31 }
 0x481   :  { %5907 = vmatprep.subr.bf16.mxu0 %v6454_v43 }
 0x484   :  { %5908 = vmatpush3.bf16.msra.mxu0 %v6425_v27 }
 0x485   :  { %5909 = vmatprep.subr.bf16.mxu0 %v6454_v43 }
 0x488   :  { %5910 = vmatpush3.bf16.msra.mxu0 %v6426_v52 }
 0x489   :  { %5911 = vmatprep.subr.bf16.mxu0 %v6454_v43 }
 0x48c   :  { %5912 = vmatpush3.bf16.msra.mxu0 %v6427_v28 }
 0x48d   :  { %5917 = vmatprep.subr.bf16.mxu0 %v6454_v43 }
 0x48f   :  { %5914 = vmatmul.mubr.bf16.vlgmr.msra.gmra.mrb[0].mxu0 %v3979_v6 }
 0x490   :  { %5918 = vmatpush3.bf16.msra.mxu0 %v6428_v11  ;;  %5933 = vmatprep.mubr.msk.bf16.mxu0 %vm6455_vm2, %v6454_v43 }
 0x491   :  { %5919 = vmatprep.subr.bf16.mxu0 %v6454_v43 }
 0x494   :  { %5920 = vmatpush3.bf16.msra.mxu0 %v6429_v20 }
 0x495   :  { %5921 = vmatprep.subr.bf16.mxu0 %v6454_v43 }
 0x498   :  { %5922 = vmatpush3.bf16.msra.mxu0 %v6430_v39 }
 0x499   :  { %5923 = vmatprep.subr.bf16.mxu0 %v6454_v43 }
 0x49c   :  { %5924 = vmatpush3.bf16.msra.mxu0 %v6431_v49 }
 0x49d   :  { %5925 = vmatprep.subr.bf16.mxu0 %v6454_v43 }
 0x4a0   :  { %5926 = vmatpush3.bf16.msra.mxu0 %v6432_v37 }
 0x4a1   :  { %5927 = vmatprep.subr.bf16.mxu0 %v6454_v43 }
 0x4a4   :  { %5928 = vmatpush3.bf16.msra.mxu0 %v6433_v44 }
 0x4a5   :  { %5929 = vmatprep.subr.bf16.mxu0 %v6454_v43 }
 0x4a8   :  { %5930 = vmatpush3.bf16.msra.mxu0 %v6434_v2 }
 0x4a9   :  { %5931 = vmatprep.subr.bf16.mxu0 %v6454_v43 }
 0x4ac   :  { %5932 = vmatpush3.bf16.msra.mxu0 %v6435_v14 }
 0x4af   :  { %5934 = vmatmul.mubr.bf16.vlgmr.msra.gmra.mrb[0].mxu0 %v4086_v8 }
 0x582   :  { %v4186_v23 = vpop.f32.mrb[0].mxu0 }
 0x583   :  { %v5978_v41 = vadd.f32 %v5977_v51, %v4186_v23  ;;  %v5935_v19 = vpop.f32.mrb[1].mxu0 }
 0x584   :  { %v4189_v32 = vpop.f32.mrb[2].mxu0 }
 0x585   :  { %v4193_v18 = vmax.f32 %v5978_v41, 0.0  ;;  %v5936_v7 = vpop.f32.mrb[3].mxu0 }
 0x587   :  { %v4194_v10 = vpack.c.bf16 %v4193_v18, %v4193_v18 }
 0x589   :  { %5954 = vmatmul.mubr.bf16.vlgmr.msra.gmra.mrb[212].mxu1 %v4194_v10 }
 0x58a   :  { %5958 = vmatpush3.bf16.msra.mxu1 %v6444_v50  ;;  %5973 = vmatprep.mubr.msk.bf16.mxu1 %vm6455_vm2, %v6454_v43 }
 0x58b   :  { %5959 = vmatprep.subr.bf16.mxu1 %v6454_v43 }
 0x58e   :  { %5960 = vmatpush3.bf16.msra.mxu1 %v6445_v4 }
 0x58f   :  { %5961 = vmatprep.subr.bf16.mxu1 %v6454_v43 }
 0x592   :  { %5962 = vmatpush3.bf16.msra.mxu1 %v6446_v57 }
 0x593   :  { %5963 = vmatprep.subr.bf16.mxu1 %v6454_v43 }
 0x596   :  { %5964 = vmatpush3.bf16.msra.mxu1 %v6447_v40 }
 0x597   :  { %5965 = vmatprep.subr.bf16.mxu1 %v6454_v43 }
 0x59a   :  { %5966 = vmatpush3.bf16.msra.mxu1 %v6448_v54 }
 0x59b   :  { %5967 = vmatprep.subr.bf16.mxu1 %v6454_v43 }
 0x59e   :  { %5968 = vmatpush3.bf16.msra.mxu1 %v6449_v13 }
 0x59f   :  { %5969 = vmatprep.subr.bf16.mxu1 %v6454_v43 }
 0x5a2   :  { %5970 = vmatpush3.bf16.msra.mxu1 %v6450_v58 }
 0x5a3   :  { %5971 = vmatprep.subr.bf16.mxu1 %v6454_v43  ;;  %v5185_v43 = vld [vmem:[%s8411_s11] ss:$0 sm:$0xff] }
 0x5a6   :  { %5972 = vmatpush3.bf16.msra.mxu1 %v6451_v9 }
 0x65c   :  { %v4300_v59 = vpop.f32.mrb[212].mxu1 }
 0x65d   :  { %v4301_v62 = vadd.f32 %v5176_v15, %v4300_v59  ;;  %v5955_v1 = vpop.f32.mrb[213].mxu1 }
 0x65e   :  { %v4303_v0 = vpop.f32.mrb[214].mxu1 }
 0x65f   :  { %v4306_v46 = vmax.f32 %v4301_v62, 0.0  ;;  %v5956_v3 = vpop.f32.mrb[215].mxu1 }
 0x661   :  { %v4307_v24 = vpack.c.bf16 %v4306_v46, %v4306_v46 }
 0x663   :  { %5974 = vmatmul.mubr.bf16.vlgmr.msra.gmra.mrb[216].mxu1 %v4307_v24 }
 0x736   :  { %v4413_v61 = vpop.f32.mrb[216].mxu1 }
 0x737   :  { %v4414_v55 = vadd.f32 %v5185_v43, %v4413_v61  ;;  %v5975_v22 = vpop.f32.mrb[217].mxu1 }
 0x738   :  { %v4416_v47 = vpop.f32.mrb[218].mxu1 }
 0x739   :  { %4419 = vst [vmem:[%s8412_s12] sm:$0xff] %v4414_v55  ;;  %v5976_v5 = vpop.f32.mrb[219].mxu1 }

</bundles_post_ra>
